<compile_context>
chip_gen: v7x
topology: tpu7x:2x2x1
jax: 0.10.0
libtpu: 0.0.40
codegen_flags: <defaults>
</compile_context>

<pallas_src>
import functools

import jax
import jax.numpy as jnp
import numpy as np
from jax.experimental import pallas as pl
from jax.experimental.pallas import tpu as pltpu

LANE = 128


def _round_up(x, m):
    return (x + m - 1) // m * m


# -----------------------------------------------------------------------------
# Pallas kernel 1: bidirectional LSTM. grid = (direction, time_block).
# -----------------------------------------------------------------------------
def bilstm_kernel(x_ref, w_ref, b_ref, len_ref, out_ref, h_scr, c_scr):
    d = pl.program_id(0)            # 0 = forward, 1 = backward
    tb = pl.program_id(1)
    n_tb = pl.num_programs(1)

    @pl.when(tb == 0)               # new direction -> zero initial state
    def _():
        h_scr[...] = jnp.zeros_like(h_scr)
        c_scr[...] = jnp.zeros_like(c_scr)

    TT = x_ref.shape[0]
    H_pad = h_scr.shape[-1]

    w = w_ref[...]                  # (E_pad + H_pad, 4*H_pad) bf16, resident in VMEM
    b = b_ref[...]                  # (1, 4*H_pad) f32
    lengths = len_ref[...]          # (B, 1) i32

    # global time offset of this block in the time-major source array
    t0 = ((1 - d) * tb + d * (n_tb - 1 - tb)) * TT

    def step(s, carry):
        h, c = carry                                     # (B, H_pad) f32
        ls = (1 - d) * s + d * (TT - 1 - s)              # walk block backwards for d=1
        x = x_ref[ls]                                    # (B, E_pad) bf16

        xh = jnp.concatenate([x, h.astype(jnp.bfloat16)], axis=-1)
        gates = jnp.dot(xh, w, preferred_element_type=jnp.float32) + b   # (B, 4*H_pad)

        # PyTorch gate order: i, f, g, o (lane-aligned: H_pad is a multiple of 128)
        i_g = jax.nn.sigmoid(gates[:, 0 * H_pad:1 * H_pad])
        f_g = jax.nn.sigmoid(gates[:, 1 * H_pad:2 * H_pad])
        g_g = jnp.tanh(gates[:, 2 * H_pad:3 * H_pad])
        o_g = jax.nn.sigmoid(gates[:, 3 * H_pad:4 * H_pad])

        c_new = f_g * c + i_g * g_g
        h_new = o_g * jnp.tanh(c_new)

        mask = lengths > (t0 + ls)                       # (B, 1) bool
        h = jnp.where(mask, h_new, h)
        c = jnp.where(mask, c_new, c)
        # pad_packed_sequence zero-pads past each sequence's length
        out_ref[ls] = jnp.where(mask, h_new, 0.0).astype(out_ref.dtype)
        return h, c

    h_fin, c_fin = jax.lax.fori_loop(0, TT, step, (h_scr[...], c_scr[...]), unroll=True)
    h_scr[...] = h_fin
    c_scr[...] = c_fin


def run_bilstm(x_tbe, lengths_b1, w_lstm, b_lstm, *, time_block):
    """x_tbe: (T_pad, B, E_pad) bf16 (time-major). Returns (2, T_pad, B, H_pad) bf16."""
    T_pad, B, E_pad = x_tbe.shape
    H_pad = w_lstm.shape[-1] // 4
    n_tb = T_pad // time_block

    def x_map(d, tb):
        return ((1 - d) * tb + d * (n_tb - 1 - tb), 0, 0)

    def out_map(d, tb):
        return (d, (1 - d) * tb + d * (n_tb - 1 - tb), 0, 0)

    return pl.pallas_call(
        bilstm_kernel,
        out_shape=jax.ShapeDtypeStruct((2, T_pad, B, H_pad), jnp.bfloat16),
        grid=(2, n_tb),
        in_specs=[
            pl.BlockSpec((time_block, B, E_pad), x_map),
            pl.BlockSpec((None, E_pad + H_pad, 4 * H_pad), lambda d, tb: (d, 0, 0)),
            pl.BlockSpec((None, 1, 4 * H_pad), lambda d, tb: (d, 0, 0)),
            pl.BlockSpec((B, 1), lambda d, tb: (0, 0)),
        ],
        out_specs=pl.BlockSpec((None, time_block, B, H_pad), out_map),
        scratch_shapes=[pltpu.VMEM((B, H_pad), jnp.float32),
                        pltpu.VMEM((B, H_pad), jnp.float32)],
        compiler_params=pltpu.CompilerParams(
            dimension_semantics=("parallel", "arbitrary"),
            vmem_limit_bytes=32 * 1024 * 1024),
    )(x_tbe, w_lstm, b_lstm, lengths_b1)


# -----------------------------------------------------------------------------
# Pallas kernel 2: Linear -> ELU -> Linear head, row-tiled, w1 split per direction.
# -----------------------------------------------------------------------------
def head_kernel(xf_ref, xb_ref, w1f_ref, w1b_ref, b1_ref, w2_ref, b2_ref, o_ref):
    h = (jnp.dot(xf_ref[...], w1f_ref[...], preferred_element_type=jnp.float32)
         + jnp.dot(xb_ref[...], w1b_ref[...], preferred_element_type=jnp.float32)
         + b1_ref[...])
    # ELU (alpha = 1), overflow-safe: exp is only evaluated on non-positive values.
    h = jnp.where(h > 0, h, jnp.exp(jnp.minimum(h, 0.0)) - 1.0)
    o_ref[...] = (jnp.dot(h.astype(jnp.bfloat16), w2_ref[...],
                          preferred_element_type=jnp.float32) + b2_ref[...])


def run_head(xf, xb, w1f, w1b, b1, w2, b2, *, row_tile=512):
    N, H_pad = xf.shape
    L = w1f.shape[1]
    D_out_pad = w2.shape[1]

    tile = min(row_tile, N)
    N_pad = _round_up(N, tile)
    if N_pad != N:
        pad = ((0, N_pad - N), (0, 0))
        xf = jnp.pad(xf, pad)
        xb = jnp.pad(xb, pad)

    out = pl.pallas_call(
        head_kernel,
        out_shape=jax.ShapeDtypeStruct((N_pad, D_out_pad), jnp.float32),
        grid=(N_pad // tile,),
        in_specs=[
            pl.BlockSpec((tile, H_pad), lambda i: (i, 0)),
            pl.BlockSpec((tile, H_pad), lambda i: (i, 0)),
            pl.BlockSpec((H_pad, L), lambda i: (0, 0)),
            pl.BlockSpec((H_pad, L), lambda i: (0, 0)),
            pl.BlockSpec((1, L), lambda i: (0, 0)),
            pl.BlockSpec((L, D_out_pad), lambda i: (0, 0)),
            pl.BlockSpec((1, D_out_pad), lambda i: (0, 0)),
        ],
        out_specs=pl.BlockSpec((tile, D_out_pad), lambda i: (i, 0)),
        compiler_params=pltpu.CompilerParams(
            dimension_semantics=("parallel",),
            vmem_limit_bytes=32 * 1024 * 1024),
    )(xf, xb, w1f, w1b, b1, w2, b2)
    return out[:N]


# -----------------------------------------------------------------------------
# Full forward pass (glue in plain JAX, hot paths in Pallas).
# -----------------------------------------------------------------------------
def blstm_forward(params, text, lengths, *, D_out, time_block=8):
    """text: (B, T) int32 token ids, lengths: (B,) int32 with max(lengths) == T."""
    B, T = text.shape
    T_pad = _round_up(T, time_block)

    # Time-major embedding lookup: transpose the tiny int32 id matrix, not activations.
    ids_tm = jnp.transpose(text.astype(jnp.int32))               # (T, B)
    if T_pad != T:
        ids_tm = jnp.pad(ids_tm, ((0, T_pad - T), (0, 0)))
    emb = jnp.take(params["embed"], ids_tm, axis=0)               # (T_pad, B, E_pad) bf16

    lengths_b1 = lengths.astype(jnp.int32).reshape(B, 1)

    lstm_out = run_bilstm(emb, lengths_b1, params["w_lstm"], params["b_lstm"],
                          time_block=time_block)                  # (2, T_pad, B, H_pad) bf16

    # Dropout = identity (eval mode).
    H_pad = lstm_out.shape[-1]
    xf = lstm_out[0].reshape(T_pad * B, H_pad)                    # contiguous reshape (free)
    xb = lstm_out[1].reshape(T_pad * B, H_pad)

    logits_pad = run_head(xf, xb, params["w1f"], params["w1b"], params["b1"],
                          params["w2"], params["b2"])             # (T_pad*B, D_out_pad) f32

    logits = logits_pad.reshape(T_pad, B, -1)[:T, :, :D_out]      # strip time & lane padding
    return jnp.transpose(logits, (1, 0, 2))                       # (B, T, D_out)


# -----------------------------------------------------------------------------
# Deterministic parameter construction (padded / fused layouts).
# -----------------------------------------------------------------------------
def make_params(key, vocab_n, E, H, L, D_out):
    E_pad = _round_up(E, LANE)
    H_pad = _round_up(H, LANE)
    D_out_pad = _round_up(D_out, LANE)

    ks = jax.random.split(key, 14)

    def uniform(k, shape, bound):
        return jax.random.uniform(k, shape, jnp.float32, -bound, bound)

    def xavier(k, shape):  # (fan_out, fan_in) like torch Linear weight
        bound = float(np.sqrt(6.0 / (shape[0] + shape[1])))
        return uniform(k, shape, bound)

    std = 1.0 / float(np.sqrt(H))

    def pad_gate_cols(w_t, rows_real, rows_pad):
        # w_t: (rows_real, 4H) -> (rows_pad, 4*H_pad) with each gate's H cols in the
        # first H lanes of its 128-lane slot; padded rows/cols are zero.
        w_t = w_t.reshape(rows_real, 4, H)
        out = jnp.zeros((rows_pad, 4, H_pad), jnp.float32).at[:rows_real, :, :H].set(w_t)
        return out.reshape(rows_pad, 4 * H_pad)

    def fused_dir_weight(k_ih, k_hh):
        w_ih = uniform(k_ih, (4 * H, E), std)                     # torch (4H, E)
        w_hh = uniform(k_hh, (4 * H, H), std)                     # torch (4H, H)
        w_ih_p = pad_gate_cols(w_ih.T, E, E_pad)                  # (E_pad, 4H_pad)
        w_hh_p = pad_gate_cols(w_hh.T, H, H_pad)                  # (H_pad, 4H_pad)
        return jnp.concatenate([w_ih_p, w_hh_p], axis=0)          # (E_pad+H_pad, 4H_pad)

    def fused_dir_bias(k1, k2):
        b = (uniform(k1, (4 * H,), std) + uniform(k2, (4 * H,), std)).reshape(4, H)
        out = jnp.zeros((4, H_pad), jnp.float32).at[:, :H].set(b)
        return out.reshape(1, 4 * H_pad)

    embed = jnp.zeros((vocab_n, E_pad), jnp.float32).at[:, :E].set(
        jax.random.normal(ks[0], (vocab_n, E), jnp.float32))

    w_f = fused_dir_weight(ks[1], ks[2])
    w_b = fused_dir_weight(ks[3], ks[4])
    b_f = fused_dir_bias(ks[5], ks[6])
    b_b = fused_dir_bias(ks[7], ks[8])

    # Linear (2H -> L), xavier-uniform; split per direction, rows padded to H_pad.
    w1 = xavier(ks[9], (L, 2 * H))
    w1f = jnp.zeros((H_pad, L), jnp.float32).at[:H].set(w1[:, :H].T)
    w1b = jnp.zeros((H_pad, L), jnp.float32).at[:H].set(w1[:, H:].T)
    b1 = uniform(ks[10], (L,), 1.0 / float(np.sqrt(2 * H))).reshape(1, L)

    # Classifier (L -> D_out), xavier-uniform; output lanes padded to 128.
    w2 = xavier(ks[11], (D_out, L))
    w2p = jnp.zeros((L, D_out_pad), jnp.float32).at[:, :D_out].set(w2.T)
    b2 = jnp.zeros((1, D_out_pad), jnp.float32).at[0, :D_out].set(
        uniform(ks[12], (D_out,), 1.0 / float(np.sqrt(L))))

    return {
        "embed": embed.astype(jnp.bfloat16),                      # (vocab, E_pad) bf16
        "w_lstm": jnp.stack([w_f, w_b]).astype(jnp.bfloat16),     # (2, E_pad+H_pad, 4H_pad)
        "b_lstm": jnp.stack([b_f, b_b]),                          # (2, 1, 4H_pad) f32
        "w1f": w1f.astype(jnp.bfloat16),
        "w1b": w1b.astype(jnp.bfloat16),
        "b1": b1,
        "w2": w2p.astype(jnp.bfloat16),
        "b2": b2,
    }


if __name__ == "__main__":
    vocab_n, E, H, L, D_out = 50, 32, 32, 64, 16
    B, T = 2, 8

    key = jax.random.PRNGKey(0)
    pkey, tkey = jax.random.split(key)
    params = make_params(pkey, vocab_n, E, H, L, D_out)

    text = jax.random.randint(tkey, (B, T), 0, vocab_n, dtype=jnp.int32)
    lengths = jnp.array([T, 5], dtype=jnp.int32)  # max(lengths) == T (pad_packed output length)

    fwd = jax.jit(functools.partial(blstm_forward, D_out=D_out, time_block=8))
    out = fwd(params, text, lengths)
    out = jax.block_until_ready(out)
    assert out.shape == (B, T, D_out), out.shape
    assert bool(jnp.all(jnp.isfinite(out)))
    print("KERNEL_OK")
</pallas_src>

<mosaic_0001>
module attributes {stable_mosaic.version = 11 : i64} {
  func.func @head_kernel(%arg0: i32, %arg1: memref<16x128xbf16, #tpu.memory_space<vmem>>, %arg2: memref<16x128xbf16, #tpu.memory_space<vmem>>, %arg3: memref<128x64xbf16, #tpu.memory_space<vmem>>, %arg4: memref<128x64xbf16, #tpu.memory_space<vmem>>, %arg5: memref<1x64xf32, #tpu.memory_space<vmem>>, %arg6: memref<64x128xbf16, #tpu.memory_space<vmem>>, %arg7: memref<1x128xf32, #tpu.memory_space<vmem>>, %arg8: memref<16x128xf32, #tpu.memory_space<vmem>>) attributes {dimension_semantics = [#tpu.dimension_semantics<parallel>], iteration_bounds = array<i64: 1>, scalar_prefetch = 0 : i64, scratch_operands = 0 : i64, tpu.core_type = #tpu.core_type<tc>, window_params = [{transform_indices = @transform_0, window_bounds = array<i64: 16, 128>}, {transform_indices = @transform_1, window_bounds = array<i64: 16, 128>}, {pipeline_mode = #tpu.pipeline_mode<synchronous>, transform_indices = @transform_2, window_bounds = array<i64: 128, 64>}, {pipeline_mode = #tpu.pipeline_mode<synchronous>, transform_indices = @transform_3, window_bounds = array<i64: 128, 64>}, {pipeline_mode = #tpu.pipeline_mode<synchronous>, transform_indices = @transform_4, window_bounds = array<i64: 1, 64>}, {pipeline_mode = #tpu.pipeline_mode<synchronous>, transform_indices = @transform_5, window_bounds = array<i64: 64, 128>}, {pipeline_mode = #tpu.pipeline_mode<synchronous>, transform_indices = @transform_6, window_bounds = array<i64: 1, 128>}, {transform_indices = @transform_7, window_bounds = array<i64: 16, 128>}]} {
    %c0 = arith.constant 0 : index
    %c0_0 = arith.constant 0 : index
    %0 = vector.load %arg1[%c0, %c0_0] : memref<16x128xbf16, #tpu.memory_space<vmem>>, vector<16x128xbf16>
    %c0_1 = arith.constant 0 : index
    %c0_2 = arith.constant 0 : index
    %1 = vector.load %arg3[%c0_1, %c0_2] : memref<128x64xbf16, #tpu.memory_space<vmem>>, vector<128x64xbf16>
    %cst = arith.constant dense<0.000000e+00> : vector<16x64xf32>
    %2 = tpu.matmul %0, %1, %cst {dimension_numbers = #tpu.dot_dimension_numbers<[1], [0], [0], [1], [0, 0, 1, 1], [], []>} : vector<16x128xbf16>, vector<128x64xbf16>, vector<16x64xf32> -> vector<16x64xf32>
    %c0_3 = arith.constant 0 : index
    %c0_4 = arith.constant 0 : index
    %3 = vector.load %arg2[%c0_3, %c0_4] : memref<16x128xbf16, #tpu.memory_space<vmem>>, vector<16x128xbf16>
    %c0_5 = arith.constant 0 : index
    %c0_6 = arith.constant 0 : index
    %4 = vector.load %arg4[%c0_5, %c0_6] : memref<128x64xbf16, #tpu.memory_space<vmem>>, vector<128x64xbf16>
    %cst_7 = arith.constant dense<0.000000e+00> : vector<16x64xf32>
    %5 = tpu.matmul %3, %4, %cst_7 {dimension_numbers = #tpu.dot_dimension_numbers<[1], [0], [0], [1], [0, 0, 1, 1], [], []>} : vector<16x128xbf16>, vector<128x64xbf16>, vector<16x64xf32> -> vector<16x64xf32>
    %6 = arith.addf %2, %5 : vector<16x64xf32>
    %c0_8 = arith.constant 0 : index
    %c0_9 = arith.constant 0 : index
    %7 = vector.load %arg5[%c0_8, %c0_9] : memref<1x64xf32, #tpu.memory_space<vmem>>, vector<1x64xf32>
    %8 = vector.broadcast %7 : vector<1x64xf32> to vector<16x64xf32>
    %9 = arith.addf %6, %8 : vector<16x64xf32>
    %cst_10 = arith.constant 0.000000e+00 : f32
    %10 = vector.broadcast %cst_10 : f32 to vector<16x64xf32>
    %11 = arith.cmpf ogt, %9, %10 : vector<16x64xf32>
    %cst_11 = arith.constant 0.000000e+00 : f32
    %12 = vector.broadcast %cst_11 : f32 to vector<16x64xf32>
    %13 = arith.minimumf %9, %12 : vector<16x64xf32>
    %14 = math.exp %13 : vector<16x64xf32>
    %cst_12 = arith.constant 1.000000e+00 : f32
    %15 = vector.broadcast %cst_12 : f32 to vector<16x64xf32>
    %16 = arith.subf %14, %15 : vector<16x64xf32>
    %17 = arith.select %11, %9, %16 : vector<16x64xi1>, vector<16x64xf32>
    %18 = arith.truncf %17 : vector<16x64xf32> to vector<16x64xbf16>
    %c0_13 = arith.constant 0 : index
    %c0_14 = arith.constant 0 : index
    %19 = vector.load %arg6[%c0_13, %c0_14] : memref<64x128xbf16, #tpu.memory_space<vmem>>, vector<64x128xbf16>
    %cst_15 = arith.constant dense<0.000000e+00> : vector<16x128xf32>
    %20 = tpu.matmul %18, %19, %cst_15 {dimension_numbers = #tpu.dot_dimension_numbers<[1], [0], [0], [1], [0, 0, 1, 1], [], []>} : vector<16x64xbf16>, vector<64x128xbf16>, vector<16x128xf32> -> vector<16x128xf32>
    %c0_16 = arith.constant 0 : index
    %c0_17 = arith.constant 0 : index
    %21 = vector.load %arg7[%c0_16, %c0_17] : memref<1x128xf32, #tpu.memory_space<vmem>>, vector<1x128xf32>
    %22 = vector.broadcast %21 : vector<1x128xf32> to vector<16x128xf32>
    %23 = arith.addf %20, %22 : vector<16x128xf32>
    %c0_18 = arith.constant 0 : index
    %c0_19 = arith.constant 0 : index
    %24 = vector.load %arg8[%c0_18, %c0_19] : memref<16x128xf32, #tpu.memory_space<vmem>>, vector<16x128xf32>
    tpu.vector_store %arg8[%c0_18, %c0_19], %23 {strides = array<i32>} : memref<16x128xf32, #tpu.memory_space<vmem>>, vector<16x128xf32>,
    return
  }
  func.func @transform_0(%arg0: i32) -> (i32, i32) {
    %c0_i32 = arith.constant 0 : i32
    %c0_i32_0 = arith.constant 0 : i32
    return %arg0, %c0_i32 : i32, i32
  }
  func.func @transform_1(%arg0: i32) -> (i32, i32) {
    %c0_i32 = arith.constant 0 : i32
    %c0_i32_0 = arith.constant 0 : i32
    return %arg0, %c0_i32 : i32, i32
  }
  func.func @transform_2(%arg0: i32) -> (i32, i32) {
    %c0_i32 = arith.constant 0 : i32
    %c0_i32_0 = arith.constant 0 : i32
    %c0_i32_1 = arith.constant 0 : i32
    return %c0_i32, %c0_i32_0 : i32, i32
  }
  func.func @transform_3(%arg0: i32) -> (i32, i32) {
    %c0_i32 = arith.constant 0 : i32
    %c0_i32_0 = arith.constant 0 : i32
    %c0_i32_1 = arith.constant 0 : i32
    return %c0_i32, %c0_i32_0 : i32, i32
  }
  func.func @transform_4(%arg0: i32) -> (i32, i32) {
    %c0_i32 = arith.constant 0 : i32
    %c0_i32_0 = arith.constant 0 : i32
    %c0_i32_1 = arith.constant 0 : i32
    return %c0_i32, %c0_i32_0 : i32, i32
  }
  func.func @transform_5(%arg0: i32) -> (i32, i32) {
    %c0_i32 = arith.constant 0 : i32
    %c0_i32_0 = arith.constant 0 : i32
    %c0_i32_1 = arith.constant 0 : i32
    return %c0_i32, %c0_i32_0 : i32, i32
  }
  func.func @transform_6(%arg0: i32) -> (i32, i32) {
    %c0_i32 = arith.constant 0 : i32
    %c0_i32_0 = arith.constant 0 : i32
    %c0_i32_1 = arith.constant 0 : i32
    return %c0_i32, %c0_i32_0 : i32, i32
  }
  func.func @transform_7(%arg0: i32) -> (i32, i32) {
    %c0_i32 = arith.constant 0 : i32
    %c0_i32_0 = arith.constant 0 : i32
    return %arg0, %c0_i32 : i32, i32
  }
}

module attributes {stable_mosaic.version = 11 : i64} {
  func.func @bilstm_kernel(%arg0: i32, %arg1: i32, %arg2: memref<8x2x128xbf16, #tpu.memory_space<vmem>>, %arg3: memref<1x256x512xbf16, #tpu.memory_space<vmem>>, %arg4: memref<1x1x512xf32, #tpu.memory_space<vmem>>, %arg5: memref<2x1xi32, #tpu.memory_space<vmem>>, %arg6: memref<1x8x2x128xbf16, #tpu.memory_space<vmem>>, %arg7: memref<2x128xf32, #tpu.memory_space<vmem>>, %arg8: memref<2x128xf32, #tpu.memory_space<vmem>>) attributes {dimension_semantics = [#tpu.dimension_semantics<parallel>, #tpu.dimension_semantics<arbitrary>], iteration_bounds = array<i64: 2, 1>, scalar_prefetch = 0 : i64, scratch_operands = 2 : i64, tpu.core_type = #tpu.core_type<tc>, window_params = [{transform_indices = @transform_0, window_bounds = array<i64: 8, 2, 128>}, {transform_indices = @transform_1, window_bounds = array<i64: 1, 256, 512>}, {transform_indices = @transform_2, window_bounds = array<i64: 1, 1, 512>}, {pipeline_mode = #tpu.pipeline_mode<synchronous>, transform_indices = @transform_3, window_bounds = array<i64: 2, 1>}, {transform_indices = @transform_4, window_bounds = array<i64: 1, 8, 2, 128>}]} {
    %c0_i32 = arith.constant 0 : i32
    %0 = arith.cmpi eq, %arg1, %c0_i32 : i32
    %1 = arith.extui %0 : i1 to i32
    %c0_i32_0 = arith.constant 0 : i32
    %2 = arith.cmpi ne, %1, %c0_i32_0 : i32
    scf.if %2 {
      %cst_115 = arith.constant 0.000000e+00 : f32
      %466 = vector.broadcast %cst_115 : f32 to vector<2x128xf32>
      %c0_116 = arith.constant 0 : index
      %c0_117 = arith.constant 0 : index
      %467 = vector.load %arg7[%c0_116, %c0_117] : memref<2x128xf32, #tpu.memory_space<vmem>>, vector<2x128xf32>
      tpu.vector_store %arg7[%c0_116, %c0_117], %466 {strides = array<i32>} : memref<2x128xf32, #tpu.memory_space<vmem>>, vector<2x128xf32>,
      %cst_118 = arith.constant 0.000000e+00 : f32
      %468 = vector.broadcast %cst_118 : f32 to vector<2x128xf32>
      %c0_119 = arith.constant 0 : index
      %c0_120 = arith.constant 0 : index
      %469 = vector.load %arg8[%c0_119, %c0_120] : memref<2x128xf32, #tpu.memory_space<vmem>>, vector<2x128xf32>
      tpu.vector_store %arg8[%c0_119, %c0_120], %468 {strides = array<i32>} : memref<2x128xf32, #tpu.memory_space<vmem>>, vector<2x128xf32>,
    } else {
    }
    %c0 = arith.constant 0 : index
    %c0_1 = arith.constant 0 : index
    %c0_2 = arith.constant 0 : index
    %3 = vector.load %arg3[%c0, %c0_1, %c0_2] : memref<1x256x512xbf16, #tpu.memory_space<vmem>>, vector<1x256x512xbf16>
    %4 = vector.shape_cast %3 : vector<1x256x512xbf16> to vector<256x512xbf16>
    %c0_3 = arith.constant 0 : index
    %c0_4 = arith.constant 0 : index
    %c0_5 = arith.constant 0 : index
    %5 = vector.load %arg4[%c0_3, %c0_4, %c0_5] : memref<1x1x512xf32, #tpu.memory_space<vmem>>, vector<1x1x512xf32>
    %6 = vector.shape_cast %5 : vector<1x1x512xf32> to vector<1x512xf32>
    %c0_6 = arith.constant 0 : index
    %c0_7 = arith.constant 0 : index
    %7 = vector.load %arg5[%c0_6, %c0_7] : memref<2x1xi32, #tpu.memory_space<vmem>>, vector<2x1xi32>
    %c1_i32 = arith.constant 1 : i32
    %8 = arith.subi %c1_i32, %arg0 : i32
    %9 = arith.muli %8, %arg1 : i32
    %c0_i32_8 = arith.constant 0 : i32
    %10 = arith.subi %c0_i32_8, %arg1 : i32
    %11 = arith.muli %arg0, %10 : i32
    %12 = arith.addi %9, %11 : i32
    %c8_i32 = arith.constant 8 : i32
    %13 = arith.muli %12, %c8_i32 : i32
    %c0_9 = arith.constant 0 : index
    %c0_10 = arith.constant 0 : index
    %14 = vector.load %arg7[%c0_9, %c0_10] : memref<2x128xf32, #tpu.memory_space<vmem>>, vector<2x128xf32>
    %c0_11 = arith.constant 0 : index
    %c0_12 = arith.constant 0 : index
    %15 = vector.load %arg8[%c0_11, %c0_12] : memref<2x128xf32, #tpu.memory_space<vmem>>, vector<2x128xf32>
    %c0_i32_13 = arith.constant 0 : i32
    %c1_i32_14 = arith.constant 1 : i32
    %16 = arith.subi %c1_i32_14, %arg0 : i32
    %17 = arith.muli %16, %c0_i32_13 : i32
    %c7_i32 = arith.constant 7 : i32
    %18 = arith.subi %c7_i32, %c0_i32_13 : i32
    %19 = arith.muli %arg0, %18 : i32
    %20 = arith.addi %17, %19 : i32
    %21 = arith.index_cast %20 : i32 to index
    %c0_15 = arith.constant 0 : index
    %c0_16 = arith.constant 0 : index
    %22 = vector.load %arg2[%21, %c0_15, %c0_16] : memref<8x2x128xbf16, #tpu.memory_space<vmem>>, vector<1x2x128xbf16>
    %23 = vector.shape_cast %22 : vector<1x2x128xbf16> to vector<2x128xbf16>
    %24 = arith.truncf %14 : vector<2x128xf32> to vector<2x128xbf16>
    %25 = tpu.concatenate %23, %24 in 1 : vector<2x128xbf16>, vector<2x128xbf16> -> vector<2x256xbf16>
    %cst = arith.constant dense<0.000000e+00> : vector<2x512xf32>
    %26 = tpu.matmul %25, %4, %cst {dimension_numbers = #tpu.dot_dimension_numbers<[1], [0], [0], [1], [0, 0, 1, 1], [], []>} : vector<2x256xbf16>, vector<256x512xbf16>, vector<2x512xf32> -> vector<2x512xf32>
    %27 = vector.broadcast %6 : vector<1x512xf32> to vector<2x512xf32>
    %28 = arith.addf %26, %27 : vector<2x512xf32>
    %29 = vector.extract_strided_slice %28 {offsets = [0, 0], sizes = [2, 128], strides = [1, 1]} : vector<2x512xf32> to vector<2x128xf32>
    %30 = arith.negf %29 : vector<2x128xf32>
    %31 = math.exp %30 : vector<2x128xf32>
    %cst_17 = arith.constant 1.000000e+00 : f32
    %32 = vector.broadcast %cst_17 : f32 to vector<2x128xf32>
    %33 = arith.addf %32, %31 : vector<2x128xf32>
    %34 = arith.divf %32, %33 : vector<2x128xf32>
    %35 = vector.extract_strided_slice %28 {offsets = [0, 128], sizes = [2, 128], strides = [1, 1]} : vector<2x512xf32> to vector<2x128xf32>
    %36 = arith.negf %35 : vector<2x128xf32>
    %37 = math.exp %36 : vector<2x128xf32>
    %cst_18 = arith.constant 1.000000e+00 : f32
    %38 = vector.broadcast %cst_18 : f32 to vector<2x128xf32>
    %39 = arith.addf %38, %37 : vector<2x128xf32>
    %40 = arith.divf %38, %39 : vector<2x128xf32>
    %41 = vector.extract_strided_slice %28 {offsets = [0, 256], sizes = [2, 128], strides = [1, 1]} : vector<2x512xf32> to vector<2x128xf32>
    %42 = math.tanh %41 : vector<2x128xf32>
    %43 = vector.extract_strided_slice %28 {offsets = [0, 384], sizes = [2, 128], strides = [1, 1]} : vector<2x512xf32> to vector<2x128xf32>
    %44 = arith.negf %43 : vector<2x128xf32>
    %45 = math.exp %44 : vector<2x128xf32>
    %cst_19 = arith.constant 1.000000e+00 : f32
    %46 = vector.broadcast %cst_19 : f32 to vector<2x128xf32>
    %47 = arith.addf %46, %45 : vector<2x128xf32>
    %48 = arith.divf %46, %47 : vector<2x128xf32>
    %49 = arith.mulf %40, %15 : vector<2x128xf32>
    %50 = arith.mulf %34, %42 : vector<2x128xf32>
    %51 = arith.addf %49, %50 : vector<2x128xf32>
    %52 = math.tanh %51 : vector<2x128xf32>
    %53 = arith.mulf %48, %52 : vector<2x128xf32>
    %54 = arith.addi %13, %20 : i32
    %55 = vector.broadcast %54 : i32 to vector<2x1xi32>
    %56 = arith.cmpi sgt, %7, %55 : vector<2x1xi32>
    %57 = vector.shape_cast %56 : vector<2x1xi1> to vector<2x1xi1>
    %58 = vector.broadcast %57 : vector<2x1xi1> to vector<2x128xi1>
    %59 = arith.select %58, %53, %14 : vector<2x128xi1>, vector<2x128xf32>
    %60 = vector.shape_cast %56 : vector<2x1xi1> to vector<2x1xi1>
    %61 = vector.broadcast %60 : vector<2x1xi1> to vector<2x128xi1>
    %62 = arith.select %61, %51, %15 : vector<2x128xi1>, vector<2x128xf32>
    %cst_20 = arith.constant 0.000000e+00 : f32
    %63 = vector.shape_cast %56 : vector<2x1xi1> to vector<2x1xi1>
    %64 = vector.broadcast %63 : vector<2x1xi1> to vector<2x128xi1>
    %65 = vector.broadcast %cst_20 : f32 to vector<2x128xf32>
    %66 = arith.select %64, %53, %65 : vector<2x128xi1>, vector<2x128xf32>
    %67 = arith.truncf %66 : vector<2x128xf32> to vector<2x128xbf16>
    %c0_21 = arith.constant 0 : index
    %68 = arith.index_cast %20 : i32 to index
    %c0_22 = arith.constant 0 : index
    %c0_23 = arith.constant 0 : index
    %69 = vector.load %arg6[%c0_21, %68, %c0_22, %c0_23] : memref<1x8x2x128xbf16, #tpu.memory_space<vmem>>, vector<1x1x2x128xbf16>
    %70 = vector.shape_cast %69 : vector<1x1x2x128xbf16> to vector<2x128xbf16>
    %71 = vector.shape_cast %67 : vector<2x128xbf16> to vector<1x1x2x128xbf16>
    tpu.vector_store %arg6[%c0_21, %68, %c0_22, %c0_23], %71 {strides = array<i32>} : memref<1x8x2x128xbf16, #tpu.memory_space<vmem>>, vector<1x1x2x128xbf16>,
    %c1_i32_24 = arith.constant 1 : i32
    %c1_i32_25 = arith.constant 1 : i32
    %72 = arith.subi %c1_i32_25, %arg0 : i32
    %73 = arith.muli %72, %c1_i32_24 : i32
    %c7_i32_26 = arith.constant 7 : i32
    %74 = arith.subi %c7_i32_26, %c1_i32_24 : i32
    %75 = arith.muli %arg0, %74 : i32
    %76 = arith.addi %73, %75 : i32
    %77 = arith.index_cast %76 : i32 to index
    %c0_27 = arith.constant 0 : index
    %c0_28 = arith.constant 0 : index
    %78 = vector.load %arg2[%77, %c0_27, %c0_28] : memref<8x2x128xbf16, #tpu.memory_space<vmem>>, vector<1x2x128xbf16>
    %79 = vector.shape_cast %78 : vector<1x2x128xbf16> to vector<2x128xbf16>
    %80 = arith.truncf %59 : vector<2x128xf32> to vector<2x128xbf16>
    %81 = tpu.concatenate %79, %80 in 1 : vector<2x128xbf16>, vector<2x128xbf16> -> vector<2x256xbf16>
    %cst_29 = arith.constant dense<0.000000e+00> : vector<2x512xf32>
    %82 = tpu.matmul %81, %4, %cst_29 {dimension_numbers = #tpu.dot_dimension_numbers<[1], [0], [0], [1], [0, 0, 1, 1], [], []>} : vector<2x256xbf16>, vector<256x512xbf16>, vector<2x512xf32> -> vector<2x512xf32>
    %83 = vector.broadcast %6 : vector<1x512xf32> to vector<2x512xf32>
    %84 = arith.addf %82, %83 : vector<2x512xf32>
    %85 = vector.extract_strided_slice %84 {offsets = [0, 0], sizes = [2, 128], strides = [1, 1]} : vector<2x512xf32> to vector<2x128xf32>
    %86 = arith.negf %85 : vector<2x128xf32>
    %87 = math.exp %86 : vector<2x128xf32>
    %cst_30 = arith.constant 1.000000e+00 : f32
    %88 = vector.broadcast %cst_30 : f32 to vector<2x128xf32>
    %89 = arith.addf %88, %87 : vector<2x128xf32>
    %90 = arith.divf %88, %89 : vector<2x128xf32>
    %91 = vector.extract_strided_slice %84 {offsets = [0, 128], sizes = [2, 128], strides = [1, 1]} : vector<2x512xf32> to vector<2x128xf32>
    %92 = arith.negf %91 : vector<2x128xf32>
    %93 = math.exp %92 : vector<2x128xf32>
    %cst_31 = arith.constant 1.000000e+00 : f32
    %94 = vector.broadcast %cst_31 : f32 to vector<2x128xf32>
    %95 = arith.addf %94, %93 : vector<2x128xf32>
    %96 = arith.divf %94, %95 : vector<2x128xf32>
    %97 = vector.extract_strided_slice %84 {offsets = [0, 256], sizes = [2, 128], strides = [1, 1]} : vector<2x512xf32> to vector<2x128xf32>
    %98 = math.tanh %97 : vector<2x128xf32>
    %99 = vector.extract_strided_slice %84 {offsets = [0, 384], sizes = [2, 128], strides = [1, 1]} : vector<2x512xf32> to vector<2x128xf32>
    %100 = arith.negf %99 : vector<2x128xf32>
    %101 = math.exp %100 : vector<2x128xf32>
    %cst_32 = arith.constant 1.000000e+00 : f32
    %102 = vector.broadcast %cst_32 : f32 to vector<2x128xf32>
    %103 = arith.addf %102, %101 : vector<2x128xf32>
    %104 = arith.divf %102, %103 : vector<2x128xf32>
    %105 = arith.mulf %96, %62 : vector<2x128xf32>
    %106 = arith.mulf %90, %98 : vector<2x128xf32>
    %107 = arith.addf %105, %106 : vector<2x128xf32>
    %108 = math.tanh %107 : vector<2x128xf32>
    %109 = arith.mulf %104, %108 : vector<2x128xf32>
    %110 = arith.addi %13, %76 : i32
    %111 = vector.broadcast %110 : i32 to vector<2x1xi32>
    %112 = arith.cmpi sgt, %7, %111 : vector<2x1xi32>
    %113 = vector.shape_cast %112 : vector<2x1xi1> to vector<2x1xi1>
    %114 = vector.broadcast %113 : vector<2x1xi1> to vector<2x128xi1>
    %115 = arith.select %114, %109, %59 : vector<2x128xi1>, vector<2x128xf32>
    %116 = vector.shape_cast %112 : vector<2x1xi1> to vector<2x1xi1>
    %117 = vector.broadcast %116 : vector<2x1xi1> to vector<2x128xi1>
    %118 = arith.select %117, %107, %62 : vector<2x128xi1>, vector<2x128xf32>
    %cst_33 = arith.constant 0.000000e+00 : f32
    %119 = vector.shape_cast %112 : vector<2x1xi1> to vector<2x1xi1>
    %120 = vector.broadcast %119 : vector<2x1xi1> to vector<2x128xi1>
    %121 = vector.broadcast %cst_33 : f32 to vector<2x128xf32>
    %122 = arith.select %120, %109, %121 : vector<2x128xi1>, vector<2x128xf32>
    %123 = arith.truncf %122 : vector<2x128xf32> to vector<2x128xbf16>
    %c0_34 = arith.constant 0 : index
    %124 = arith.index_cast %76 : i32 to index
    %c0_35 = arith.constant 0 : index
    %c0_36 = arith.constant 0 : index
    %125 = vector.load %arg6[%c0_34, %124, %c0_35, %c0_36] : memref<1x8x2x128xbf16, #tpu.memory_space<vmem>>, vector<1x1x2x128xbf16>
    %126 = vector.shape_cast %125 : vector<1x1x2x128xbf16> to vector<2x128xbf16>
    %127 = vector.shape_cast %123 : vector<2x128xbf16> to vector<1x1x2x128xbf16>
    tpu.vector_store %arg6[%c0_34, %124, %c0_35, %c0_36], %127 {strides = array<i32>} : memref<1x8x2x128xbf16, #tpu.memory_space<vmem>>, vector<1x1x2x128xbf16>,
    %c2_i32 = arith.constant 2 : i32
    %c1_i32_37 = arith.constant 1 : i32
    %128 = arith.subi %c1_i32_37, %arg0 : i32
    %129 = arith.muli %128, %c2_i32 : i32
    %c7_i32_38 = arith.constant 7 : i32
    %130 = arith.subi %c7_i32_38, %c2_i32 : i32
    %131 = arith.muli %arg0, %130 : i32
    %132 = arith.addi %129, %131 : i32
    %133 = arith.index_cast %132 : i32 to index
    %c0_39 = arith.constant 0 : index
    %c0_40 = arith.constant 0 : index
    %134 = vector.load %arg2[%133, %c0_39, %c0_40] : memref<8x2x128xbf16, #tpu.memory_space<vmem>>, vector<1x2x128xbf16>
    %135 = vector.shape_cast %134 : vector<1x2x128xbf16> to vector<2x128xbf16>
    %136 = arith.truncf %115 : vector<2x128xf32> to vector<2x128xbf16>
    %137 = tpu.concatenate %135, %136 in 1 : vector<2x128xbf16>, vector<2x128xbf16> -> vector<2x256xbf16>
    %cst_41 = arith.constant dense<0.000000e+00> : vector<2x512xf32>
    %138 = tpu.matmul %137, %4, %cst_41 {dimension_numbers = #tpu.dot_dimension_numbers<[1], [0], [0], [1], [0, 0, 1, 1], [], []>} : vector<2x256xbf16>, vector<256x512xbf16>, vector<2x512xf32> -> vector<2x512xf32>
    %139 = vector.broadcast %6 : vector<1x512xf32> to vector<2x512xf32>
    %140 = arith.addf %138, %139 : vector<2x512xf32>
    %141 = vector.extract_strided_slice %140 {offsets = [0, 0], sizes = [2, 128], strides = [1, 1]} : vector<2x512xf32> to vector<2x128xf32>
    %142 = arith.negf %141 : vector<2x128xf32>
    %143 = math.exp %142 : vector<2x128xf32>
    %cst_42 = arith.constant 1.000000e+00 : f32
    %144 = vector.broadcast %cst_42 : f32 to vector<2x128xf32>
    %145 = arith.addf %144, %143 : vector<2x128xf32>
    %146 = arith.divf %144, %145 : vector<2x128xf32>
    %147 = vector.extract_strided_slice %140 {offsets = [0, 128], sizes = [2, 128], strides = [1, 1]} : vector<2x512xf32> to vector<2x128xf32>
    %148 = arith.negf %147 : vector<2x128xf32>
    %149 = math.exp %148 : vector<2x128xf32>
    %cst_43 = arith.constant 1.000000e+00 : f32
    %150 = vector.broadcast %cst_43 : f32 to vector<2x128xf32>
    %151 = arith.addf %150, %149 : vector<2x128xf32>
    %152 = arith.divf %150, %151 : vector<2x128xf32>
    %153 = vector.extract_strided_slice %140 {offsets = [0, 256], sizes = [2, 128], strides = [1, 1]} : vector<2x512xf32> to vector<2x128xf32>
    %154 = math.tanh %153 : vector<2x128xf32>
    %155 = vector.extract_strided_slice %140 {offsets = [0, 384], sizes = [2, 128], strides = [1, 1]} : vector<2x512xf32> to vector<2x128xf32>
    %156 = arith.negf %155 : vector<2x128xf32>
    %157 = math.exp %156 : vector<2x128xf32>
    %cst_44 = arith.constant 1.000000e+00 : f32
    %158 = vector.broadcast %cst_44 : f32 to vector<2x128xf32>
    %159 = arith.addf %158, %157 : vector<2x128xf32>
    %160 = arith.divf %158, %159 : vector<2x128xf32>
    %161 = arith.mulf %152, %118 : vector<2x128xf32>
    %162 = arith.mulf %146, %154 : vector<2x128xf32>
    %163 = arith.addf %161, %162 : vector<2x128xf32>
    %164 = math.tanh %163 : vector<2x128xf32>
    %165 = arith.mulf %160, %164 : vector<2x128xf32>
    %166 = arith.addi %13, %132 : i32
    %167 = vector.broadcast %166 : i32 to vector<2x1xi32>
    %168 = arith.cmpi sgt, %7, %167 : vector<2x1xi32>
    %169 = vector.shape_cast %168 : vector<2x1xi1> to vector<2x1xi1>
    %170 = vector.broadcast %169 : vector<2x1xi1> to vector<2x128xi1>
    %171 = arith.select %170, %165, %115 : vector<2x128xi1>, vector<2x128xf32>
    %172 = vector.shape_cast %168 : vector<2x1xi1> to vector<2x1xi1>
    %173 = vector.broadcast %172 : vector<2x1xi1> to vector<2x128xi1>
    %174 = arith.select %173, %163, %118 : vector<2x128xi1>, vector<2x128xf32>
    %cst_45 = arith.constant 0.000000e+00 : f32
    %175 = vector.shape_cast %168 : vector<2x1xi1> to vector<2x1xi1>
    %176 = vector.broadcast %175 : vector<2x1xi1> to vector<2x128xi1>
    %177 = vector.broadcast %cst_45 : f32 to vector<2x128xf32>
    %178 = arith.select %176, %165, %177 : vector<2x128xi1>, vector<2x128xf32>
    %179 = arith.truncf %178 : vector<2x128xf32> to vector<2x128xbf16>
    %c0_46 = arith.constant 0 : index
    %180 = arith.index_cast %132 : i32 to index
    %c0_47 = arith.constant 0 : index
    %c0_48 = arith.constant 0 : index
    %181 = vector.load %arg6[%c0_46, %180, %c0_47, %c0_48] : memref<1x8x2x128xbf16, #tpu.memory_space<vmem>>, vector<1x1x2x128xbf16>
    %182 = vector.shape_cast %181 : vector<1x1x2x128xbf16> to vector<2x128xbf16>
    %183 = vector.shape_cast %179 : vector<2x128xbf16> to vector<1x1x2x128xbf16>
    tpu.vector_store %arg6[%c0_46, %180, %c0_47, %c0_48], %183 {strides = array<i32>} : memref<1x8x2x128xbf16, #tpu.memory_space<vmem>>, vector<1x1x2x128xbf16>,
    %c3_i32 = arith.constant 3 : i32
    %c1_i32_49 = arith.constant 1 : i32
    %184 = arith.subi %c1_i32_49, %arg0 : i32
    %185 = arith.muli %184, %c3_i32 : i32
    %c7_i32_50 = arith.constant 7 : i32
    %186 = arith.subi %c7_i32_50, %c3_i32 : i32
    %187 = arith.muli %arg0, %186 : i32
    %188 = arith.addi %185, %187 : i32
    %189 = arith.index_cast %188 : i32 to index
    %c0_51 = arith.constant 0 : index
    %c0_52 = arith.constant 0 : index
    %190 = vector.load %arg2[%189, %c0_51, %c0_52] : memref<8x2x128xbf16, #tpu.memory_space<vmem>>, vector<1x2x128xbf16>
    %191 = vector.shape_cast %190 : vector<1x2x128xbf16> to vector<2x128xbf16>
    %192 = arith.truncf %171 : vector<2x128xf32> to vector<2x128xbf16>
    %193 = tpu.concatenate %191, %192 in 1 : vector<2x128xbf16>, vector<2x128xbf16> -> vector<2x256xbf16>
    %cst_53 = arith.constant dense<0.000000e+00> : vector<2x512xf32>
    %194 = tpu.matmul %193, %4, %cst_53 {dimension_numbers = #tpu.dot_dimension_numbers<[1], [0], [0], [1], [0, 0, 1, 1], [], []>} : vector<2x256xbf16>, vector<256x512xbf16>, vector<2x512xf32> -> vector<2x512xf32>
    %195 = vector.broadcast %6 : vector<1x512xf32> to vector<2x512xf32>
    %196 = arith.addf %194, %195 : vector<2x512xf32>
    %197 = vector.extract_strided_slice %196 {offsets = [0, 0], sizes = [2, 128], strides = [1, 1]} : vector<2x512xf32> to vector<2x128xf32>
    %198 = arith.negf %197 : vector<2x128xf32>
    %199 = math.exp %198 : vector<2x128xf32>
    %cst_54 = arith.constant 1.000000e+00 : f32
    %200 = vector.broadcast %cst_54 : f32 to vector<2x128xf32>
    %201 = arith.addf %200, %199 : vector<2x128xf32>
    %202 = arith.divf %200, %201 : vector<2x128xf32>
    %203 = vector.extract_strided_slice %196 {offsets = [0, 128], sizes = [2, 128], strides = [1, 1]} : vector<2x512xf32> to vector<2x128xf32>
    %204 = arith.negf %203 : vector<2x128xf32>
    %205 = math.exp %204 : vector<2x128xf32>
    %cst_55 = arith.constant 1.000000e+00 : f32
    %206 = vector.broadcast %cst_55 : f32 to vector<2x128xf32>
    %207 = arith.addf %206, %205 : vector<2x128xf32>
    %208 = arith.divf %206, %207 : vector<2x128xf32>
    %209 = vector.extract_strided_slice %196 {offsets = [0, 256], sizes = [2, 128], strides = [1, 1]} : vector<2x512xf32> to vector<2x128xf32>
    %210 = math.tanh %209 : vector<2x128xf32>
    %211 = vector.extract_strided_slice %196 {offsets = [0, 384], sizes = [2, 128], strides = [1, 1]} : vector<2x512xf32> to vector<2x128xf32>
    %212 = arith.negf %211 : vector<2x128xf32>
    %213 = math.exp %212 : vector<2x128xf32>
    %cst_56 = arith.constant 1.000000e+00 : f32
    %214 = vector.broadcast %cst_56 : f32 to vector<2x128xf32>
    %215 = arith.addf %214, %213 : vector<2x128xf32>
    %216 = arith.divf %214, %215 : vector<2x128xf32>
    %217 = arith.mulf %208, %174 : vector<2x128xf32>
    %218 = arith.mulf %202, %210 : vector<2x128xf32>
    %219 = arith.addf %217, %218 : vector<2x128xf32>
    %220 = math.tanh %219 : vector<2x128xf32>
    %221 = arith.mulf %216, %220 : vector<2x128xf32>
    %222 = arith.addi %13, %188 : i32
    %223 = vector.broadcast %222 : i32 to vector<2x1xi32>
    %224 = arith.cmpi sgt, %7, %223 : vector<2x1xi32>
    %225 = vector.shape_cast %224 : vector<2x1xi1> to vector<2x1xi1>
    %226 = vector.broadcast %225 : vector<2x1xi1> to vector<2x128xi1>
    %227 = arith.select %226, %221, %171 : vector<2x128xi1>, vector<2x128xf32>
    %228 = vector.shape_cast %224 : vector<2x1xi1> to vector<2x1xi1>
    %229 = vector.broadcast %228 : vector<2x1xi1> to vector<2x128xi1>
    %230 = arith.select %229, %219, %174 : vector<2x128xi1>, vector<2x128xf32>
    %cst_57 = arith.constant 0.000000e+00 : f32
    %231 = vector.shape_cast %224 : vector<2x1xi1> to vector<2x1xi1>
    %232 = vector.broadcast %231 : vector<2x1xi1> to vector<2x128xi1>
    %233 = vector.broadcast %cst_57 : f32 to vector<2x128xf32>
    %234 = arith.select %232, %221, %233 : vector<2x128xi1>, vector<2x128xf32>
    %235 = arith.truncf %234 : vector<2x128xf32> to vector<2x128xbf16>
    %c0_58 = arith.constant 0 : index
    %236 = arith.index_cast %188 : i32 to index
    %c0_59 = arith.constant 0 : index
    %c0_60 = arith.constant 0 : index
    %237 = vector.load %arg6[%c0_58, %236, %c0_59, %c0_60] : memref<1x8x2x128xbf16, #tpu.memory_space<vmem>>, vector<1x1x2x128xbf16>
    %238 = vector.shape_cast %237 : vector<1x1x2x128xbf16> to vector<2x128xbf16>
    %239 = vector.shape_cast %235 : vector<2x128xbf16> to vector<1x1x2x128xbf16>
    tpu.vector_store %arg6[%c0_58, %236, %c0_59, %c0_60], %239 {strides = array<i32>} : memref<1x8x2x128xbf16, #tpu.memory_space<vmem>>, vector<1x1x2x128xbf16>,
    %c4_i32 = arith.constant 4 : i32
    %c1_i32_61 = arith.constant 1 : i32
    %240 = arith.subi %c1_i32_61, %arg0 : i32
    %241 = arith.muli %240, %c4_i32 : i32
    %c7_i32_62 = arith.constant 7 : i32
    %242 = arith.subi %c7_i32_62, %c4_i32 : i32
    %243 = arith.muli %arg0, %242 : i32
    %244 = arith.addi %241, %243 : i32
    %245 = arith.index_cast %244 : i32 to index
    %c0_63 = arith.constant 0 : index
    %c0_64 = arith.constant 0 : index
    %246 = vector.load %arg2[%245, %c0_63, %c0_64] : memref<8x2x128xbf16, #tpu.memory_space<vmem>>, vector<1x2x128xbf16>
    %247 = vector.shape_cast %246 : vector<1x2x128xbf16> to vector<2x128xbf16>
    %248 = arith.truncf %227 : vector<2x128xf32> to vector<2x128xbf16>
    %249 = tpu.concatenate %247, %248 in 1 : vector<2x128xbf16>, vector<2x128xbf16> -> vector<2x256xbf16>
    %cst_65 = arith.constant dense<0.000000e+00> : vector<2x512xf32>
    %250 = tpu.matmul %249, %4, %cst_65 {dimension_numbers = #tpu.dot_dimension_numbers<[1], [0], [0], [1], [0, 0, 1, 1], [], []>} : vector<2x256xbf16>, vector<256x512xbf16>, vector<2x512xf32> -> vector<2x512xf32>
    %251 = vector.broadcast %6 : vector<1x512xf32> to vector<2x512xf32>
    %252 = arith.addf %250, %251 : vector<2x512xf32>
    %253 = vector.extract_strided_slice %252 {offsets = [0, 0], sizes = [2, 128], strides = [1, 1]} : vector<2x512xf32> to vector<2x128xf32>
    %254 = arith.negf %253 : vector<2x128xf32>
    %255 = math.exp %254 : vector<2x128xf32>
    %cst_66 = arith.constant 1.000000e+00 : f32
    %256 = vector.broadcast %cst_66 : f32 to vector<2x128xf32>
    %257 = arith.addf %256, %255 : vector<2x128xf32>
    %258 = arith.divf %256, %257 : vector<2x128xf32>
    %259 = vector.extract_strided_slice %252 {offsets = [0, 128], sizes = [2, 128], strides = [1, 1]} : vector<2x512xf32> to vector<2x128xf32>
    %260 = arith.negf %259 : vector<2x128xf32>
    %261 = math.exp %260 : vector<2x128xf32>
    %cst_67 = arith.constant 1.000000e+00 : f32
    %262 = vector.broadcast %cst_67 : f32 to vector<2x128xf32>
    %263 = arith.addf %262, %261 : vector<2x128xf32>
    %264 = arith.divf %262, %263 : vector<2x128xf32>
    %265 = vector.extract_strided_slice %252 {offsets = [0, 256], sizes = [2, 128], strides = [1, 1]} : vector<2x512xf32> to vector<2x128xf32>
    %266 = math.tanh %265 : vector<2x128xf32>
    %267 = vector.extract_strided_slice %252 {offsets = [0, 384], sizes = [2, 128], strides = [1, 1]} : vector<2x512xf32> to vector<2x128xf32>
    %268 = arith.negf %267 : vector<2x128xf32>
    %269 = math.exp %268 : vector<2x128xf32>
    %cst_68 = arith.constant 1.000000e+00 : f32
    %270 = vector.broadcast %cst_68 : f32 to vector<2x128xf32>
    %271 = arith.addf %270, %269 : vector<2x128xf32>
    %272 = arith.divf %270, %271 : vector<2x128xf32>
    %273 = arith.mulf %264, %230 : vector<2x128xf32>
    %274 = arith.mulf %258, %266 : vector<2x128xf32>
    %275 = arith.addf %273, %274 : vector<2x128xf32>
    %276 = math.tanh %275 : vector<2x128xf32>
    %277 = arith.mulf %272, %276 : vector<2x128xf32>
    %278 = arith.addi %13, %244 : i32
    %279 = vector.broadcast %278 : i32 to vector<2x1xi32>
    %280 = arith.cmpi sgt, %7, %279 : vector<2x1xi32>
    %281 = vector.shape_cast %280 : vector<2x1xi1> to vector<2x1xi1>
    %282 = vector.broadcast %281 : vector<2x1xi1> to vector<2x128xi1>
    %283 = arith.select %282, %277, %227 : vector<2x128xi1>, vector<2x128xf32>
    %284 = vector.shape_cast %280 : vector<2x1xi1> to vector<2x1xi1>
    %285 = vector.broadcast %284 : vector<2x1xi1> to vector<2x128xi1>
    %286 = arith.select %285, %275, %230 : vector<2x128xi1>, vector<2x128xf32>
    %cst_69 = arith.constant 0.000000e+00 : f32
    %287 = vector.shape_cast %280 : vector<2x1xi1> to vector<2x1xi1>
    %288 = vector.broadcast %287 : vector<2x1xi1> to vector<2x128xi1>
    %289 = vector.broadcast %cst_69 : f32 to vector<2x128xf32>
    %290 = arith.select %288, %277, %289 : vector<2x128xi1>, vector<2x128xf32>
    %291 = arith.truncf %290 : vector<2x128xf32> to vector<2x128xbf16>
    %c0_70 = arith.constant 0 : index
    %292 = arith.index_cast %244 : i32 to index
    %c0_71 = arith.constant 0 : index
    %c0_72 = arith.constant 0 : index
    %293 = vector.load %arg6[%c0_70, %292, %c0_71, %c0_72] : memref<1x8x2x128xbf16, #tpu.memory_space<vmem>>, vector<1x1x2x128xbf16>
    %294 = vector.shape_cast %293 : vector<1x1x2x128xbf16> to vector<2x128xbf16>
    %295 = vector.shape_cast %291 : vector<2x128xbf16> to vector<1x1x2x128xbf16>
    tpu.vector_store %arg6[%c0_70, %292, %c0_71, %c0_72], %295 {strides = array<i32>} : memref<1x8x2x128xbf16, #tpu.memory_space<vmem>>, vector<1x1x2x128xbf16>,
    %c5_i32 = arith.constant 5 : i32
    %c1_i32_73 = arith.constant 1 : i32
    %296 = arith.subi %c1_i32_73, %arg0 : i32
    %297 = arith.muli %296, %c5_i32 : i32
    %c7_i32_74 = arith.constant 7 : i32
    %298 = arith.subi %c7_i32_74, %c5_i32 : i32
    %299 = arith.muli %arg0, %298 : i32
    %300 = arith.addi %297, %299 : i32
    %301 = arith.index_cast %300 : i32 to index
    %c0_75 = arith.constant 0 : index
    %c0_76 = arith.constant 0 : index
    %302 = vector.load %arg2[%301, %c0_75, %c0_76] : memref<8x2x128xbf16, #tpu.memory_space<vmem>>, vector<1x2x128xbf16>
    %303 = vector.shape_cast %302 : vector<1x2x128xbf16> to vector<2x128xbf16>
    %304 = arith.truncf %283 : vector<2x128xf32> to vector<2x128xbf16>
    %305 = tpu.concatenate %303, %304 in 1 : vector<2x128xbf16>, vector<2x128xbf16> -> vector<2x256xbf16>
    %cst_77 = arith.constant dense<0.000000e+00> : vector<2x512xf32>
    %306 = tpu.matmul %305, %4, %cst_77 {dimension_numbers = #tpu.dot_dimension_numbers<[1], [0], [0], [1], [0, 0, 1, 1], [], []>} : vector<2x256xbf16>, vector<256x512xbf16>, vector<2x512xf32> -> vector<2x512xf32>
    %307 = vector.broadcast %6 : vector<1x512xf32> to vector<2x512xf32>
    %308 = arith.addf %306, %307 : vector<2x512xf32>
    %309 = vector.extract_strided_slice %308 {offsets = [0, 0], sizes = [2, 128], strides = [1, 1]} : vector<2x512xf32> to vector<2x128xf32>
    %310 = arith.negf %309 : vector<2x128xf32>
    %311 = math.exp %310 : vector<2x128xf32>
    %cst_78 = arith.constant 1.000000e+00 : f32
    %312 = vector.broadcast %cst_78 : f32 to vector<2x128xf32>
    %313 = arith.addf %312, %311 : vector<2x128xf32>
    %314 = arith.divf %312, %313 : vector<2x128xf32>
    %315 = vector.extract_strided_slice %308 {offsets = [0, 128], sizes = [2, 128], strides = [1, 1]} : vector<2x512xf32> to vector<2x128xf32>
    %316 = arith.negf %315 : vector<2x128xf32>
    %317 = math.exp %316 : vector<2x128xf32>
    %cst_79 = arith.constant 1.000000e+00 : f32
    %318 = vector.broadcast %cst_79 : f32 to vector<2x128xf32>
    %319 = arith.addf %318, %317 : vector<2x128xf32>
    %320 = arith.divf %318, %319 : vector<2x128xf32>
    %321 = vector.extract_strided_slice %308 {offsets = [0, 256], sizes = [2, 128], strides = [1, 1]} : vector<2x512xf32> to vector<2x128xf32>
    %322 = math.tanh %321 : vector<2x128xf32>
    %323 = vector.extract_strided_slice %308 {offsets = [0, 384], sizes = [2, 128], strides = [1, 1]} : vector<2x512xf32> to vector<2x128xf32>
    %324 = arith.negf %323 : vector<2x128xf32>
    %325 = math.exp %324 : vector<2x128xf32>
    %cst_80 = arith.constant 1.000000e+00 : f32
    %326 = vector.broadcast %cst_80 : f32 to vector<2x128xf32>
    %327 = arith.addf %326, %325 : vector<2x128xf32>
    %328 = arith.divf %326, %327 : vector<2x128xf32>
    %329 = arith.mulf %320, %286 : vector<2x128xf32>
    %330 = arith.mulf %314, %322 : vector<2x128xf32>
    %331 = arith.addf %329, %330 : vector<2x128xf32>
    %332 = math.tanh %331 : vector<2x128xf32>
    %333 = arith.mulf %328, %332 : vector<2x128xf32>
    %334 = arith.addi %13, %300 : i32
    %335 = vector.broadcast %334 : i32 to vector<2x1xi32>
    %336 = arith.cmpi sgt, %7, %335 : vector<2x1xi32>
    %337 = vector.shape_cast %336 : vector<2x1xi1> to vector<2x1xi1>
    %338 = vector.broadcast %337 : vector<2x1xi1> to vector<2x128xi1>
    %339 = arith.select %338, %333, %283 : vector<2x128xi1>, vector<2x128xf32>
    %340 = vector.shape_cast %336 : vector<2x1xi1> to vector<2x1xi1>
    %341 = vector.broadcast %340 : vector<2x1xi1> to vector<2x128xi1>
    %342 = arith.select %341, %331, %286 : vector<2x128xi1>, vector<2x128xf32>
    %cst_81 = arith.constant 0.000000e+00 : f32
    %343 = vector.shape_cast %336 : vector<2x1xi1> to vector<2x1xi1>
    %344 = vector.broadcast %343 : vector<2x1xi1> to vector<2x128xi1>
    %345 = vector.broadcast %cst_81 : f32 to vector<2x128xf32>
    %346 = arith.select %344, %333, %345 : vector<2x128xi1>, vector<2x128xf32>
    %347 = arith.truncf %346 : vector<2x128xf32> to vector<2x128xbf16>
    %c0_82 = arith.constant 0 : index
    %348 = arith.index_cast %300 : i32 to index
    %c0_83 = arith.constant 0 : index
    %c0_84 = arith.constant 0 : index
    %349 = vector.load %arg6[%c0_82, %348, %c0_83, %c0_84] : memref<1x8x2x128xbf16, #tpu.memory_space<vmem>>, vector<1x1x2x128xbf16>
    %350 = vector.shape_cast %349 : vector<1x1x2x128xbf16> to vector<2x128xbf16>
    %351 = vector.shape_cast %347 : vector<2x128xbf16> to vector<1x1x2x128xbf16>
    tpu.vector_store %arg6[%c0_82, %348, %c0_83, %c0_84], %351 {strides = array<i32>} : memref<1x8x2x128xbf16, #tpu.memory_space<vmem>>, vector<1x1x2x128xbf16>,
    %c6_i32 = arith.constant 6 : i32
    %c1_i32_85 = arith.constant 1 : i32
    %352 = arith.subi %c1_i32_85, %arg0 : i32
    %353 = arith.muli %352, %c6_i32 : i32
    %c7_i32_86 = arith.constant 7 : i32
    %354 = arith.subi %c7_i32_86, %c6_i32 : i32
    %355 = arith.muli %arg0, %354 : i32
    %356 = arith.addi %353, %355 : i32
    %357 = arith.index_cast %356 : i32 to index
    %c0_87 = arith.constant 0 : index
    %c0_88 = arith.constant 0 : index
    %358 = vector.load %arg2[%357, %c0_87, %c0_88] : memref<8x2x128xbf16, #tpu.memory_space<vmem>>, vector<1x2x128xbf16>
    %359 = vector.shape_cast %358 : vector<1x2x128xbf16> to vector<2x128xbf16>
    %360 = arith.truncf %339 : vector<2x128xf32> to vector<2x128xbf16>
    %361 = tpu.concatenate %359, %360 in 1 : vector<2x128xbf16>, vector<2x128xbf16> -> vector<2x256xbf16>
    %cst_89 = arith.constant dense<0.000000e+00> : vector<2x512xf32>
    %362 = tpu.matmul %361, %4, %cst_89 {dimension_numbers = #tpu.dot_dimension_numbers<[1], [0], [0], [1], [0, 0, 1, 1], [], []>} : vector<2x256xbf16>, vector<256x512xbf16>, vector<2x512xf32> -> vector<2x512xf32>
    %363 = vector.broadcast %6 : vector<1x512xf32> to vector<2x512xf32>
    %364 = arith.addf %362, %363 : vector<2x512xf32>
    %365 = vector.extract_strided_slice %364 {offsets = [0, 0], sizes = [2, 128], strides = [1, 1]} : vector<2x512xf32> to vector<2x128xf32>
    %366 = arith.negf %365 : vector<2x128xf32>
    %367 = math.exp %366 : vector<2x128xf32>
    %cst_90 = arith.constant 1.000000e+00 : f32
    %368 = vector.broadcast %cst_90 : f32 to vector<2x128xf32>
    %369 = arith.addf %368, %367 : vector<2x128xf32>
    %370 = arith.divf %368, %369 : vector<2x128xf32>
    %371 = vector.extract_strided_slice %364 {offsets = [0, 128], sizes = [2, 128], strides = [1, 1]} : vector<2x512xf32> to vector<2x128xf32>
    %372 = arith.negf %371 : vector<2x128xf32>
    %373 = math.exp %372 : vector<2x128xf32>
    %cst_91 = arith.constant 1.000000e+00 : f32
    %374 = vector.broadcast %cst_91 : f32 to vector<2x128xf32>
    %375 = arith.addf %374, %373 : vector<2x128xf32>
    %376 = arith.divf %374, %375 : vector<2x128xf32>
    %377 = vector.extract_strided_slice %364 {offsets = [0, 256], sizes = [2, 128], strides = [1, 1]} : vector<2x512xf32> to vector<2x128xf32>
    %378 = math.tanh %377 : vector<2x128xf32>
    %379 = vector.extract_strided_slice %364 {offsets = [0, 384], sizes = [2, 128], strides = [1, 1]} : vector<2x512xf32> to vector<2x128xf32>
    %380 = arith.negf %379 : vector<2x128xf32>
    %381 = math.exp %380 : vector<2x128xf32>
    %cst_92 = arith.constant 1.000000e+00 : f32
    %382 = vector.broadcast %cst_92 : f32 to vector<2x128xf32>
    %383 = arith.addf %382, %381 : vector<2x128xf32>
    %384 = arith.divf %382, %383 : vector<2x128xf32>
    %385 = arith.mulf %376, %342 : vector<2x128xf32>
    %386 = arith.mulf %370, %378 : vector<2x128xf32>
    %387 = arith.addf %385, %386 : vector<2x128xf32>
    %388 = math.tanh %387 : vector<2x128xf32>
    %389 = arith.mulf %384, %388 : vector<2x128xf32>
    %390 = arith.addi %13, %356 : i32
    %391 = vector.broadcast %390 : i32 to vector<2x1xi32>
    %392 = arith.cmpi sgt, %7, %391 : vector<2x1xi32>
    %393 = vector.shape_cast %392 : vector<2x1xi1> to vector<2x1xi1>
    %394 = vector.broadcast %393 : vector<2x1xi1> to vector<2x128xi1>
    %395 = arith.select %394, %389, %339 : vector<2x128xi1>, vector<2x128xf32>
    %396 = vector.shape_cast %392 : vector<2x1xi1> to vector<2x1xi1>
    %397 = vector.broadcast %396 : vector<2x1xi1> to vector<2x128xi1>
    %398 = arith.select %397, %387, %342 : vector<2x128xi1>, vector<2x128xf32>
    %cst_93 = arith.constant 0.000000e+00 : f32
    %399 = vector.shape_cast %392 : vector<2x1xi1> to vector<2x1xi1>
    %400 = vector.broadcast %399 : vector<2x1xi1> to vector<2x128xi1>
    %401 = vector.broadcast %cst_93 : f32 to vector<2x128xf32>
    %402 = arith.select %400, %389, %401 : vector<2x128xi1>, vector<2x128xf32>
    %403 = arith.truncf %402 : vector<2x128xf32> to vector<2x128xbf16>
    %c0_94 = arith.constant 0 : index
    %404 = arith.index_cast %356 : i32 to index
    %c0_95 = arith.constant 0 : index
    %c0_96 = arith.constant 0 : index
    %405 = vector.load %arg6[%c0_94, %404, %c0_95, %c0_96] : memref<1x8x2x128xbf16, #tpu.memory_space<vmem>>, vector<1x1x2x128xbf16>
    %406 = vector.shape_cast %405 : vector<1x1x2x128xbf16> to vector<2x128xbf16>
    %407 = vector.shape_cast %403 : vector<2x128xbf16> to vector<1x1x2x128xbf16>
    tpu.vector_store %arg6[%c0_94, %404, %c0_95, %c0_96], %407 {strides = array<i32>} : memref<1x8x2x128xbf16, #tpu.memory_space<vmem>>, vector<1x1x2x128xbf16>,
    %c7_i32_97 = arith.constant 7 : i32
    %c1_i32_98 = arith.constant 1 : i32
    %408 = arith.subi %c1_i32_98, %arg0 : i32
    %409 = arith.muli %408, %c7_i32_97 : i32
    %c7_i32_99 = arith.constant 7 : i32
    %410 = arith.subi %c7_i32_99, %c7_i32_97 : i32
    %411 = arith.muli %arg0, %410 : i32
    %412 = arith.addi %409, %411 : i32
    %413 = arith.index_cast %412 : i32 to index
    %c0_100 = arith.constant 0 : index
    %c0_101 = arith.constant 0 : index
    %414 = vector.load %arg2[%413, %c0_100, %c0_101] : memref<8x2x128xbf16, #tpu.memory_space<vmem>>, vector<1x2x128xbf16>
    %415 = vector.shape_cast %414 : vector<1x2x128xbf16> to vector<2x128xbf16>
    %416 = arith.truncf %395 : vector<2x128xf32> to vector<2x128xbf16>
    %417 = tpu.concatenate %415, %416 in 1 : vector<2x128xbf16>, vector<2x128xbf16> -> vector<2x256xbf16>
    %cst_102 = arith.constant dense<0.000000e+00> : vector<2x512xf32>
    %418 = tpu.matmul %417, %4, %cst_102 {dimension_numbers = #tpu.dot_dimension_numbers<[1], [0], [0], [1], [0, 0, 1, 1], [], []>} : vector<2x256xbf16>, vector<256x512xbf16>, vector<2x512xf32> -> vector<2x512xf32>
    %419 = vector.broadcast %6 : vector<1x512xf32> to vector<2x512xf32>
    %420 = arith.addf %418, %419 : vector<2x512xf32>
    %421 = vector.extract_strided_slice %420 {offsets = [0, 0], sizes = [2, 128], strides = [1, 1]} : vector<2x512xf32> to vector<2x128xf32>
    %422 = arith.negf %421 : vector<2x128xf32>
    %423 = math.exp %422 : vector<2x128xf32>
    %cst_103 = arith.constant 1.000000e+00 : f32
    %424 = vector.broadcast %cst_103 : f32 to vector<2x128xf32>
    %425 = arith.addf %424, %423 : vector<2x128xf32>
    %426 = arith.divf %424, %425 : vector<2x128xf32>
    %427 = vector.extract_strided_slice %420 {offsets = [0, 128], sizes = [2, 128], strides = [1, 1]} : vector<2x512xf32> to vector<2x128xf32>
    %428 = arith.negf %427 : vector<2x128xf32>
    %429 = math.exp %428 : vector<2x128xf32>
    %cst_104 = arith.constant 1.000000e+00 : f32
    %430 = vector.broadcast %cst_104 : f32 to vector<2x128xf32>
    %431 = arith.addf %430, %429 : vector<2x128xf32>
    %432 = arith.divf %430, %431 : vector<2x128xf32>
    %433 = vector.extract_strided_slice %420 {offsets = [0, 256], sizes = [2, 128], strides = [1, 1]} : vector<2x512xf32> to vector<2x128xf32>
    %434 = math.tanh %433 : vector<2x128xf32>
    %435 = vector.extract_strided_slice %420 {offsets = [0, 384], sizes = [2, 128], strides = [1, 1]} : vector<2x512xf32> to vector<2x128xf32>
    %436 = arith.negf %435 : vector<2x128xf32>
    %437 = math.exp %436 : vector<2x128xf32>
    %cst_105 = arith.constant 1.000000e+00 : f32
    %438 = vector.broadcast %cst_105 : f32 to vector<2x128xf32>
    %439 = arith.addf %438, %437 : vector<2x128xf32>
    %440 = arith.divf %438, %439 : vector<2x128xf32>
    %441 = arith.mulf %432, %398 : vector<2x128xf32>
    %442 = arith.mulf %426, %434 : vector<2x128xf32>
    %443 = arith.addf %441, %442 : vector<2x128xf32>
    %444 = math.tanh %443 : vector<2x128xf32>
    %445 = arith.mulf %440, %444 : vector<2x128xf32>
    %446 = arith.addi %13, %412 : i32
    %447 = vector.broadcast %446 : i32 to vector<2x1xi32>
    %448 = arith.cmpi sgt, %7, %447 : vector<2x1xi32>
    %449 = vector.shape_cast %448 : vector<2x1xi1> to vector<2x1xi1>
    %450 = vector.broadcast %449 : vector<2x1xi1> to vector<2x128xi1>
    %451 = arith.select %450, %445, %395 : vector<2x128xi1>, vector<2x128xf32>
    %452 = vector.shape_cast %448 : vector<2x1xi1> to vector<2x1xi1>
    %453 = vector.broadcast %452 : vector<2x1xi1> to vector<2x128xi1>
    %454 = arith.select %453, %443, %398 : vector<2x128xi1>, vector<2x128xf32>
    %cst_106 = arith.constant 0.000000e+00 : f32
    %455 = vector.shape_cast %448 : vector<2x1xi1> to vector<2x1xi1>
    %456 = vector.broadcast %455 : vector<2x1xi1> to vector<2x128xi1>
    %457 = vector.broadcast %cst_106 : f32 to vector<2x128xf32>
    %458 = arith.select %456, %445, %457 : vector<2x128xi1>, vector<2x128xf32>
    %459 = arith.truncf %458 : vector<2x128xf32> to vector<2x128xbf16>
    %c0_107 = arith.constant 0 : index
    %460 = arith.index_cast %412 : i32 to index
    %c0_108 = arith.constant 0 : index
    %c0_109 = arith.constant 0 : index
    %461 = vector.load %arg6[%c0_107, %460, %c0_108, %c0_109] : memref<1x8x2x128xbf16, #tpu.memory_space<vmem>>, vector<1x1x2x128xbf16>
    %462 = vector.shape_cast %461 : vector<1x1x2x128xbf16> to vector<2x128xbf16>
    %463 = vector.shape_cast %459 : vector<2x128xbf16> to vector<1x1x2x128xbf16>
    tpu.vector_store %arg6[%c0_107, %460, %c0_108, %c0_109], %463 {strides = array<i32>} : memref<1x8x2x128xbf16, #tpu.memory_space<vmem>>, vector<1x1x2x128xbf16>,
    %c8_i32_110 = arith.constant 8 : i32
    %c0_111 = arith.constant 0 : index
    %c0_112 = arith.constant 0 : index
    %464 = vector.load %arg7[%c0_111, %c0_112] : memref<2x128xf32, #tpu.memory_space<vmem>>, vector<2x128xf32>
    tpu.vector_store %arg7[%c0_111, %c0_112], %451 {strides = array<i32>} : memref<2x128xf32, #tpu.memory_space<vmem>>, vector<2x128xf32>,
    %c0_113 = arith.constant 0 : index
    %c0_114 = arith.constant 0 : index
    %465 = vector.load %arg8[%c0_113, %c0_114] : memref<2x128xf32, #tpu.memory_space<vmem>>, vector<2x128xf32>
    tpu.vector_store %arg8[%c0_113, %c0_114], %454 {strides = array<i32>} : memref<2x128xf32, #tpu.memory_space<vmem>>, vector<2x128xf32>,
    return
  }
  func.func @transform_0(%arg0: i32, %arg1: i32) -> (i32, i32, i32) {
    %c1_i32 = arith.constant 1 : i32
    %0 = arith.subi %c1_i32, %arg0 : i32
    %1 = arith.muli %0, %arg1 : i32
    %c0_i32 = arith.constant 0 : i32
    %2 = arith.subi %c0_i32, %arg1 : i32
    %3 = arith.muli %arg0, %2 : i32
    %4 = arith.addi %1, %3 : i32
    %c0_i32_0 = arith.constant 0 : i32
    %c0_i32_1 = arith.constant 0 : i32
    %c0_i32_2 = arith.constant 0 : i32
    return %4, %c0_i32_0, %c0_i32_1 : i32, i32, i32
  }
  func.func @transform_1(%arg0: i32, %arg1: i32) -> (i32, i32, i32) {
    %c0_i32 = arith.constant 0 : i32
    %c0_i32_0 = arith.constant 0 : i32
    %c0_i32_1 = arith.constant 0 : i32
    return %arg0, %c0_i32, %c0_i32_0 : i32, i32, i32
  }
  func.func @transform_2(%arg0: i32, %arg1: i32) -> (i32, i32, i32) {
    %c0_i32 = arith.constant 0 : i32
    %c0_i32_0 = arith.constant 0 : i32
    %c0_i32_1 = arith.constant 0 : i32
    return %arg0, %c0_i32, %c0_i32_0 : i32, i32, i32
  }
  func.func @transform_3(%arg0: i32, %arg1: i32) -> (i32, i32) {
    %c0_i32 = arith.constant 0 : i32
    %c0_i32_0 = arith.constant 0 : i32
    %c0_i32_1 = arith.constant 0 : i32
    return %c0_i32, %c0_i32_0 : i32, i32
  }
  func.func @transform_4(%arg0: i32, %arg1: i32) -> (i32, i32, i32, i32) {
    %c1_i32 = arith.constant 1 : i32
    %0 = arith.subi %c1_i32, %arg0 : i32
    %1 = arith.muli %0, %arg1 : i32
    %c0_i32 = arith.constant 0 : i32
    %2 = arith.subi %c0_i32, %arg1 : i32
    %3 = arith.muli %arg0, %2 : i32
    %4 = arith.addi %1, %3 : i32
    %c0_i32_0 = arith.constant 0 : i32
    %c0_i32_1 = arith.constant 0 : i32
    %c0_i32_2 = arith.constant 0 : i32
    return %arg0, %4, %c0_i32_0, %c0_i32_1 : i32, i32, i32, i32
  }
}

</mosaic_0001>

<bundles_post_ra>
// kernel: blstm_forward.3
= control target key start
LH: loop header
LB: loop body
LE: loop exit
PB: predicated region body
PF: predicated region fallthrough
CT: control target
= control target key end

     0   :  { %v495_v0 = vmov 0.0   ;;  %vm496_vm0 = vmmov 0   ;;  %vm314_vm3 = vcmask 523264   ;;  %s641_s3 = inlined_call_operand.vmem [shape: bf16[128,64], index: 3, kind: input, shape index: {}]   ;;  %s642_s2 = inlined_call_operand.vmem [shape: bf16[128,64], index: 2, kind: input, shape index: {}]   ;;  %s643_s1 = inlined_call_operand.vmem [shape: bf16[16,128], index: 1, kind: input, shape index: {}]   ;;  %s644_s0 = inlined_call_operand.vmem [shape: bf16[16,128], index: 0, kind: input, shape index: {}]   ;;  %s645_s5 = inlined_call_operand.vmem [shape: bf16[64,128], index: 5, kind: input, shape index: {}]   ;;  %s646_s4 = inlined_call_operand.vmem [shape: f32[1,64], index: 4, kind: input, shape index: {}]   ;;  %s647_s6 = inlined_call_operand.vmem [shape: f32[1,128], index: 6, kind: input, shape index: {}]   ;;  %s648_s7 = inlined_call_operand.vmem [shape: f32[16,128], index: 7, kind: output, shape index: {}]  }
   0x1   :  { %415 = vmatprep.subr.bf16.mxu0 %v495_v0  ;;  %435 = vmatprep.subr.bf16.mxu1 %v495_v0  ;;  %v469_v1 = vld [vmem:[%s641_s3] sm:$0xff]   ;;  %v471_v3 = vld [vmem:[%s641_s3 + $0x8] sm:$0xff]   ;;  %v473_v5 = vld [vmem:[%s641_s3 + $0x10] sm:$0xff]  }
   0x2   :  { %v470_v2 = vld [vmem:[%s642_s2] sm:$0xff]   ;;  %431 = vmatprep.mubr.msk.bf16.mxu0 %vm496_vm0, %v495_v0  ;;  %451 = vmatprep.mubr.msk.bf16.mxu1 %vm496_vm0, %v495_v0  ;;  %v472_v4 = vld [vmem:[%s642_s2 + $0x8] sm:$0xff]   ;;  %v474_v6 = vld [vmem:[%s642_s2 + $0x10] sm:$0xff]  }
   0x3   :  { %416 = vmatpush3.bf16.msra.mxu0 %v469_v1  ;;  %436 = vmatpush3.bf16.msra.mxu1 %v470_v2  ;;  %v475_v7 = vld [vmem:[%s641_s3 + $0x18] sm:$0xff]   ;;  %v477_v9 = vld [vmem:[%s641_s3 + $0x20] sm:$0xff]   ;;  %v479_v11 = vld [vmem:[%s641_s3 + $0x28] sm:$0xff]  }
   0x4   :  { %417 = vmatprep.subr.bf16.mxu0 %v495_v0  ;;  %437 = vmatprep.subr.bf16.mxu1 %v495_v0  ;;  %v476_v8 = vld [vmem:[%s642_s2 + $0x18] sm:$0xff]   ;;  %v478_v10 = vld [vmem:[%s642_s2 + $0x20] sm:$0xff]   ;;  %v480_v12 = vld [vmem:[%s642_s2 + $0x28] sm:$0xff]  }
   0x5   :  { %v481_v13 = vld [vmem:[%s641_s3 + $0x30] sm:$0xff]   ;;  %v483_v15 = vld [vmem:[%s641_s3 + $0x38] sm:$0xff]   ;;  %v485_v17 = vld [vmem:[%s643_s1] sm:$0xff]  }
   0x6   :  { %v482_v14 = vld [vmem:[%s642_s2 + $0x30] sm:$0xff]   ;;  %v484_v16 = vld [vmem:[%s642_s2 + $0x38] sm:$0xff]   ;;  %v486_v18 = vld [vmem:[%s644_s0] sm:$0xff]  }
   0x7   :  { %418 = vmatpush3.bf16.msra.mxu0 %v471_v3  ;;  %438 = vmatpush3.bf16.msra.mxu1 %v472_v4  ;;  %v487_v19 = vld [vmem:[%s645_s5] sm:$0xff]   ;;  %v488_v20 = vld [vmem:[%s645_s5 + $0x8] sm:$0xff]   ;;  %v489_v21 = vld [vmem:[%s645_s5 + $0x10] sm:$0xff]  }
   0x8   :  { %419 = vmatprep.subr.bf16.mxu0 %v495_v0  ;;  %439 = vmatprep.subr.bf16.mxu1 %v495_v0  ;;  %v490_v22 = vld [vmem:[%s645_s5 + $0x18] sm:$0xff]   ;;  %v383_v25 = vld [vmem:[%s646_s4] ss:$0 sm:$0xff] }
   0x9   :  { %v386_v47 = vld [vmem:[%s647_s6] ss:$0 sm:$0xff] }
   0xb   :  { %420 = vmatpush3.bf16.msra.mxu0 %v473_v5  ;;  %440 = vmatpush3.bf16.msra.mxu1 %v474_v6 }
   0xc   :  { %421 = vmatprep.subr.bf16.mxu0 %v495_v0  ;;  %441 = vmatprep.subr.bf16.mxu1 %v495_v0 }
   0xf   :  { %422 = vmatpush3.bf16.msra.mxu0 %v475_v7  ;;  %442 = vmatpush3.bf16.msra.mxu1 %v476_v8 }
  0x10   :  { %423 = vmatprep.subr.bf16.mxu0 %v495_v0  ;;  %443 = vmatprep.subr.bf16.mxu1 %v495_v0 }
  0x13   :  { %424 = vmatpush3.bf16.msra.mxu0 %v477_v9  ;;  %444 = vmatpush3.bf16.msra.mxu1 %v478_v10 }
  0x14   :  { %425 = vmatprep.subr.bf16.mxu0 %v495_v0  ;;  %445 = vmatprep.subr.bf16.mxu1 %v495_v0 }
  0x17   :  { %426 = vmatpush3.bf16.msra.mxu0 %v479_v11  ;;  %446 = vmatpush3.bf16.msra.mxu1 %v480_v12 }
  0x18   :  { %427 = vmatprep.subr.bf16.mxu0 %v495_v0  ;;  %447 = vmatprep.subr.bf16.mxu1 %v495_v0 }
  0x1b   :  { %428 = vmatpush3.bf16.msra.mxu0 %v481_v13  ;;  %448 = vmatpush3.bf16.msra.mxu1 %v482_v14 }
  0x1c   :  { %429 = vmatprep.subr.bf16.mxu0 %v495_v0  ;;  %449 = vmatprep.subr.bf16.mxu1 %v495_v0 }
  0x1f   :  { %430 = vmatpush3.bf16.msra.mxu0 %v483_v15  ;;  %450 = vmatpush3.bf16.msra.mxu1 %v484_v16 }
  0x20   :  { %455 = vmatprep.subr.bf16.mxu0 %v495_v0 }
  0x22   :  { %432 = vmatmul.mubr.bf16.vlgmr.msra.gmra.mrb[0].mxu0 %v485_v17  ;;  %452 = vmatmul.mubr.bf16.vlgmr.msra.gmra.mrb[0].mxu1 %v486_v18 }
  0x23   :  { %463 = vmatprep.mubr.msk.bf16.mxu0 %vm496_vm0, %v495_v0  ;;  %456 = vmatpush3.bf16.msra.mxu0 %v487_v19 }
  0x24   :  { %457 = vmatprep.subr.bf16.mxu0 %v495_v0 }
  0x27   :  { %458 = vmatpush3.bf16.msra.mxu0 %v488_v20 }
  0x28   :  { %459 = vmatprep.subr.bf16.mxu0 %v495_v0 }
  0x2b   :  { %460 = vmatpush3.bf16.msra.mxu0 %v489_v21 }
  0x2c   :  { %461 = vmatprep.subr.bf16.mxu0 %v495_v0 }
  0x2f   :  { %462 = vmatpush3.bf16.msra.mxu0 %v490_v22 }
  0xf5   :  { %v151_v23 = vpop.f32.mrb[0].mxu0  ;;  %v246_v24 = vpop.f32.mrb[0].mxu1 }
  0xf6   :  { %v433_v26 = vpop.f32.mrb[1].mxu0  ;;  %v247_v27 = vadd.f32 %v246_v24, %v151_v23  ;;  %v453_v28 = vpop.f32.mrb[1].mxu1 }
  0xf7   :  { %v154_v29 = vpop.f32.mrb[2].mxu0  ;;  %v249_v30 = vpop.f32.mrb[2].mxu1 }
  0xf8   :  { %v434_v31 = vpop.f32.mrb[3].mxu0  ;;  %v260_v32 = vadd.f32 %v383_v25, %v247_v27  ;;  %v250_v33 = vadd.f32 %v249_v30, %v154_v29  ;;  %v454_v34 = vpop.f32.mrb[3].mxu1 }
  0xfa   :  { %v264_v35 = vmin.f32 %v260_v32, 0.0  ;;  %v261_v36 = vadd.f32 %v383_v25, %v250_v33  ;;  %vm262_vm1 = vcmp.gt.f32.partialorder %v260_v32, 0.0 }
  0xfc   :  { %v266_v37 = vmul.f32 1.442695, %v264_v35  ;;  %v265_v38 = vmin.f32 %v261_v36, 0.0  ;;  %vm263_vm2 = vcmp.gt.f32.partialorder %v261_v36, 0.0 }
  0xfe   :  { %491 = vpow2.f32 %v266_v37  ;;  %v268_v39 = vmul.f32 1.442695, %v265_v38 }
 0x100   :  { %493 = vpow2.f32 %v268_v39 }
 0x108   :  { %v492_v40 = vpop.eup %491 }
 0x109   :  { %v384_v41 = vadd.f32 -1.0, %v492_v40 }
 0x10a   :  { %v494_v42 = vpop.eup %493 }
 0x10b   :  { %v385_v43 = vadd.f32 -1.0, %v494_v42  ;;  %v272_v44 = vsel %vm262_vm1, %v260_v32, %v384_v41 }
 0x10d   :  { %v273_v45 = vsel %vm263_vm2, %v261_v36, %v385_v43 }
 0x10e   :  { %v274_v46 = vpack.c.bf16 %v273_v45, %v272_v44 }
 0x110   :  { %464 = vmatmul.mubr.msk.bf16.vlgmr.msra.gmra.mrb[4].mxu0 %vm314_vm3, %v274_v46 }
 0x1e3   :  { %v352_v48 = vpop.f32.mrb[4].mxu0 }
 0x1e4   :  { %v353_v49 = vadd.f32 %v386_v47, %v352_v48  ;;  %v465_v50 = vpop.f32.mrb[5].mxu0 }
 0x1e5   :  { %v355_v51 = vpop.f32.mrb[6].mxu0 }
 0x1e6   :  { %359 = vst [vmem:[%s648_s7] sm:$0xff] %v353_v49  ;;  %v356_v52 = vadd.f32 %v386_v47, %v355_v51  ;;  %v466_v53 = vpop.f32.mrb[7].mxu0 }
 0x1e8   :  { %360 = vst [vmem:[%s648_s7 + $0x8] sm:$0xff] %v356_v52 }

// kernel: blstm_forward.2
= control target key start
LH: loop header
LB: loop body
LE: loop exit
PB: predicated region body
PF: predicated region fallthrough
CT: control target
= control target key end

     0   :  { %9 = vsyncpa [#allocation5], 0  ;;  %s3744_s0 = inlined_call_operand.vmem [shape: bf16[8,2,128], index: 0, kind: input, shape index: {}]   ;;  %s3745_s1 = inlined_call_operand.hbm [shape: bf16[2,256,512], index: 1, kind: input, shape index: {}]   ;;  %s3746_s2 = inlined_call_operand.vmem [shape: f32[2,1,512], index: 2, kind: input, shape index: {}]   ;;  %s3747_s3 = inlined_call_operand.vmem [shape: s32[2,1], index: 3, kind: input, shape index: {}]   ;;  %s3748_s4 = inlined_call_operand.vmem [shape: bf16[2,8,2,128], index: 4, kind: output, shape index: {}]  }
   0x1   :  { %11 = vsyncpa [#allocation5 + $0x1], 0  ;;  %s2502_s15 = smov 0   ;;  %s2504_s16 = smov 0  }
   0x2   :  { %s2506_s17 = smov 0   ;;  %s2508_s18 = smov 0  }
   0x3   :  { %s2510_s19 = smov 0   ;;  %s2512_s20 = smov 0  }
   0x4 LB: > { %s1934_s21 = sadd.s32 4294967295, %s2470_s20   ;;  %s29_s22 = sadd.s32 1, %s2466_s19  ;;  %s2470_s20 = sphi %s2512_s20, %s17_s20   ;;  %s2466_s19 = sphi %s2510_s19, %s4017_s19   ;;  %s2462_s18 = sphi %s2508_s18, %s4016_s18   ;;  %s2458_s17 = sphi %s2506_s17, %s4015_s17   ;;  %s2454_s16 = sphi %s2504_s16, %s4014_s16   ;;  %s2450_s15 = sphi %s2502_s15, %s4013_s15  }
   0x5   : > { %p31_p0 = scmp.ge.s32.totalorder %s29_s22, 2  ;;  %s72_s23 = sadd.s32 1, %s2458_s17 }
   0x6   : > { %p79_p1 = scmp.ne.s32.totalorder %s2458_s17, %s2454_s16  ;;  %p80_p2 = scmp.eq.s32.totalorder %s2470_s20, 0 }
   0x7   : > { %s4019_s22 = smov (%p31_p0, %s29_s22), 0  ;;  %p85_p4 = scmp.ne.s32.totalorder %s2454_s16, %s2450_s15 }
   0x8   : > { %p2538_p3 = por %p80_p2, %p79_p1  ;;  %s69_s25 = ssub.s32 %s2466_s19, %s4019_s22 }
   0x9   : > { %p86_p5 = scmp.eq.s32.totalorder %s1934_s21, 0  ;;  %p70_p6 = scmp.eq.s32.totalorder %s69_s25, 0 }
   0xa   : > { %p2047_p8 = scmp.lt.s32.totalorder %s2470_s20, 2  ;;  %s215_s28 = sand.u32 1, %s2458_s17  }
   0xb   : > { %p2545_p7 = por %p86_p5, %p85_p4  ;;  %s2040_s29 = sshll.u32 %s2466_s19, 13 }
   0xc   : > { %s2551_s27 = scalar_select %p70_p6, %s2458_s17, %s72_s23  }
   0xd   : > { %s1939_s30 = sshll.u32 %s215_s28, 9  ;;  %s2558_s7 = scalar_lea.hbm %s3745_s1, %s2040_s29 }
   0xe   : > { %s219_s8 = scalar_lea.vmem [#allocation4], %s1939_s30  ;;  %p2562_p9 = pnand %p2047_p8, %p2538_p3 }
   0xf   : > { %s226_s9 = sshll.u32 %s219_s8, 4  ;;  %s2568_s11 = scalar_lea.sflag [#allocation5], %s215_s28  ;;  %s2566_s9 = int_to_ptr.vmem [resolvable:$true] %s226_s9 }
  0x10   : > { %s2390_s12 = scalar_lea.hbm %s2558_s7, 8192  ;;  %p2392_p11 = pneg %p2562_p9 }
  0x11   : > { %p2391_p10 = scmp.ne.s32.totalorder %s2558_s7, %s2390_s12  ;;  %s2395_s15 = scalar_lea.hbm %s3745_s1, 16384 }
  0x12   : > { %p2396_p0 = scmp.lt.u32.totalorder %s2558_s7, %s3745_s1  ;;  %p2397_p1 = scmp.lt.u32.totalorder %s2395_s15, %s2390_s12 }
  0x13   : > { %p2393_p12 = pnand %p2392_p11, %p2391_p10  ;;  %p2399_p3 = scmp.lt.u32.totalorder %s2390_s12, %s2558_s7 }
  0x14   : > { %p2398_p2 = por %p2397_p1, %p2396_p0 }
  0x15   : > { %p2394_p13 = pneg %p2393_p12 }
  0x16   : > { %p2400_p4 = por %p2399_p3, %p2398_p2 }
  0x18   : > { %p2401_p5 = pnand %p2400_p4, %p2394_p13 }
  0x1a   : > { %2404 = shalt.err (!%p2401_p5)
}
  0x1b   : > { %s2405_s24 = scalar_lea.vmem %s2566_s9, 8192  ;;  %s2472_s25 = smov [#allocation4]  }
  0x1c   : > { %p2406_p6 = scmp.ne.s32.totalorder %s2566_s9, %s2405_s24  ;;  %s2410_s28 = sshll.u32 %s2472_s25, 4  ;;  %s2411_s28 = int_to_ptr.vmem [resolvable:$false] %s2410_s28 }
  0x1d   : > { %s2412_s29 = scalar_lea.vmem %s2411_s28, 16384  ;;  %p2413_p12 = scmp.lt.s32.totalorder %s2566_s9, %s2411_s28 }
  0x1e   : > { %p2408_p8 = pnand %p2406_p6, %p2392_p11  ;;  %p2414_p0 = scmp.lt.s32.totalorder %s2412_s29, %s2405_s24 }
  0x20   : > { %p2409_p10 = pneg %p2408_p8  ;;  %p2415_p1 = por %p2414_p0, %p2413_p12 }
  0x22   : > { %p2416_p2 = pnand %p2415_p1, %p2409_p10 }
  0x24   : > { %2419 = shalt.err (!%p2416_p2)
}
  0x25   : > { %s2473_s30 = smov 256   ;;  %s2474_s5 = smov 16  }
  0x26   : > { %2046 = dma.hbm_to_vmem [thread:$0]  (!%p2562_p9), %s2558_s7, 8192, %s2566_s9, %s2568_s11, %s2473_s30, %s2473_s30, %s2474_s5  }
  0x27   : > { %p1942_p11 = scmp.ge.s32.totalorder %s2470_s20, 1  ;;  %p241_p13 = scmp.lt.s32.totalorder %s2470_s20, 3 }
  0x29   : > { %p242_p3 = pnand %p1942_p11, %p241_p13 }
  0x2b   : > { %245 = sbr.rel (%p242_p3) target bundleno = 2216 (0x8a8), region = 36 }
  0x32   : > { %s247_s6 = sand.u32 1, %s2454_s16  }
  0x33   : > { %s1943_s8 = sshll.u32 %s247_s6, 9  ;;  %s248_s12 = scalar_lea.sflag [#allocation5], %s247_s6 }
  0x34   : > { %s2599_s13 = scalar_lea.vmem [#allocation4], %s1943_s8 }
  0x35   : > { %2445 = dma.done.wait (%p2545_p7), %s248_s12, 8192  }
  0x36   : > { %2447 = vsyncadd (%p2545_p7), %s248_s12, 4294959104  ;;  %v2475_v0 = vmov 0.0   ;;  %v3751_v1 = vmov 0   ;;  %v2608_v2 = vld [vmem:[%s2599_s13 + $0x4] ss:$16 sps:$4 sm:$0xff]   ;;  %s880_s26 = smul.u32 6, %s2462_s18 }
  0x37   : > { %339 = vst [vmem:[#allocation2] sm:$0x3] %v2475_v0  ;;  %340 = vst [vmem:[#allocation3] sm:$0x3] %v2475_v0  ;;  %2100 = vset.pattern.permute.xlu0 %v3751_v1  ;;  %2101 = vset.pattern.permute.xlu1 %v3751_v1  ;;  %v2611_v3 = vld [vmem:[%s2599_s13] ss:$16 sps:$4 sm:$0xff]  }
  0x38   : > { %3859 = vst [vmem:[#allocation7_spill] sm:$0xff] %v2608_v2  ;;  %760 = vmatprep.subr.bf16.mxu0 %v2608_v2  ;;  %v2615_v4 = vld [vmem:[%s2599_s13 + $0x24] ss:$16 sps:$4 sm:$0xff]   ;;  %v2619_v5 = vld [vmem:[%s2599_s13 + $0x20] ss:$16 sps:$4 sm:$0xff]   ;;  %s2756_s7 = ssub.s32 1, %s2462_s18 }
  0x39   : > { %761 = vmatpush1.bf16.msra.mxu0 %v2611_v3  ;;  %v2623_v6 = vld [vmem:[%s2599_s13 + $0x44] ss:$16 sps:$4 sm:$0xff]   ;;  %v2626_v7 = vld [vmem:[%s2599_s13 + $0xc] ss:$16 sps:$4 sm:$0xff]   ;;  %v2629_v8 = vld [vmem:[%s2599_s13 + $0x8] ss:$16 sps:$4 sm:$0xff]   ;;  %s2770_s9 = sadd.s32 %s880_s26, %s2756_s7 }
  0x3a   : > { %762 = vmatprep.subr.bf16.mxu0 %v2615_v4  ;;  %3860 = vst [vmem:[#allocation8_spill] sm:$0xff] %v2626_v7  ;;  %v2633_v9 = vld [vmem:[%s2599_s13 + $0x40] ss:$16 sps:$4 sm:$0xff]   ;;  %801 = vmatprep.subr.bf16.mxu1 %v2626_v7  ;;  %v2638_v10 = vld [vmem:[%s2599_s13 + $0x64] ss:$16 sps:$4 sm:$0xff]   ;;  %s1258_s10 = smul.u32 3, %s2462_s18  ;;  %v992_v49 = vstv %s2770_s9  ;;  %s882_s29 = scalar_lea.vmem %s3744_s0, %s2770_s9 }
  0x3b   : > { %802 = vmatpush1.bf16.msra.mxu1 %v2629_v8  ;;  %v2642_v11 = vld [vmem:[%s2599_s13 + $0x2c] ss:$16 sps:$4 sm:$0xff]   ;;  %v2645_v12 = vld [vmem:[%s2599_s13 + $0x28] ss:$16 sps:$4 sm:$0xff]   ;;  %v2650_v13 = vld [vmem:[%s2599_s13 + $0x60] ss:$16 sps:$4 sm:$0xff]  }
  0x3c   : > { %803 = vmatprep.subr.bf16.mxu1 %v2642_v11  ;;  %v2653_v14 = vld [vmem:[%s2599_s13 + $0x84] ss:$16 sps:$4 sm:$0xff]   ;;  %v2656_v15 = vld [vmem:[%s2599_s13 + $0x4c] ss:$16 sps:$4 sm:$0xff]   ;;  %v2661_v16 = vld [vmem:[%s2599_s13 + $0x48] ss:$16 sps:$4 sm:$0xff]  }
  0x3d   : > { %763 = vmatpush1.bf16.msra.mxu0 %v2619_v5  ;;  %v2665_v17 = vld [vmem:[%s2599_s13 + $0x6c] ss:$16 sps:$4 sm:$0xff]   ;;  %v2669_v18 = vld [vmem:[%s2599_s13 + $0x80] ss:$16 sps:$4 sm:$0xff]   ;;  %v2673_v19 = vld [vmem:[%s2599_s13 + $0xa4] ss:$16 sps:$4 sm:$0xff]  }
  0x3e   : > { %764 = vmatprep.subr.bf16.mxu0 %v2623_v6  ;;  %v2677_v20 = vld [vmem:[%s2599_s13 + $0x68] ss:$16 sps:$4 sm:$0xff]   ;;  %v2681_v21 = vld [vmem:[%s2599_s13 + $0x8c] ss:$16 sps:$4 sm:$0xff]   ;;  %v2685_v22 = vld [vmem:[%s2599_s13 + $0xa0] ss:$16 sps:$4 sm:$0xff]  }
  0x3f   : > { %804 = vmatpush1.bf16.msra.mxu1 %v2645_v12  ;;  %v2688_v23 = vld [vmem:[%s2599_s13 + $0xc4] ss:$16 sps:$4 sm:$0xff]   ;;  %v2693_v24 = vld [vmem:[%s2599_s13 + $0x88] ss:$16 sps:$4 sm:$0xff]   ;;  %v2697_v25 = vld [vmem:[%s2599_s13 + $0xac] ss:$16 sps:$4 sm:$0xff]  }
  0x40   : > { %805 = vmatprep.subr.bf16.mxu1 %v2656_v15  ;;  %v2701_v26 = vld [vmem:[%s2599_s13 + $0xc0] ss:$16 sps:$4 sm:$0xff]   ;;  %v2705_v27 = vld [vmem:[%s2599_s13 + $0xe4] ss:$16 sps:$4 sm:$0xff]   ;;  %v2709_v28 = vld [vmem:[%s2599_s13 + $0xa8] ss:$16 sps:$4 sm:$0xff]  }
  0x41   : > { %765 = vmatpush1.bf16.msra.mxu0 %v2633_v9  ;;  %v2713_v29 = vld [vmem:[%s2599_s13 + $0xcc] ss:$16 sps:$4 sm:$0xff]   ;;  %v2717_v30 = vld [vmem:[%s2599_s13 + $0xe0] ss:$16 sps:$4 sm:$0xff]   ;;  %v2720_v31 = vld [vmem:[%s2599_s13 + $0x104] ss:$16 sps:$4 sm:$0xff]  }
  0x42   : > { %766 = vmatprep.subr.bf16.mxu0 %v2638_v10  ;;  %v2725_v32 = vld [vmem:[%s2599_s13 + $0xc8] ss:$16 sps:$4 sm:$0xff]   ;;  %v2729_v33 = vld [vmem:[%s2599_s13 + $0xec] ss:$16 sps:$4 sm:$0xff]   ;;  %v2733_v34 = vld [vmem:[%s2599_s13 + $0x100] ss:$16 sps:$4 sm:$0xff]  }
  0x43   : > { %806 = vmatpush1.bf16.msra.mxu1 %v2661_v16  ;;  %v2737_v35 = vld [vmem:[%s2599_s13 + $0x124] ss:$16 sps:$4 sm:$0xff]   ;;  %v2741_v36 = vld [vmem:[%s2599_s13 + $0xe8] ss:$16 sps:$4 sm:$0xff]   ;;  %v2745_v37 = vld [vmem:[%s2599_s13 + $0x10c] ss:$16 sps:$4 sm:$0xff]  }
  0x44   : > { %807 = vmatprep.subr.bf16.mxu1 %v2665_v17  ;;  %v2750_v38 = vld [vmem:[%s2599_s13 + $0x120] ss:$16 sps:$4 sm:$0xff]   ;;  %v2753_v39 = vld [vmem:[%s2599_s13 + $0x144] ss:$16 sps:$4 sm:$0xff]   ;;  %v2761_v40 = vld [vmem:[%s2599_s13 + $0x108] ss:$16 sps:$4 sm:$0xff]  }
  0x45   : > { %767 = vmatpush1.bf16.msra.mxu0 %v2650_v13  ;;  %v2765_v41 = vld [vmem:[%s2599_s13 + $0x12c] ss:$16 sps:$4 sm:$0xff]   ;;  %v2775_v43 = vld [vmem:[%s2599_s13 + $0x140] ss:$16 sps:$4 sm:$0xff]   ;;  %s2780_s11 = smul.u32 7, %s2462_s18  ;;  %s2024_s14 = sshll.u32 %s2756_s7, 2 }
  0x46   : > { %768 = vmatprep.subr.bf16.mxu0 %v2653_v14  ;;  %v2767_v42 = vld [vmem:[#allocation2] sm:$0x3]  ;;  %v2785_v45 = vld [vmem:[%s2599_s13 + $0x164] ss:$16 sps:$4 sm:$0xff]   ;;  %v2789_v46 = vld [vmem:[%s2599_s13 + $0x128] ss:$16 sps:$4 sm:$0xff]   ;;  %s2797_s15 = sadd.s32 %s2024_s14, %s1258_s10 }
  0x47   : > { %808 = vmatpush1.bf16.msra.mxu1 %v2677_v20  ;;  %3861 = vst [vmem:[#allocation9_spill] sm:$0xff] %v2767_v42  ;;  %v418_v44 = vpack.c.bf16 %v2767_v42, %v2767_v42  ;;  %3862 = vst [vmem:[#allocation10_spill] sm:$0xff] %v2785_v45  ;;  %v2793_v47 = vld [vmem:[%s2599_s13 + $0x14c] ss:$16 sps:$4 sm:$0xff]   ;;  %v867_v48 = vstv %s2780_s11  ;;  %s1509_s21 = smul.u32 6, %s2756_s7  ;;  %v1370_v56 = vstv %s2797_s15  ;;  %s416_s30 = scalar_lea.vmem %s3744_s0, %s2780_s11 }
  0x48   : > { %809 = vmatprep.subr.bf16.mxu1 %v2681_v21  ;;  %v2802_v50 = vld [vmem:[%s2599_s13 + $0x160] ss:$16 sps:$4 sm:$0xff]   ;;  %v2807_v51 = vld [vmem:[%s3747_s3] sm:$0x3]  ;;  %v2811_v52 = vld [vmem:[%s2599_s13 + $0x184] ss:$16 sps:$4 sm:$0xff]  }
  0x49   : > { %769 = vmatpush1.bf16.msra.mxu0 %v2669_v18  ;;  %792 = vmatprep.mubr.bf16.mxu0 %v418_v44  ;;  %3863 = vst [vmem:[#allocation11_spill] sm:$0xff] %v2802_v50  ;;  %3864 = vst [vmem:[#allocation12_spill] sm:$0xff] %v2807_v51  ;;  %v2815_v53 = vld [vmem:[%s2599_s13 + $0x148] ss:$16 sps:$4 sm:$0xff]   ;;  %vm868_vm0 = vcmp.gt.s32.totalorder %v2807_v51, %v867_v48  ;;  %vm993_vm1 = vcmp.gt.s32.totalorder %v2807_v51, %v992_v49  ;;  %v2821_v54 = vld [vmem:[%s2599_s13 + $0x16c] ss:$16 sps:$4 sm:$0xff]   ;;  %s2826_s25 = sadd.s32 %s2462_s18, %s1509_s21 }
  0x4a   : > { %770 = vmatprep.subr.bf16.mxu0 %v2673_v19  ;;  %833 = vmatprep.mubr.bf16.mxu1 %v418_v44  ;;  %3865 = vst [vmem:[#allocation13_spill] sm:$0xff] %v2811_v52  ;;  %3866 = vst [vmem:[#allocation14_spill] sm:$0xff] %v2815_v53  ;;  %v869_v55 = vsel %vm868_vm0, 1, %v3751_v1  ;;  %v2830_v57 = vld [vmem:[%s2599_s13 + $0x180] ss:$16 sps:$4 sm:$0xff]   ;;  %v994_v58 = vsel %vm993_vm1, 1, %v3751_v1  ;;  %vm1371_vm2 = vcmp.gt.s32.totalorder %v2807_v51, %v1370_v56  ;;  %v1621_v62 = vstv %s2826_s25 }
  0x4b   : > { %810 = vmatpush1.bf16.msra.mxu1 %v2693_v24  ;;  %3867 = vst [vmem:[#allocation15_spill] sm:$0xff] %v2821_v54  ;;  %871 = vperm.xlu0 %2100, %v869_v55   ;;  %3868 = vst [vmem:[#allocation16_spill] sm:$0xff] %v2830_v57  ;;  %v2835_v59 = vld [vmem:[%s2599_s13 + $0x1a4] ss:$16 sps:$4 sm:$0xff]   ;;  %v2839_v60 = vld [vmem:[%s2599_s13 + $0x168] ss:$16 sps:$4 sm:$0xff]   ;;  %vm1622_vm3 = vcmp.gt.s32.totalorder %v2807_v51, %v1621_v62 }
  0x4c   : > { %811 = vmatprep.subr.bf16.mxu1 %v2697_v25  ;;  %3869 = vst [vmem:[#allocation17_spill] sm:$0xff] %v2835_v59  ;;  %3870 = vst [vmem:[#allocation18_spill] sm:$0xff] %v2839_v60  ;;  %v2844_v61 = vld [vmem:[%s2599_s13 + $0x18c] ss:$16 sps:$4 sm:$0xff]   ;;  %v2849_v63 = vld [vmem:[%s2599_s13 + $0x1a0] ss:$16 sps:$4 sm:$0xff]  }
  0x4d   : > { %771 = vmatpush1.bf16.msra.mxu0 %v2685_v22  ;;  %3871 = vst [vmem:[#allocation19_spill] sm:$0xff] %v2844_v61  ;;  %3872 = vst [vmem:[#allocation20_spill] sm:$0xff] %v2849_v63  ;;  %v1372_v0 = vsel %vm1371_vm2, 1, %v3751_v1  ;;  %v2854_v44 = vld [vmem:[%s2599_s13 + $0x1c4] ss:$16 sps:$4 sm:$0xff]   ;;  %v1623_v56 = vsel %vm1622_vm3, 1, %v3751_v1 }
  0x4e   : > { %772 = vmatprep.subr.bf16.mxu0 %v2688_v23  ;;  %3873 = vst [vmem:[#allocation21_spill] sm:$0xff] %v2854_v44  ;;  %v2858_v48 = vld [vmem:[%s2599_s13 + $0x188] ss:$16 sps:$4 sm:$0xff]   ;;  %v2863_v49 = vld [vmem:[%s2599_s13 + $0x1ac] ss:$16 sps:$4 sm:$0xff]   ;;  %p312_p7 = scmp.lt.s32.totalorder %s2462_s18, 1 }
  0x4f   : > { %812 = vmatpush1.bf16.msra.mxu1 %v2709_v28  ;;  %996 = vperm.xlu0 %2100, %v994_v58   ;;  %3874 = vst [vmem:[#allocation22_spill] sm:$0xff] %v2858_v48  ;;  %3875 = vst [vmem:[#allocation23_spill] sm:$0xff] %v2863_v49  ;;  %v2867_v55 = vld [vmem:[%s2599_s13 + $0x1c0] ss:$16 sps:$4 sm:$0xff]   ;;  %v2872_v58 = vld [vmem:[%s2599_s13 + $0x1e4] ss:$16 sps:$4 sm:$0xff]  }
  0x50   : > { %813 = vmatprep.subr.bf16.mxu1 %v2713_v29  ;;  %3876 = vst [vmem:[#allocation24_spill] sm:$0xff] %v2867_v55  ;;  %3877 = vst [vmem:[#allocation25_spill] sm:$0xff] %v2872_v58  ;;  %v2876_v62 = vld [vmem:[%s2599_s13 + $0x1a8] ss:$16 sps:$4 sm:$0xff]   ;;  %v2884_v51 = vld [vmem:[%s2599_s13 + $0x1e0] ss:$16 sps:$4 sm:$0xff]  }
  0x51   : > { %773 = vmatpush1.bf16.msra.mxu0 %v2701_v26  ;;  %3878 = vst [vmem:[#allocation26_spill] sm:$0xff] %v2876_v62  ;;  %3880 = vst [vmem:[#allocation28_spill] sm:$0xff] %v2884_v51  ;;  %v2893_v1 = vld [vmem:[%s2599_s13 + $0x1c8] ss:$16 sps:$4 sm:$0xff]   ;;  %v2897_v42 = vld [vmem:[%s2599_s13 + $0x1ec] ss:$16 sps:$4 sm:$0xff]  }
  0x52   : > { %774 = vmatprep.subr.bf16.mxu0 %v2705_v27  ;;  %3881 = vst [vmem:[#allocation29_spill] sm:$0xff] %v2893_v1  ;;  %3882 = vst [vmem:[#allocation30_spill] sm:$0xff] %v2897_v42  ;;  %s2974_s5 = scalar_select %p312_p7, %s2462_s18, 1 }
  0x53   : > { %814 = vmatpush1.bf16.msra.mxu1 %v2725_v32  ;;  %1374 = vperm.xlu0 %2100, %v1372_v0   ;;  %v2880_v0 = vld [vmem:[%s2599_s13 + $0x1cc] ss:$16 sps:$4 sm:$0xff]   ;;  %s1131_s8 = smul.u32 3, %s2756_s7  ;;  %s2020_s12 = sshll.u32 %s2462_s18, 2 }
  0x54   : > { %815 = vmatprep.subr.bf16.mxu1 %v2729_v33  ;;  %3879 = vst [vmem:[#allocation27_spill] sm:$0xff] %v2880_v0  ;;  %s1944_s6 = sshll.u32 %s2974_s5, 2  ;;  %s1945_s10 = sshll.u32 %s2974_s5, 3 }
  0x55   : > { %775 = vmatpush1.bf16.msra.mxu0 %v2717_v30  ;;  %s315_s26 = scalar_lea.vmem %s3746_s2, %s1944_s6  ;;  %s2998_s23 = scalar_lea.vmem %s3748_s4, %s1945_s10 }
  0x56   : > { %776 = vmatprep.subr.bf16.mxu0 %v2720_v31  ;;  %s2016_s5 = sshll.u32 %s2756_s7, 1  ;;  %s3085_s10 = sadd.s32 %s2020_s12, %s1131_s8 }
  0x57   : > { %816 = vmatpush1.bf16.msra.mxu1 %v2741_v36  ;;  %1625 = vperm.xlu0 %2100, %v1623_v56   ;;  %v417_v56 = vld [vmem:[%s416_s30] sm:$0x1]  ;;  %s878_s30 = scalar_lea.vmem %s2998_s23, %s2780_s11  ;;  %s1006_s11 = smul.u32 5, %s2462_s18 }
  0x58   : > { %817 = vmatprep.subr.bf16.mxu1 %v2745_v37  ;;  %s2028_s14 = sshll.u32 %s2462_s18, 1  ;;  %s3094_s24 = smul.u32 7, %s2756_s7 }
  0x59   : > { %777 = vmatpush1.bf16.msra.mxu0 %v2733_v34  ;;  %s3077_s6 = sadd.s32 %s2016_s5, %s1006_s11  ;;  %s1134_s11 = scalar_lea.vmem %s3744_s0, %s3085_s10 }
  0x5a   : > { %778 = vmatprep.subr.bf16.mxu0 %v2737_v35  ;;  %s1008_s28 = scalar_lea.vmem %s3744_s0, %s3077_s6  ;;  %s1129_s5 = scalar_lea.vmem %s2998_s23, %s3077_s6 }
  0x5b   : > { %818 = vmatpush1.bf16.msra.mxu1 %v2761_v40  ;;  %s1260_s12 = scalar_lea.vmem %s3744_s0, %s2797_s15  ;;  %s1381_s18 = scalar_lea.vmem %s2998_s23, %s2797_s15 }
  0x5c   : > { %819 = vmatprep.subr.bf16.mxu1 %v2765_v41 }
  0x5d   : > { %779 = vmatpush1.bf16.msra.mxu0 %v2750_v38 }
  0x5e   : > { %780 = vmatprep.subr.bf16.mxu0 %v2753_v39 }
  0x5f   : > { %820 = vmatpush1.bf16.msra.mxu1 %v2789_v46 }
  0x60   : > { %821 = vmatprep.subr.bf16.mxu1 %v2793_v47 }
  0x61   : > { %781 = vmatpush1.bf16.msra.mxu0 %v2775_v43 }
  0x62   : > { %782 = vmatprep.subr.bf16.mxu0 %v2785_v45 }
  0x63   : > { %822 = vmatpush1.bf16.msra.mxu1 %v2815_v53 }
  0x64   : > { %823 = vmatprep.subr.bf16.mxu1 %v2821_v54 }
  0x65   : > { %783 = vmatpush1.bf16.msra.mxu0 %v2802_v50 }
  0x66   : > { %784 = vmatprep.subr.bf16.mxu0 %v2811_v52 }
  0x67   : > { %824 = vmatpush1.bf16.msra.mxu1 %v2839_v60 }
  0x68   : > { %825 = vmatprep.subr.bf16.mxu1 %v2844_v61 }
  0x69   : > { %785 = vmatpush1.bf16.msra.mxu0 %v2830_v57 }
  0x6a   : > { %786 = vmatprep.subr.bf16.mxu0 %v2835_v59 }
  0x6b   : > { %826 = vmatpush1.bf16.msra.mxu1 %v2858_v48 }
  0x6c   : > { %827 = vmatprep.subr.bf16.mxu1 %v2863_v49 }
  0x6d   : > { %787 = vmatpush1.bf16.msra.mxu0 %v2849_v63 }
  0x6e   : > { %788 = vmatprep.subr.bf16.mxu0 %v2854_v44 }
  0x6f   : > { %828 = vmatpush1.bf16.msra.mxu1 %v2876_v62 }
  0x70   : > { %829 = vmatprep.subr.bf16.mxu1 %v2880_v0 }
  0x71   : > { %789 = vmatpush1.bf16.msra.mxu0 %v2867_v55  ;;  %v2902_v55 = vld [vmem:[%s2599_s13 + $0x1e8] ss:$16 sps:$4 sm:$0xff]  }
  0x72   : > { %790 = vmatprep.subr.bf16.mxu0 %v2872_v58  ;;  %3883 = vst [vmem:[#allocation31_spill] sm:$0xff] %v2902_v55 }
  0x73   : > { %830 = vmatpush1.bf16.msra.mxu1 %v2893_v1 }
  0x74   : > { %831 = vmatprep.subr.bf16.mxu1 %v2897_v42 }
  0x75   : > { %791 = vmatpush1.bf16.msra.mxu0 %v2884_v51 }
  0x76   : > { %885 = vmatprep.subr.bf16.mxu0 %v2608_v2 }
  0x77   : > { %832 = vmatpush1.bf16.msra.mxu1 %v2902_v55 }
  0x78   : > { %793 = vmatmul.mubr.bf16.vlgmr.msra.gmra.mrb[0].mxu0 %v417_v56  ;;  %926 = vmatprep.subr.bf16.mxu1 %v2626_v7 }
  0x79   : > { %886 = vmatpush1.bf16.msra.mxu0 %v2611_v3 }
  0x7a   : > { %887 = vmatprep.subr.bf16.mxu0 %v2615_v4  ;;  %834 = vmatmul.mubr.bf16.vlgmr.msra.gmra.mrb[0].mxu1 %v417_v56  ;;  %v3884_v56 = vld [vmem:[#allocation24_spill] sm:$0xff] }
  0x7b   : > { %927 = vmatpush1.bf16.msra.mxu1 %v2629_v8 }
  0x7c   : > { %928 = vmatprep.subr.bf16.mxu1 %v2642_v11 }
  0x7d   : > { %888 = vmatpush1.bf16.msra.mxu0 %v2619_v5 }
  0x7e   : > { %889 = vmatprep.subr.bf16.mxu0 %v2623_v6 }
  0x7f   : > { %929 = vmatpush1.bf16.msra.mxu1 %v2645_v12 }
  0x80   : > { %930 = vmatprep.subr.bf16.mxu1 %v2656_v15 }
  0x81   : > { %890 = vmatpush1.bf16.msra.mxu0 %v2633_v9 }
  0x82   : > { %891 = vmatprep.subr.bf16.mxu0 %v2638_v10 }
  0x83   : > { %931 = vmatpush1.bf16.msra.mxu1 %v2661_v16 }
  0x84   : > { %932 = vmatprep.subr.bf16.mxu1 %v2665_v17 }
  0x85   : > { %892 = vmatpush1.bf16.msra.mxu0 %v2650_v13 }
  0x86   : > { %893 = vmatprep.subr.bf16.mxu0 %v2653_v14 }
  0x87   : > { %933 = vmatpush1.bf16.msra.mxu1 %v2677_v20 }
  0x88   : > { %934 = vmatprep.subr.bf16.mxu1 %v2681_v21 }
  0x89   : > { %894 = vmatpush1.bf16.msra.mxu0 %v2669_v18 }
  0x8a   : > { %895 = vmatprep.subr.bf16.mxu0 %v2673_v19 }
  0x8b   : > { %935 = vmatpush1.bf16.msra.mxu1 %v2693_v24 }
  0x8c   : > { %936 = vmatprep.subr.bf16.mxu1 %v2697_v25 }
  0x8d   : > { %896 = vmatpush1.bf16.msra.mxu0 %v2685_v22 }
  0x8e   : > { %897 = vmatprep.subr.bf16.mxu0 %v2688_v23 }
  0x8f   : > { %937 = vmatpush1.bf16.msra.mxu1 %v2709_v28 }
  0x90   : > { %938 = vmatprep.subr.bf16.mxu1 %v2713_v29 }
  0x91   : > { %898 = vmatpush1.bf16.msra.mxu0 %v2701_v26 }
  0x92   : > { %899 = vmatprep.subr.bf16.mxu0 %v2705_v27 }
  0x93   : > { %939 = vmatpush1.bf16.msra.mxu1 %v2725_v32 }
  0x94   : > { %940 = vmatprep.subr.bf16.mxu1 %v2729_v33 }
  0x95   : > { %900 = vmatpush1.bf16.msra.mxu0 %v2717_v30 }
  0x96   : > { %901 = vmatprep.subr.bf16.mxu0 %v2720_v31 }
  0x97   : > { %941 = vmatpush1.bf16.msra.mxu1 %v2741_v36 }
  0x98   : > { %942 = vmatprep.subr.bf16.mxu1 %v2745_v37 }
  0x99   : > { %902 = vmatpush1.bf16.msra.mxu0 %v2733_v34 }
  0x9a   : > { %903 = vmatprep.subr.bf16.mxu0 %v2737_v35 }
  0x9b   : > { %943 = vmatpush1.bf16.msra.mxu1 %v2761_v40 }
  0x9c   : > { %944 = vmatprep.subr.bf16.mxu1 %v2765_v41 }
  0x9d   : > { %904 = vmatpush1.bf16.msra.mxu0 %v2750_v38 }
  0x9e   : > { %905 = vmatprep.subr.bf16.mxu0 %v2753_v39 }
  0x9f   : > { %945 = vmatpush1.bf16.msra.mxu1 %v2789_v46 }
  0xa0   : > { %946 = vmatprep.subr.bf16.mxu1 %v2793_v47 }
  0xa1   : > { %906 = vmatpush1.bf16.msra.mxu0 %v2775_v43 }
  0xa2   : > { %907 = vmatprep.subr.bf16.mxu0 %v2785_v45 }
  0xa3   : > { %947 = vmatpush1.bf16.msra.mxu1 %v2815_v53 }
  0xa4   : > { %948 = vmatprep.subr.bf16.mxu1 %v2821_v54 }
  0xa5   : > { %908 = vmatpush1.bf16.msra.mxu0 %v2802_v50 }
  0xa6   : > { %909 = vmatprep.subr.bf16.mxu0 %v2811_v52 }
  0xa7   : > { %949 = vmatpush1.bf16.msra.mxu1 %v2839_v60 }
  0xa8   : > { %950 = vmatprep.subr.bf16.mxu1 %v2844_v61 }
  0xa9   : > { %910 = vmatpush1.bf16.msra.mxu0 %v2830_v57 }
  0xaa   : > { %911 = vmatprep.subr.bf16.mxu0 %v2835_v59 }
  0xab   : > { %951 = vmatpush1.bf16.msra.mxu1 %v2858_v48 }
  0xac   : > { %952 = vmatprep.subr.bf16.mxu1 %v2863_v49 }
  0xad   : > { %912 = vmatpush1.bf16.msra.mxu0 %v2849_v63 }
  0xae   : > { %913 = vmatprep.subr.bf16.mxu0 %v2854_v44 }
  0xaf   : > { %953 = vmatpush1.bf16.msra.mxu1 %v2876_v62 }
  0xb0   : > { %954 = vmatprep.subr.bf16.mxu1 %v2880_v0 }
  0xb1   : > { %914 = vmatpush1.bf16.msra.mxu0 %v3884_v56 }
  0xb2   : > { %915 = vmatprep.subr.bf16.mxu0 %v2872_v58  ;;  %v420_v58 = vlaneseq }
  0xb3   : > { %955 = vmatpush1.bf16.msra.mxu1 %v2893_v1  ;;  %v405_v1 = vld [vmem:[%s315_s26] sm:$0xf]  ;;  %s1383_s26 = smul.u32 5, %s2756_s7 }
  0xb4   : > { %956 = vmatprep.subr.bf16.mxu1 %v2897_v42  ;;  %v421_v56 = vshrl.u32 %v420_v58, 7 }
  0xb5   : > { %916 = vmatpush1.bf16.msra.mxu0 %v2884_v51  ;;  %s3089_s21 = sadd.s32 %s2028_s14, %s1383_s26  ;;  %s1255_s26 = scalar_lea.vmem %s2998_s23, %s3085_s10 }
  0xb6   : > { %1011 = vmatprep.subr.bf16.mxu0 %v2608_v2  ;;  %v422_v51 = vsub.s32 0, %v421_v56  ;;  %v426_v2 = vsub.s32 1, %v421_v56  ;;  %v430_v61 = vsub.s32 2, %v421_v56  ;;  %s1386_s14 = scalar_lea.vmem %s3744_s0, %s3089_s21 }
  0xb7   : > { %957 = vmatpush1.bf16.msra.mxu1 %v2902_v55  ;;  %v434_v55 = vsub.s32 3, %v421_v56  ;;  %v414_v56 = vld [vmem:[#allocation3] sm:$0x3] }
  0xb8   : > { %1052 = vmatprep.subr.bf16.mxu1 %v2626_v7  ;;  %v2980_v0 = vrot.slane %v405_v1, %v422_v51  ;;  %v2982_v42 = vrot.slane %v405_v1, %v426_v2  ;;  %v2989_v50 = vrot.slane %v405_v1, %v430_v61 }
  0xb9   : > { %v2986_v48 = vrot.slane %v405_v1, %v434_v55 }
  0xba   : > { %3885 = vst [vmem:[#allocation32_spill] sm:$0xff] %v2980_v0 }
 0x14b   : > { %v794_v7 = vpop.f32.mrb[0].mxu0 }
 0x14c   : > { %v795_v44 = vadd.f32 %v794_v7, %v2980_v0  ;;  %v796_v62 = vpop.f32.mrb[1].mxu0 }
 0x14d   : > { %v797_v63 = vadd.f32 %v796_v62, %v2982_v42  ;;  %v798_v49 = vpop.f32.mrb[2].mxu0  ;;  %v835_v52 = vpop.f32.mrb[0].mxu1 }
 0x14e   : > { %v2010_v58 = vmul.f32 -1.442695, %v795_v44  ;;  %v799_v59 = vpop.f32.mrb[3].mxu0  ;;  %v837_v51 = vpop.f32.mrb[1].mxu1  ;;  %v836_v62 = vadd.f32 %v835_v52, %v2989_v50 }
 0x14f   : > { %v2011_v57 = vmul.f32 -1.442695, %v797_v63  ;;  %v838_v2 = vadd.f32 %v837_v51, %v2986_v48  ;;  %v839_v60 = vpop.f32.mrb[2].mxu1 }
 0x150   : > { %2198 = vpow2.f32 %v2010_v58  ;;  %v840_v7 = vpop.f32.mrb[3].mxu1  ;;  %v872_v60 = vpop.permute.xlu0 %871 }
 0x151   : > { %2200 = vpow2.f32 %v2011_v57  ;;  %v2012_v0 = vmul.f32 -1.442695, %v838_v2  ;;  %vm873_vm4 = vcmp.eq.s32.totalorder %v872_v60, 1  ;;  %v3889_v60 = vld [vmem:[#allocation13_spill] sm:$0xff] }
 0x153   : > { %2202 = vpow2.f32 %v2012_v0 }
 0x154   : > { %2204 = vtanh.f32 %v836_v62 }
 0x15a   : > { %v2199_v49 = vpop.eup %2198 }
 0x15b   : > { %v2201_v59 = vpop.eup %2200  ;;  %v845_v44 = vadd.f32 1.0, %v2199_v49 }
 0x15c   : > { %v851_v63 = vadd.f32 1.0, %v2201_v59  ;;  %v3886_v59 = vld [vmem:[#allocation9_spill] sm:$0xff] }
 0x15d   : > { %2206 = vrcp.f32 %v845_v44  ;;  %v2203_v57 = vpop.eup %2202 }
 0x15e   : > { %2208 = vrcp.f32 %v851_v63  ;;  %v2205_v55 = vpop.eup %2204  ;;  %v858_v1 = vadd.f32 1.0, %v2203_v57 }
 0x160   : > { %2210 = vrcp.f32 %v858_v1  ;;  %v3888_v1 = vld [vmem:[#allocation18_spill] sm:$0xff] }
 0x167   : > { %v2207_v58 = vpop.eup %2206 }
 0x168   : > { %v2209_v61 = vpop.eup %2208  ;;  %v862_v51 = vmul.f32 %v2207_v58, %v2205_v55  ;;  %v3887_v58 = vld [vmem:[#allocation11_spill] sm:$0xff] }
 0x169   : > { %v861_v52 = vmul.f32 %v2209_v61, %v414_v56  ;;  %v3890_v61 = vld [vmem:[#allocation19_spill] sm:$0xff] }
 0x16a   : > { %v2211_v7 = vpop.eup %2210 }
 0x16b   : > { %v863_v0 = vadd.f32 %v862_v51, %v861_v52  ;;  %v3891_v51 = vld [vmem:[#allocation16_spill] sm:$0xff]  ;;  %v3892_v52 = vld [vmem:[#allocation22_spill] sm:$0xff] }
 0x16d   : > { %2212 = vtanh.f32 %v863_v0  ;;  %v2992_v2 = vsel %vm873_vm4, %v863_v0, %v414_v56  ;;  %v883_v56 = vld [vmem:[%s882_s29] sm:$0x1]  ;;  %v3893_v0 = vld [vmem:[#allocation17_spill] sm:$0xff]  ;;  %s1003_s29 = scalar_lea.vmem %s2998_s23, %s2770_s9 }
 0x177   : > { %v2213_v62 = vpop.eup %2212 }
 0x178   : > { %v865_v49 = vmul.f32 %v2213_v62, %v2211_v7  ;;  %v3894_v7 = vld [vmem:[#allocation23_spill] sm:$0xff]  ;;  %v3895_v62 = vld [vmem:[#allocation20_spill] sm:$0xff] }
 0x17a   : > { %v3007_v44 = vsel %vm873_vm4, %v865_v49, %v3886_v59  ;;  %v876_v63 = vsel %vm873_vm4, %v865_v49, 0.0  ;;  %v3896_v49 = vld [vmem:[#allocation26_spill] sm:$0xff]  ;;  %v3897_v59 = vld [vmem:[#allocation21_spill] sm:$0xff] }
 0x17b   : > { %v877_v57 = vpack.c.bf16 %v876_v63, %v876_v63  ;;  %v884_v55 = vpack.c.bf16 %v3007_v44, %v3007_v44  ;;  %v3898_v63 = vld [vmem:[#allocation27_spill] sm:$0xff] }
 0x17d   : > { %879 = vst [vmem:[%s878_s30] sm:$0x1] %v877_v57  ;;  %917 = vmatprep.mubr.bf16.mxu0 %v884_v55  ;;  %958 = vmatprep.mubr.bf16.mxu1 %v884_v55  ;;  %v3899_v57 = vld [vmem:[#allocation24_spill] sm:$0xff]  ;;  %v3900_v55 = vld [vmem:[#allocation29_spill] sm:$0xff]  ;;  %s1635_s30 = scalar_lea.vmem %s3744_s0, %s3094_s24 }
 0x17e   : > { %918 = vmatmul.mubr.bf16.vlgmr.msra.gmra.mrb[4].mxu0 %v883_v56  ;;  %959 = vmatmul.mubr.bf16.vlgmr.msra.gmra.mrb[4].mxu1 %v883_v56  ;;  %v3901_v56 = vld [vmem:[#allocation25_spill] sm:$0xff] }
 0x17f   : > { %1012 = vmatpush1.bf16.msra.mxu0 %v2611_v3  ;;  %1053 = vmatpush1.bf16.msra.mxu1 %v2629_v8 }
 0x180   : > { %1013 = vmatprep.subr.bf16.mxu0 %v2615_v4  ;;  %1054 = vmatprep.subr.bf16.mxu1 %v2642_v11 }
 0x183   : > { %1014 = vmatpush1.bf16.msra.mxu0 %v2619_v5  ;;  %1055 = vmatpush1.bf16.msra.mxu1 %v2645_v12 }
 0x184   : > { %1015 = vmatprep.subr.bf16.mxu0 %v2623_v6  ;;  %1056 = vmatprep.subr.bf16.mxu1 %v2656_v15 }
 0x187   : > { %1016 = vmatpush1.bf16.msra.mxu0 %v2633_v9  ;;  %1057 = vmatpush1.bf16.msra.mxu1 %v2661_v16 }
 0x188   : > { %1017 = vmatprep.subr.bf16.mxu0 %v2638_v10  ;;  %1058 = vmatprep.subr.bf16.mxu1 %v2665_v17 }
 0x18b   : > { %1018 = vmatpush1.bf16.msra.mxu0 %v2650_v13  ;;  %1059 = vmatpush1.bf16.msra.mxu1 %v2677_v20 }
 0x18c   : > { %1019 = vmatprep.subr.bf16.mxu0 %v2653_v14  ;;  %1060 = vmatprep.subr.bf16.mxu1 %v2681_v21 }
 0x18f   : > { %1020 = vmatpush1.bf16.msra.mxu0 %v2669_v18  ;;  %1061 = vmatpush1.bf16.msra.mxu1 %v2693_v24 }
 0x190   : > { %1021 = vmatprep.subr.bf16.mxu0 %v2673_v19  ;;  %1062 = vmatprep.subr.bf16.mxu1 %v2697_v25 }
 0x193   : > { %1022 = vmatpush1.bf16.msra.mxu0 %v2685_v22  ;;  %1063 = vmatpush1.bf16.msra.mxu1 %v2709_v28 }
 0x194   : > { %1023 = vmatprep.subr.bf16.mxu0 %v2688_v23  ;;  %1064 = vmatprep.subr.bf16.mxu1 %v2713_v29 }
 0x197   : > { %1024 = vmatpush1.bf16.msra.mxu0 %v2701_v26  ;;  %1065 = vmatpush1.bf16.msra.mxu1 %v2725_v32 }
 0x198   : > { %1025 = vmatprep.subr.bf16.mxu0 %v2705_v27  ;;  %1066 = vmatprep.subr.bf16.mxu1 %v2729_v33 }
 0x19b   : > { %1026 = vmatpush1.bf16.msra.mxu0 %v2717_v30  ;;  %1067 = vmatpush1.bf16.msra.mxu1 %v2741_v36 }
 0x19c   : > { %1027 = vmatprep.subr.bf16.mxu0 %v2720_v31  ;;  %1068 = vmatprep.subr.bf16.mxu1 %v2745_v37 }
 0x19f   : > { %1028 = vmatpush1.bf16.msra.mxu0 %v2733_v34  ;;  %1069 = vmatpush1.bf16.msra.mxu1 %v2761_v40 }
 0x1a0   : > { %1029 = vmatprep.subr.bf16.mxu0 %v2737_v35  ;;  %1070 = vmatprep.subr.bf16.mxu1 %v2765_v41 }
 0x1a3   : > { %1030 = vmatpush1.bf16.msra.mxu0 %v2750_v38  ;;  %1071 = vmatpush1.bf16.msra.mxu1 %v2789_v46 }
 0x1a4   : > { %1031 = vmatprep.subr.bf16.mxu0 %v2753_v39  ;;  %1072 = vmatprep.subr.bf16.mxu1 %v2793_v47 }
 0x1a7   : > { %1032 = vmatpush1.bf16.msra.mxu0 %v2775_v43  ;;  %1073 = vmatpush1.bf16.msra.mxu1 %v2815_v53 }
 0x1a8   : > { %1033 = vmatprep.subr.bf16.mxu0 %v2785_v45  ;;  %1074 = vmatprep.subr.bf16.mxu1 %v2821_v54 }
 0x1ab   : > { %1034 = vmatpush1.bf16.msra.mxu0 %v3887_v58  ;;  %1075 = vmatpush1.bf16.msra.mxu1 %v3888_v1 }
 0x1ac   : > { %1035 = vmatprep.subr.bf16.mxu0 %v3889_v60  ;;  %1076 = vmatprep.subr.bf16.mxu1 %v3890_v61 }
 0x1af   : > { %1036 = vmatpush1.bf16.msra.mxu0 %v3891_v51  ;;  %1077 = vmatpush1.bf16.msra.mxu1 %v3892_v52  ;;  %v3909_v52 = vld [vmem:[#allocation32_spill] sm:$0xff] }
 0x1b0   : > { %1037 = vmatprep.subr.bf16.mxu0 %v3893_v0  ;;  %1078 = vmatprep.subr.bf16.mxu1 %v3894_v7  ;;  %v3902_v0 = vld [vmem:[#allocation30_spill] sm:$0xff]  ;;  %v3903_v7 = vld [vmem:[#allocation28_spill] sm:$0xff] }
 0x1b3   : > { %1038 = vmatpush1.bf16.msra.mxu0 %v3895_v62  ;;  %1079 = vmatpush1.bf16.msra.mxu1 %v3896_v49  ;;  %v3904_v62 = vld [vmem:[#allocation31_spill] sm:$0xff] }
 0x1b4   : > { %1039 = vmatprep.subr.bf16.mxu0 %v3897_v59  ;;  %1080 = vmatprep.subr.bf16.mxu1 %v3898_v63  ;;  %v3905_v49 = vld [vmem:[#allocation7_spill] sm:$0xff]  ;;  %v3906_v59 = vld [vmem:[#allocation8_spill] sm:$0xff] }
 0x1b7   : > { %1040 = vmatpush1.bf16.msra.mxu0 %v3899_v57  ;;  %1081 = vmatpush1.bf16.msra.mxu1 %v3900_v55  ;;  %v1118_v55 = vstv %s3077_s6 }
 0x1b8   : > { %1041 = vmatprep.subr.bf16.mxu0 %v3901_v56  ;;  %1082 = vmatprep.subr.bf16.mxu1 %v3902_v0  ;;  %v3907_v56 = vld [vmem:[#allocation12_spill] sm:$0xff]  ;;  %v3908_v0 = vmov 0  }
 0x1b9   : > { %vm1119_vm5 = vcmp.gt.s32.totalorder %v3907_v56, %v1118_v55 }
 0x1bb   : > { %1042 = vmatpush1.bf16.msra.mxu0 %v3903_v7  ;;  %1083 = vmatpush1.bf16.msra.mxu1 %v3904_v62  ;;  %v1120_v7 = vsel %vm1119_vm5, 1, %v3908_v0  ;;  %v1745_v62 = vstv %s3094_s24 }
 0x1bc   : > { %1137 = vmatprep.subr.bf16.mxu0 %v3905_v49  ;;  %1178 = vmatprep.subr.bf16.mxu1 %v3906_v59  ;;  %v1244_v49 = vstv %s3085_s10  ;;  %v1496_v59 = vstv %s3089_s21  ;;  %vm1746_vm8 = vcmp.gt.s32.totalorder %v3907_v56, %v1745_v62 }
 0x1bd   : > { %1122 = vperm.xlu1 %2101, %v1120_v7   ;;  %vm1245_vm6 = vcmp.gt.s32.totalorder %v3907_v56, %v1244_v49  ;;  %vm1497_vm7 = vcmp.gt.s32.totalorder %v3907_v56, %v1496_v59  ;;  %v1747_v7 = vsel %vm1746_vm8, 1, %v3908_v0 }
 0x1be   : > { %v1246_v55 = vsel %vm1245_vm6, 1, %v3908_v0  ;;  %v1498_v57 = vsel %vm1497_vm7, 1, %v3908_v0 }
 0x1c1   : > { %1248 = vperm.xlu1 %2101, %v1246_v55  }
 0x1c5   : > { %1500 = vperm.xlu1 %2101, %v1498_v57  }
 0x1c9   : > { %1749 = vperm.xlu1 %2101, %v1747_v7  }
 0x251   : > { %v919_v63 = vpop.f32.mrb[4].mxu0  ;;  %v960_v49 = vpop.f32.mrb[4].mxu1 }
 0x252   : > { %v920_v51 = vadd.f32 %v919_v63, %v3909_v52  ;;  %v921_v61 = vpop.f32.mrb[5].mxu0  ;;  %v962_v60 = vpop.f32.mrb[5].mxu1  ;;  %v961_v57 = vadd.f32 %v960_v49, %v2989_v50 }
 0x253   : > { %v922_v1 = vadd.f32 %v921_v61, %v2982_v42  ;;  %v923_v58 = vpop.f32.mrb[6].mxu0  ;;  %v964_v59 = vpop.f32.mrb[6].mxu1  ;;  %v963_v62 = vadd.f32 %v962_v60, %v2986_v48 }
 0x254   : > { %v2013_v54 = vmul.f32 -1.442695, %v920_v51  ;;  %v924_v55 = vpop.f32.mrb[7].mxu0  ;;  %v965_v45 = vpop.f32.mrb[7].mxu1 }
 0x255   : > { %v2014_v53 = vmul.f32 -1.442695, %v922_v1  ;;  %v2015_v0 = vmul.f32 -1.442695, %v963_v62  ;;  %v997_v51 = vpop.permute.xlu0 %996 }
 0x256   : > { %2214 = vpow2.f32 %v2013_v54  ;;  %vm998_vm9 = vcmp.eq.s32.totalorder %v997_v51, 1 }
 0x257   : > { %2216 = vpow2.f32 %v2014_v53 }
 0x258   : > { %2218 = vpow2.f32 %v2015_v0 }
 0x259   : > { %2220 = vtanh.f32 %v961_v57 }
 0x260   : > { %v2215_v56 = vpop.eup %2214 }
 0x261   : > { %v2217_v63 = vpop.eup %2216  ;;  %v970_v7 = vadd.f32 1.0, %v2215_v56 }
 0x262   : > { %v976_v52 = vadd.f32 1.0, %v2217_v63  ;;  %v2219_v58 = vpop.eup %2218 }
 0x263   : > { %2222 = vrcp.f32 %v970_v7  ;;  %v2221_v61 = vpop.eup %2220  ;;  %v983_v53 = vadd.f32 1.0, %v2219_v58  ;;  %v1009_v7 = vld [vmem:[%s1008_s28] sm:$0x1]  ;;  %s1511_s28 = scalar_lea.vmem %s3744_s0, %s2826_s25 }
 0x264   : > { %2224 = vrcp.f32 %v976_v52 }
 0x265   : > { %2226 = vrcp.f32 %v983_v53 }
 0x26d   : > { %v2223_v45 = vpop.eup %2222 }
 0x26e   : > { %v2225_v54 = vpop.eup %2224  ;;  %v987_v1 = vmul.f32 %v2223_v45, %v2221_v61 }
 0x26f   : > { %v986_v60 = vmul.f32 %v2225_v54, %v2992_v2  ;;  %v2227_v52 = vpop.eup %2226 }
 0x271   : > { %v988_v49 = vadd.f32 %v987_v1, %v986_v60  ;;  %v1123_v60 = vpop.permute.xlu1 %1122 }
 0x272   : > { %vm1124_vm10 = vcmp.eq.s32.totalorder %v1123_v60, 1  ;;  %v3299_v60 = vld [vmem:[%s2599_s13 + $0xc4] ss:$16 sps:$4 sm:$0xff]  }
 0x273   : > { %2228 = vtanh.f32 %v988_v49  ;;  %v3108_v59 = vsel %vm998_vm9, %v988_v49, %v2992_v2 }
 0x27d   : > { %v2229_v55 = vpop.eup %2228 }
 0x27e   : > { %v990_v62 = vmul.f32 %v2229_v55, %v2227_v52 }
 0x280   : > { %v3117_v0 = vsel %vm998_vm9, %v990_v62, %v3007_v44  ;;  %v1001_v57 = vsel %vm998_vm9, %v990_v62, 0.0 }
 0x281   : > { %v1002_v56 = vpack.c.bf16 %v1001_v57, %v1001_v57  ;;  %v1010_v63 = vpack.c.bf16 %v3117_v0, %v3117_v0 }
 0x283   : > { %1004 = vst [vmem:[%s1003_s29] sm:$0x1] %v1002_v56  ;;  %1043 = vmatprep.mubr.bf16.mxu0 %v1010_v63  ;;  %1084 = vmatprep.mubr.bf16.mxu1 %v1010_v63  ;;  %s1507_s29 = scalar_lea.vmem %s2998_s23, %s3089_s21 }
 0x284   : > { %1044 = vmatmul.mubr.bf16.vlgmr.msra.gmra.mrb[8].mxu0 %v1009_v7  ;;  %1085 = vmatmul.mubr.bf16.vlgmr.msra.gmra.mrb[8].mxu1 %v1009_v7 }
 0x285   : > { %1138 = vmatpush1.bf16.msra.mxu0 %v2611_v3  ;;  %1179 = vmatpush1.bf16.msra.mxu1 %v2629_v8  ;;  %v3910_v3 = vld [vmem:[#allocation14_spill] sm:$0xff] }
 0x286   : > { %1139 = vmatprep.subr.bf16.mxu0 %v2615_v4  ;;  %1180 = vmatprep.subr.bf16.mxu1 %v2642_v11  ;;  %v3911_v4 = vld [vmem:[#allocation10_spill] sm:$0xff]  ;;  %v3917_v11 = vld [vmem:[#allocation16_spill] sm:$0xff] }
 0x287   : > { %v3914_v8 = vld [vmem:[#allocation18_spill] sm:$0xff] }
 0x289   : > { %1140 = vmatpush1.bf16.msra.mxu0 %v2619_v5  ;;  %1181 = vmatpush1.bf16.msra.mxu1 %v2645_v12  ;;  %v3912_v5 = vld [vmem:[#allocation15_spill] sm:$0xff]  ;;  %v3918_v12 = vld [vmem:[#allocation22_spill] sm:$0xff] }
 0x28a   : > { %1141 = vmatprep.subr.bf16.mxu0 %v2623_v6  ;;  %1182 = vmatprep.subr.bf16.mxu1 %v2656_v15  ;;  %v3913_v6 = vld [vmem:[#allocation11_spill] sm:$0xff]  ;;  %v3921_v15 = vld [vmem:[#allocation20_spill] sm:$0xff] }
 0x28d   : > { %1142 = vmatpush1.bf16.msra.mxu0 %v2633_v9  ;;  %1183 = vmatpush1.bf16.msra.mxu1 %v2661_v16  ;;  %v3915_v9 = vld [vmem:[#allocation13_spill] sm:$0xff]  ;;  %v3922_v16 = vld [vmem:[#allocation26_spill] sm:$0xff] }
 0x28e   : > { %1143 = vmatprep.subr.bf16.mxu0 %v2638_v10  ;;  %1184 = vmatprep.subr.bf16.mxu1 %v2665_v17  ;;  %v3916_v10 = vld [vmem:[#allocation19_spill] sm:$0xff]  ;;  %v3923_v17 = vld [vmem:[#allocation21_spill] sm:$0xff] }
 0x291   : > { %1144 = vmatpush1.bf16.msra.mxu0 %v2650_v13  ;;  %1185 = vmatpush1.bf16.msra.mxu1 %v2677_v20  ;;  %v3919_v13 = vld [vmem:[#allocation17_spill] sm:$0xff] }
 0x292   : > { %1145 = vmatprep.subr.bf16.mxu0 %v2653_v14  ;;  %1186 = vmatprep.subr.bf16.mxu1 %v2681_v21  ;;  %v3920_v14 = vld [vmem:[#allocation23_spill] sm:$0xff]  ;;  %v3926_v20 = vld [vmem:[#allocation29_spill] sm:$0xff] }
 0x293   : > { %v3927_v21 = vld [vmem:[#allocation25_spill] sm:$0xff] }
 0x295   : > { %1146 = vmatpush1.bf16.msra.mxu0 %v2669_v18  ;;  %1187 = vmatpush1.bf16.msra.mxu1 %v2693_v24  ;;  %v3924_v18 = vld [vmem:[#allocation27_spill] sm:$0xff] }
 0x296   : > { %1147 = vmatprep.subr.bf16.mxu0 %v2673_v19  ;;  %1188 = vmatprep.subr.bf16.mxu1 %v2697_v25  ;;  %v3925_v19 = vld [vmem:[#allocation24_spill] sm:$0xff]  ;;  %v3930_v24 = vld [vmem:[#allocation31_spill] sm:$0xff] }
 0x297   : > { %v3184_v25 = vld [vmem:[%s2599_s13 + $0x4] ss:$16 sps:$4 sm:$0xff]  }
 0x298   : > { %3931 = vst [vmem:[#allocation9_spill] sm:$0xff] %v3184_v25 }
 0x299   : > { %1148 = vmatpush1.bf16.msra.mxu0 %v2685_v22  ;;  %1189 = vmatpush1.bf16.msra.mxu1 %v2709_v28  ;;  %v3928_v22 = vld [vmem:[#allocation30_spill] sm:$0xff] }
 0x29a   : > { %1149 = vmatprep.subr.bf16.mxu0 %v2688_v23  ;;  %1190 = vmatprep.subr.bf16.mxu1 %v2713_v29  ;;  %v3929_v23 = vld [vmem:[#allocation28_spill] sm:$0xff] }
 0x29b   : > { %v3933_v29 = vld [vmem:[#allocation32_spill] sm:$0xff] }
 0x29d   : > { %1150 = vmatpush1.bf16.msra.mxu0 %v2701_v26  ;;  %1191 = vmatpush1.bf16.msra.mxu1 %v2725_v32  ;;  %v3188_v26 = vld [vmem:[%s2599_s13 + $0xc] ss:$16 sps:$4 sm:$0xff]  }
 0x29e   : > { %1151 = vmatprep.subr.bf16.mxu0 %v2705_v27  ;;  %1192 = vmatprep.subr.bf16.mxu1 %v2729_v33  ;;  %3932 = vst [vmem:[#allocation7_spill] sm:$0xff] %v3188_v26 }
 0x2a1   : > { %1152 = vmatpush1.bf16.msra.mxu0 %v2717_v30  ;;  %1193 = vmatpush1.bf16.msra.mxu1 %v2741_v36 }
 0x2a2   : > { %1153 = vmatprep.subr.bf16.mxu0 %v2720_v31  ;;  %1194 = vmatprep.subr.bf16.mxu1 %v2745_v37 }
 0x2a5   : > { %1154 = vmatpush1.bf16.msra.mxu0 %v2733_v34  ;;  %1195 = vmatpush1.bf16.msra.mxu1 %v2761_v40 }
 0x2a6   : > { %1155 = vmatprep.subr.bf16.mxu0 %v2737_v35  ;;  %1196 = vmatprep.subr.bf16.mxu1 %v2765_v41 }
 0x2a9   : > { %1156 = vmatpush1.bf16.msra.mxu0 %v2750_v38  ;;  %1197 = vmatpush1.bf16.msra.mxu1 %v2789_v46 }
 0x2aa   : > { %1157 = vmatprep.subr.bf16.mxu0 %v2753_v39  ;;  %1198 = vmatprep.subr.bf16.mxu1 %v2793_v47 }
 0x2ad   : > { %1158 = vmatpush1.bf16.msra.mxu0 %v2775_v43  ;;  %1199 = vmatpush1.bf16.msra.mxu1 %v3910_v3 }
 0x2ae   : > { %1159 = vmatprep.subr.bf16.mxu0 %v3911_v4  ;;  %1200 = vmatprep.subr.bf16.mxu1 %v3912_v5 }
 0x2b1   : > { %1160 = vmatpush1.bf16.msra.mxu0 %v3913_v6  ;;  %1201 = vmatpush1.bf16.msra.mxu1 %v3914_v8 }
 0x2b2   : > { %1161 = vmatprep.subr.bf16.mxu0 %v3915_v9  ;;  %1202 = vmatprep.subr.bf16.mxu1 %v3916_v10 }
 0x2b5   : > { %1162 = vmatpush1.bf16.msra.mxu0 %v3917_v11  ;;  %1203 = vmatpush1.bf16.msra.mxu1 %v3918_v12 }
 0x2b6   : > { %1163 = vmatprep.subr.bf16.mxu0 %v3919_v13  ;;  %1204 = vmatprep.subr.bf16.mxu1 %v3920_v14 }
 0x2b9   : > { %1164 = vmatpush1.bf16.msra.mxu0 %v3921_v15  ;;  %1205 = vmatpush1.bf16.msra.mxu1 %v3922_v16 }
 0x2ba   : > { %1165 = vmatprep.subr.bf16.mxu0 %v3923_v17  ;;  %1206 = vmatprep.subr.bf16.mxu1 %v3924_v18 }
 0x2bd   : > { %1166 = vmatpush1.bf16.msra.mxu0 %v3925_v19  ;;  %1207 = vmatpush1.bf16.msra.mxu1 %v3926_v20 }
 0x2be   : > { %1167 = vmatprep.subr.bf16.mxu0 %v3927_v21  ;;  %1208 = vmatprep.subr.bf16.mxu1 %v3928_v22 }
 0x2c1   : > { %1168 = vmatpush1.bf16.msra.mxu0 %v3929_v23  ;;  %1209 = vmatpush1.bf16.msra.mxu1 %v3930_v24 }
 0x2c2   : > { %1263 = vmatprep.subr.bf16.mxu0 %v3184_v25  ;;  %1304 = vmatprep.subr.bf16.mxu1 %v3188_v26 }
 0x357   : > { %v1045_v27 = vpop.f32.mrb[8].mxu0  ;;  %v1086_v28 = vpop.f32.mrb[8].mxu1 }
 0x358   : > { %v1046_v30 = vadd.f32 %v1045_v27, %v3933_v29  ;;  %v1047_v31 = vpop.f32.mrb[9].mxu0  ;;  %v1088_v32 = vpop.f32.mrb[9].mxu1  ;;  %v1087_v43 = vadd.f32 %v1086_v28, %v2989_v50  ;;  %v1135_v28 = vld [vmem:[%s1134_s11] sm:$0x1]  ;;  %s1632_s11 = scalar_lea.vmem %s2998_s23, %s2826_s25  ;;  %s1756_s25 = scalar_lea.vmem %s2998_s23, %s3094_s24 }
 0x359   : > { %v1048_v33 = vadd.f32 %v1047_v31, %v2982_v42  ;;  %v1049_v34 = vpop.f32.mrb[10].mxu0  ;;  %v1090_v35 = vpop.f32.mrb[10].mxu1  ;;  %v1089_v40 = vadd.f32 %v1088_v32, %v2986_v48  ;;  %v3219_v31 = vld [vmem:[%s2599_s13 + $0x24] ss:$16 sps:$4 sm:$0xff]   ;;  %v3223_v32 = vld [vmem:[%s2599_s13 + $0x2c] ss:$16 sps:$4 sm:$0xff]  }
 0x35a   : > { %v2017_v36 = vmul.f32 -1.442695, %v1046_v30  ;;  %v1050_v37 = vpop.f32.mrb[11].mxu0  ;;  %v1091_v38 = vpop.f32.mrb[11].mxu1  ;;  %v3211_v30 = vld [vmem:[%s2599_s13] ss:$16 sps:$4 sm:$0xff]  }
 0x35b   : > { %v2018_v39 = vmul.f32 -1.442695, %v1048_v33  ;;  %v2019_v41 = vmul.f32 -1.442695, %v1089_v40  ;;  %v3227_v33 = vld [vmem:[%s2599_s13 + $0x20] ss:$16 sps:$4 sm:$0xff]  }
 0x35c   : > { %2230 = vpow2.f32 %v2017_v36  ;;  %v3231_v34 = vld [vmem:[%s2599_s13 + $0x28] ss:$16 sps:$4 sm:$0xff]   ;;  %v3235_v35 = vld [vmem:[%s2599_s13 + $0x44] ss:$16 sps:$4 sm:$0xff]   ;;  %v3239_v36 = vld [vmem:[%s2599_s13 + $0x4c] ss:$16 sps:$4 sm:$0xff]  }
 0x35d   : > { %2232 = vpow2.f32 %v2018_v39  ;;  %v3243_v37 = vld [vmem:[%s2599_s13 + $0x40] ss:$16 sps:$4 sm:$0xff]   ;;  %v3247_v38 = vld [vmem:[%s2599_s13 + $0x48] ss:$16 sps:$4 sm:$0xff]   ;;  %v3251_v39 = vld [vmem:[%s2599_s13 + $0x64] ss:$16 sps:$4 sm:$0xff]  }
 0x35e   : > { %2234 = vpow2.f32 %v2019_v41  ;;  %v3255_v40 = vld [vmem:[%s2599_s13 + $0x6c] ss:$16 sps:$4 sm:$0xff]   ;;  %v3259_v41 = vld [vmem:[%s2599_s13 + $0x60] ss:$16 sps:$4 sm:$0xff]  }
 0x35f   : > { %2236 = vtanh.f32 %v1087_v43  ;;  %v3263_v43 = vld [vmem:[%s2599_s13 + $0x68] ss:$16 sps:$4 sm:$0xff]  }
 0x366   : > { %v2231_v2 = vpop.eup %2230 }
 0x367   : > { %v2233_v44 = vpop.eup %2232  ;;  %v1096_v58 = vadd.f32 1.0, %v2231_v2  ;;  %v3267_v2 = vld [vmem:[%s2599_s13 + $0x84] ss:$16 sps:$4 sm:$0xff]  }
 0x368   : > { %v1102_v61 = vadd.f32 1.0, %v2233_v44  ;;  %v2235_v45 = vpop.eup %2234  ;;  %v3271_v44 = vld [vmem:[%s2599_s13 + $0x8c] ss:$16 sps:$4 sm:$0xff]  }
 0x369   : > { %2238 = vrcp.f32 %v1096_v58  ;;  %v2237_v53 = vpop.eup %2236  ;;  %v1109_v1 = vadd.f32 1.0, %v2235_v45  ;;  %v3275_v58 = vld [vmem:[%s2599_s13 + $0x80] ss:$16 sps:$4 sm:$0xff]   ;;  %v3283_v45 = vld [vmem:[%s2599_s13 + $0xa4] ss:$16 sps:$4 sm:$0xff]  }
 0x36a   : > { %2240 = vrcp.f32 %v1102_v61  ;;  %v3279_v61 = vld [vmem:[%s2599_s13 + $0x88] ss:$16 sps:$4 sm:$0xff]  }
 0x36b   : > { %2242 = vrcp.f32 %v1109_v1  ;;  %v3295_v1 = vld [vmem:[%s2599_s13 + $0xa8] ss:$16 sps:$4 sm:$0xff]  }
 0x373   : > { %v2239_v54 = vpop.eup %2238 }
 0x374   : > { %v2241_v51 = vpop.eup %2240  ;;  %v1113_v49 = vmul.f32 %v2239_v54, %v2237_v53  ;;  %v3287_v53 = vld [vmem:[%s2599_s13 + $0xac] ss:$16 sps:$4 sm:$0xff]   ;;  %v3291_v54 = vld [vmem:[%s2599_s13 + $0xa0] ss:$16 sps:$4 sm:$0xff]  }
 0x375   : > { %v1112_v52 = vmul.f32 %v2241_v51, %v3108_v59  ;;  %v2243_v57 = vpop.eup %2242  ;;  %v3303_v51 = vld [vmem:[%s2599_s13 + $0xcc] ss:$16 sps:$4 sm:$0xff]  }
 0x377   : > { %v1114_v55 = vadd.f32 %v1113_v49, %v1112_v52  ;;  %v3307_v49 = vld [vmem:[%s2599_s13 + $0xc0] ss:$16 sps:$4 sm:$0xff]   ;;  %v3311_v52 = vld [vmem:[%s2599_s13 + $0xc8] ss:$16 sps:$4 sm:$0xff]  }
 0x379   : > { %2244 = vtanh.f32 %v1114_v55  ;;  %v3197_v62 = vsel %vm1124_vm10, %v1114_v55, %v3108_v59  ;;  %v3315_v55 = vld [vmem:[%s2599_s13 + $0xe4] ss:$16 sps:$4 sm:$0xff]  }
 0x383   : > { %v2245_v56 = vpop.eup %2244 }
 0x384   : > { %v1116_v63 = vmul.f32 %v2245_v56, %v2243_v57  ;;  %v3319_v57 = vld [vmem:[%s2599_s13 + $0xec] ss:$16 sps:$4 sm:$0xff]   ;;  %v3323_v56 = vld [vmem:[%s2599_s13 + $0xe0] ss:$16 sps:$4 sm:$0xff]  }
 0x385   : > { %3934 = vst [vmem:[#allocation8_spill] sm:$0xff] %v3323_v56 }
 0x386   : > { %v3206_v7 = vsel %vm1124_vm10, %v1116_v63, %v3117_v0  ;;  %v1127_v4 = vsel %vm1124_vm10, %v1116_v63, 0.0  ;;  %v3215_v0 = vld [vmem:[%s2599_s13 + $0x8] ss:$16 sps:$4 sm:$0xff]  }
 0x387   : > { %v1128_v27 = vpack.c.bf16 %v1127_v4, %v1127_v4  ;;  %v1136_v59 = vpack.c.bf16 %v3206_v7, %v3206_v7  ;;  %v3327_v63 = vld [vmem:[%s2599_s13 + $0xe8] ss:$16 sps:$4 sm:$0xff]   ;;  %v3331_v4 = vld [vmem:[%s2599_s13 + $0x104] ss:$16 sps:$4 sm:$0xff]  }
 0x388   : > { %3935 = vst [vmem:[#allocation12_spill] sm:$0xff] %v3327_v63  ;;  %3936 = vst [vmem:[#allocation14_spill] sm:$0xff] %v3331_v4 }
 0x389   : > { %1130 = vst [vmem:[%s1129_s5] sm:$0x1] %v1128_v27  ;;  %1169 = vmatprep.mubr.bf16.mxu0 %v1136_v59  ;;  %1210 = vmatprep.mubr.bf16.mxu1 %v1136_v59  ;;  %v3335_v27 = vld [vmem:[%s2599_s13 + $0x10c] ss:$16 sps:$4 sm:$0xff]   ;;  %v3339_v59 = vld [vmem:[%s2599_s13 + $0x100] ss:$16 sps:$4 sm:$0xff]  }
 0x38a   : > { %1170 = vmatmul.mubr.bf16.vlgmr.msra.gmra.mrb[12].mxu0 %v1135_v28  ;;  %1211 = vmatmul.mubr.bf16.vlgmr.msra.gmra.mrb[12].mxu1 %v1135_v28  ;;  %3937 = vst [vmem:[#allocation10_spill] sm:$0xff] %v3339_v59  ;;  %v3343_v28 = vld [vmem:[%s2599_s13 + $0x108] ss:$16 sps:$4 sm:$0xff]  }
 0x38b   : > { %1264 = vmatpush1.bf16.msra.mxu0 %v3211_v30  ;;  %1305 = vmatpush1.bf16.msra.mxu1 %v3215_v0  ;;  %3938 = vst [vmem:[#allocation15_spill] sm:$0xff] %v3343_v28 }
 0x38c   : > { %1265 = vmatprep.subr.bf16.mxu0 %v3219_v31  ;;  %1306 = vmatprep.subr.bf16.mxu1 %v3223_v32 }
 0x38f   : > { %1266 = vmatpush1.bf16.msra.mxu0 %v3227_v33  ;;  %1307 = vmatpush1.bf16.msra.mxu1 %v3231_v34 }
 0x390   : > { %1267 = vmatprep.subr.bf16.mxu0 %v3235_v35  ;;  %1308 = vmatprep.subr.bf16.mxu1 %v3239_v36 }
 0x393   : > { %1268 = vmatpush1.bf16.msra.mxu0 %v3243_v37  ;;  %1309 = vmatpush1.bf16.msra.mxu1 %v3247_v38 }
 0x394   : > { %1269 = vmatprep.subr.bf16.mxu0 %v3251_v39  ;;  %1310 = vmatprep.subr.bf16.mxu1 %v3255_v40 }
 0x397   : > { %1270 = vmatpush1.bf16.msra.mxu0 %v3259_v41  ;;  %1311 = vmatpush1.bf16.msra.mxu1 %v3263_v43 }
 0x398   : > { %1271 = vmatprep.subr.bf16.mxu0 %v3267_v2  ;;  %1312 = vmatprep.subr.bf16.mxu1 %v3271_v44 }
 0x39b   : > { %1272 = vmatpush1.bf16.msra.mxu0 %v3275_v58  ;;  %1313 = vmatpush1.bf16.msra.mxu1 %v3279_v61 }
 0x39c   : > { %1273 = vmatprep.subr.bf16.mxu0 %v3283_v45  ;;  %1314 = vmatprep.subr.bf16.mxu1 %v3287_v53 }
 0x39f   : > { %1274 = vmatpush1.bf16.msra.mxu0 %v3291_v54  ;;  %1315 = vmatpush1.bf16.msra.mxu1 %v3295_v1 }
 0x3a0   : > { %1275 = vmatprep.subr.bf16.mxu0 %v3299_v60  ;;  %1316 = vmatprep.subr.bf16.mxu1 %v3303_v51 }
 0x3a3   : > { %1276 = vmatpush1.bf16.msra.mxu0 %v3307_v49  ;;  %1317 = vmatpush1.bf16.msra.mxu1 %v3311_v52 }
 0x3a4   : > { %1277 = vmatprep.subr.bf16.mxu0 %v3315_v55  ;;  %1318 = vmatprep.subr.bf16.mxu1 %v3319_v57 }
 0x3a7   : > { %1278 = vmatpush1.bf16.msra.mxu0 %v3323_v56  ;;  %1319 = vmatpush1.bf16.msra.mxu1 %v3327_v63  ;;  %v3347_v63 = vld [vmem:[%s2599_s13 + $0x124] ss:$16 sps:$4 sm:$0xff]   ;;  %v3351_v56 = vld [vmem:[%s2599_s13 + $0x12c] ss:$16 sps:$4 sm:$0xff]  }
 0x3a8   : > { %1279 = vmatprep.subr.bf16.mxu0 %v3331_v4  ;;  %1320 = vmatprep.subr.bf16.mxu1 %v3335_v27  ;;  %3939 = vst [vmem:[#allocation11_spill] sm:$0xff] %v3347_v63  ;;  %v3355_v4 = vld [vmem:[%s2599_s13 + $0x120] ss:$16 sps:$4 sm:$0xff]  }
 0x3ab   : > { %1280 = vmatpush1.bf16.msra.mxu0 %v3339_v59  ;;  %1321 = vmatpush1.bf16.msra.mxu1 %v3343_v28  ;;  %v3360_v59 = vld [vmem:[%s2599_s13 + $0x144] ss:$16 sps:$4 sm:$0xff]   ;;  %v3365_v28 = vld [vmem:[%s2599_s13 + $0x140] ss:$16 sps:$4 sm:$0xff]  }
 0x3ac   : > { %1281 = vmatprep.subr.bf16.mxu0 %v3347_v63  ;;  %1322 = vmatprep.subr.bf16.mxu1 %v3351_v56  ;;  %v3370_v63 = vld [vmem:[%s2599_s13 + $0x164] ss:$16 sps:$4 sm:$0xff]  }
 0x3ad   : > { %3940 = vst [vmem:[#allocation18_spill] sm:$0xff] %v3370_v63 }
 0x3af   : > { %1282 = vmatpush1.bf16.msra.mxu0 %v3355_v4  ;;  %1323 = vmatpush1.bf16.msra.mxu1 %v2789_v46 }
 0x3b0   : > { %1283 = vmatprep.subr.bf16.mxu0 %v3360_v59  ;;  %1324 = vmatprep.subr.bf16.mxu1 %v2793_v47 }
 0x3b3   : > { %1284 = vmatpush1.bf16.msra.mxu0 %v3365_v28  ;;  %1325 = vmatpush1.bf16.msra.mxu1 %v3910_v3 }
 0x3b4   : > { %1285 = vmatprep.subr.bf16.mxu0 %v3370_v63  ;;  %1326 = vmatprep.subr.bf16.mxu1 %v3912_v5 }
 0x3b7   : > { %1286 = vmatpush1.bf16.msra.mxu0 %v3913_v6  ;;  %1327 = vmatpush1.bf16.msra.mxu1 %v3914_v8 }
 0x3b8   : > { %1287 = vmatprep.subr.bf16.mxu0 %v3915_v9  ;;  %1328 = vmatprep.subr.bf16.mxu1 %v3916_v10 }
 0x3bb   : > { %1288 = vmatpush1.bf16.msra.mxu0 %v3917_v11  ;;  %1329 = vmatpush1.bf16.msra.mxu1 %v3918_v12 }
 0x3bc   : > { %1289 = vmatprep.subr.bf16.mxu0 %v3919_v13  ;;  %1330 = vmatprep.subr.bf16.mxu1 %v3920_v14 }
 0x3bf   : > { %1290 = vmatpush1.bf16.msra.mxu0 %v3921_v15  ;;  %1331 = vmatpush1.bf16.msra.mxu1 %v3922_v16 }
 0x3c0   : > { %1291 = vmatprep.subr.bf16.mxu0 %v3923_v17  ;;  %1332 = vmatprep.subr.bf16.mxu1 %v3924_v18 }
 0x3c3   : > { %1292 = vmatpush1.bf16.msra.mxu0 %v3925_v19  ;;  %1333 = vmatpush1.bf16.msra.mxu1 %v3926_v20 }
 0x3c4   : > { %1293 = vmatprep.subr.bf16.mxu0 %v3927_v21  ;;  %1334 = vmatprep.subr.bf16.mxu1 %v3928_v22 }
 0x3c7   : > { %1294 = vmatpush1.bf16.msra.mxu0 %v3929_v23  ;;  %1335 = vmatpush1.bf16.msra.mxu1 %v3930_v24 }
 0x3c8   : > { %1389 = vmatprep.subr.bf16.mxu0 %v3184_v25  ;;  %1430 = vmatprep.subr.bf16.mxu1 %v3188_v26 }
 0x45d   : > { %v1171_v46 = vpop.f32.mrb[12].mxu0  ;;  %v1212_v47 = vpop.f32.mrb[12].mxu1 }
 0x45e   : > { %v1172_v3 = vadd.f32 %v1171_v46, %v3933_v29  ;;  %v1173_v5 = vpop.f32.mrb[13].mxu0  ;;  %v1214_v6 = vpop.f32.mrb[13].mxu1  ;;  %v1213_v17 = vadd.f32 %v1212_v47, %v2989_v50 }
 0x45f   : > { %v1174_v8 = vadd.f32 %v1173_v5, %v2982_v42  ;;  %v1175_v9 = vpop.f32.mrb[14].mxu0  ;;  %v1216_v10 = vpop.f32.mrb[14].mxu1  ;;  %v1215_v15 = vadd.f32 %v1214_v6, %v2986_v48 }
 0x460   : > { %v2021_v11 = vmul.f32 -1.442695, %v1172_v3  ;;  %v1176_v12 = vpop.f32.mrb[15].mxu0  ;;  %v1217_v13 = vpop.f32.mrb[15].mxu1 }
 0x461   : > { %v2022_v14 = vmul.f32 -1.442695, %v1174_v8  ;;  %v2023_v16 = vmul.f32 -1.442695, %v1215_v15  ;;  %v1249_v47 = vpop.permute.xlu1 %1248 }
 0x462   : > { %2246 = vpow2.f32 %v2021_v11  ;;  %vm1250_vm11 = vcmp.eq.s32.totalorder %v1249_v47, 1  ;;  %v3482_v47 = vld [vmem:[%s2599_s13 + $0x18c] ss:$16 sps:$4 sm:$0xff]  }
 0x463   : > { %2248 = vpow2.f32 %v2022_v14  ;;  %3952 = vst [vmem:[#allocation23_spill] sm:$0xff] %v3482_v47 }
 0x464   : > { %2250 = vpow2.f32 %v2023_v16 }
 0x465   : > { %2252 = vtanh.f32 %v1213_v17  ;;  %v1261_v17 = vld [vmem:[%s1260_s12] sm:$0x1] }
 0x46c   : > { %v2247_v18 = vpop.eup %2246 }
 0x46d   : > { %v2249_v19 = vpop.eup %2248  ;;  %v1222_v20 = vadd.f32 1.0, %v2247_v18  ;;  %v3943_v18 = vld [vmem:[#allocation14_spill] sm:$0xff] }
 0x46e   : > { %v1228_v21 = vadd.f32 1.0, %v2249_v19  ;;  %v2251_v22 = vpop.eup %2250  ;;  %v3944_v19 = vld [vmem:[#allocation10_spill] sm:$0xff] }
 0x46f   : > { %2254 = vrcp.f32 %v1222_v20  ;;  %v2253_v23 = vpop.eup %2252  ;;  %v1235_v46 = vadd.f32 1.0, %v2251_v22  ;;  %v3945_v20 = vld [vmem:[#allocation15_spill] sm:$0xff]  ;;  %v3451_v22 = vld [vmem:[%s2599_s13 + $0x128] ss:$16 sps:$4 sm:$0xff]  }
 0x470   : > { %2256 = vrcp.f32 %v1228_v21  ;;  %v3946_v21 = vld [vmem:[#allocation11_spill] sm:$0xff] }
 0x471   : > { %2258 = vrcp.f32 %v1235_v46  ;;  %v3466_v46 = vld [vmem:[%s2599_s13 + $0x16c] ss:$16 sps:$4 sm:$0xff]  }
 0x472   : > { %3948 = vst [vmem:[#allocation19_spill] sm:$0xff] %v3466_v46 }
 0x479   : > { %v2255_v24 = vpop.eup %2254 }
 0x47a   : > { %v2257_v3 = vpop.eup %2256  ;;  %v1239_v5 = vmul.f32 %v2255_v24, %v2253_v23  ;;  %v3456_v23 = vld [vmem:[%s2599_s13 + $0x14c] ss:$16 sps:$4 sm:$0xff]   ;;  %v3461_v24 = vld [vmem:[%s2599_s13 + $0x148] ss:$16 sps:$4 sm:$0xff]  }
 0x47b   : > { %v1238_v6 = vmul.f32 %v2257_v3, %v3197_v62  ;;  %v2259_v10 = vpop.eup %2258  ;;  %3947 = vst [vmem:[#allocation13_spill] sm:$0xff] %v3461_v24  ;;  %v3470_v3 = vld [vmem:[%s2599_s13 + $0x160] ss:$16 sps:$4 sm:$0xff]  }
 0x47c   : > { %3949 = vst [vmem:[#allocation16_spill] sm:$0xff] %v3470_v3 }
 0x47d   : > { %v1240_v8 = vadd.f32 %v1239_v5, %v1238_v6  ;;  %v3474_v5 = vld [vmem:[%s2599_s13 + $0x168] ss:$16 sps:$4 sm:$0xff]   ;;  %v3478_v6 = vld [vmem:[%s2599_s13 + $0x184] ss:$16 sps:$4 sm:$0xff]  }
 0x47e   : > { %3950 = vst [vmem:[#allocation22_spill] sm:$0xff] %v3474_v5  ;;  %3951 = vst [vmem:[#allocation17_spill] sm:$0xff] %v3478_v6 }
 0x47f   : > { %2260 = vtanh.f32 %v1240_v8  ;;  %v3400_v9 = vsel %vm1250_vm11, %v1240_v8, %v3197_v62  ;;  %v3941_v62 = vld [vmem:[#allocation8_spill] sm:$0xff]  ;;  %v3486_v8 = vld [vmem:[%s2599_s13 + $0x180] ss:$16 sps:$4 sm:$0xff]  }
 0x480   : > { %3953 = vst [vmem:[#allocation20_spill] sm:$0xff] %v3486_v8 }
 0x489   : > { %v2261_v11 = vpop.eup %2260 }
 0x48a   : > { %v1242_v12 = vmul.f32 %v2261_v11, %v2259_v10  ;;  %v3490_v10 = vld [vmem:[%s2599_s13 + $0x188] ss:$16 sps:$4 sm:$0xff]   ;;  %v3494_v11 = vld [vmem:[%s2599_s13 + $0x1a4] ss:$16 sps:$4 sm:$0xff]  }
 0x48b   : > { %3954 = vst [vmem:[#allocation26_spill] sm:$0xff] %v3490_v10  ;;  %3955 = vst [vmem:[#allocation21_spill] sm:$0xff] %v3494_v11 }
 0x48c   : > { %v3409_v13 = vsel %vm1250_vm11, %v1242_v12, %v3206_v7  ;;  %v1253_v14 = vsel %vm1250_vm11, %v1242_v12, 0.0  ;;  %v3942_v7 = vld [vmem:[#allocation12_spill] sm:$0xff] }
 0x48d   : > { %v1254_v15 = vpack.c.bf16 %v1253_v14, %v1253_v14  ;;  %v1262_v16 = vpack.c.bf16 %v3409_v13, %v3409_v13  ;;  %v3498_v12 = vld [vmem:[%s2599_s13 + $0x1ac] ss:$16 sps:$4 sm:$0xff]   ;;  %v3502_v14 = vld [vmem:[%s2599_s13 + $0x1a0] ss:$16 sps:$4 sm:$0xff]  }
 0x48e   : > { %3956 = vst [vmem:[#allocation27_spill] sm:$0xff] %v3498_v12  ;;  %3957 = vst [vmem:[#allocation24_spill] sm:$0xff] %v3502_v14 }
 0x48f   : > { %1256 = vst [vmem:[%s1255_s26] sm:$0x1] %v1254_v15  ;;  %1295 = vmatprep.mubr.bf16.mxu0 %v1262_v16  ;;  %1336 = vmatprep.mubr.bf16.mxu1 %v1262_v16  ;;  %v3506_v15 = vld [vmem:[%s2599_s13 + $0x1a8] ss:$16 sps:$4 sm:$0xff]   ;;  %v3510_v16 = vld [vmem:[%s2599_s13 + $0x1c4] ss:$16 sps:$4 sm:$0xff]  }
 0x490   : > { %1296 = vmatmul.mubr.bf16.vlgmr.msra.gmra.mrb[16].mxu0 %v1261_v17  ;;  %1337 = vmatmul.mubr.bf16.vlgmr.msra.gmra.mrb[16].mxu1 %v1261_v17  ;;  %3958 = vst [vmem:[#allocation29_spill] sm:$0xff] %v3506_v15  ;;  %3959 = vst [vmem:[#allocation25_spill] sm:$0xff] %v3510_v16  ;;  %v3514_v17 = vld [vmem:[%s2599_s13 + $0x1cc] ss:$16 sps:$4 sm:$0xff]  }
 0x491   : > { %1390 = vmatpush1.bf16.msra.mxu0 %v3211_v30  ;;  %1431 = vmatpush1.bf16.msra.mxu1 %v3215_v0  ;;  %3960 = vst [vmem:[#allocation30_spill] sm:$0xff] %v3514_v17 }
 0x492   : > { %1391 = vmatprep.subr.bf16.mxu0 %v3219_v31  ;;  %1432 = vmatprep.subr.bf16.mxu1 %v3223_v32 }
 0x495   : > { %1392 = vmatpush1.bf16.msra.mxu0 %v3227_v33  ;;  %1433 = vmatpush1.bf16.msra.mxu1 %v3231_v34 }
 0x496   : > { %1393 = vmatprep.subr.bf16.mxu0 %v3235_v35  ;;  %1434 = vmatprep.subr.bf16.mxu1 %v3239_v36 }
 0x499   : > { %1394 = vmatpush1.bf16.msra.mxu0 %v3243_v37  ;;  %1435 = vmatpush1.bf16.msra.mxu1 %v3247_v38 }
 0x49a   : > { %1395 = vmatprep.subr.bf16.mxu0 %v3251_v39  ;;  %1436 = vmatprep.subr.bf16.mxu1 %v3255_v40 }
 0x49d   : > { %1396 = vmatpush1.bf16.msra.mxu0 %v3259_v41  ;;  %1437 = vmatpush1.bf16.msra.mxu1 %v3263_v43 }
 0x49e   : > { %1397 = vmatprep.subr.bf16.mxu0 %v3267_v2  ;;  %1438 = vmatprep.subr.bf16.mxu1 %v3271_v44 }
 0x4a1   : > { %1398 = vmatpush1.bf16.msra.mxu0 %v3275_v58  ;;  %1439 = vmatpush1.bf16.msra.mxu1 %v3279_v61 }
 0x4a2   : > { %1399 = vmatprep.subr.bf16.mxu0 %v3283_v45  ;;  %1440 = vmatprep.subr.bf16.mxu1 %v3287_v53 }
 0x4a5   : > { %1400 = vmatpush1.bf16.msra.mxu0 %v3291_v54  ;;  %1441 = vmatpush1.bf16.msra.mxu1 %v3295_v1 }
 0x4a6   : > { %1401 = vmatprep.subr.bf16.mxu0 %v3299_v60  ;;  %1442 = vmatprep.subr.bf16.mxu1 %v3303_v51 }
 0x4a9   : > { %1402 = vmatpush1.bf16.msra.mxu0 %v3307_v49  ;;  %1443 = vmatpush1.bf16.msra.mxu1 %v3311_v52 }
 0x4aa   : > { %1403 = vmatprep.subr.bf16.mxu0 %v3315_v55  ;;  %1444 = vmatprep.subr.bf16.mxu1 %v3319_v57 }
 0x4ad   : > { %1404 = vmatpush1.bf16.msra.mxu0 %v3941_v62  ;;  %1445 = vmatpush1.bf16.msra.mxu1 %v3942_v7 }
 0x4ae   : > { %1405 = vmatprep.subr.bf16.mxu0 %v3943_v18  ;;  %1446 = vmatprep.subr.bf16.mxu1 %v3335_v27 }
 0x4b1   : > { %1406 = vmatpush1.bf16.msra.mxu0 %v3944_v19  ;;  %1447 = vmatpush1.bf16.msra.mxu1 %v3945_v20 }
 0x4b2   : > { %1407 = vmatprep.subr.bf16.mxu0 %v3946_v21  ;;  %1448 = vmatprep.subr.bf16.mxu1 %v3351_v56 }
 0x4b5   : > { %1408 = vmatpush1.bf16.msra.mxu0 %v3355_v4  ;;  %1449 = vmatpush1.bf16.msra.mxu1 %v3451_v22 }
 0x4b6   : > { %1409 = vmatprep.subr.bf16.mxu0 %v3360_v59  ;;  %1450 = vmatprep.subr.bf16.mxu1 %v3456_v23 }
 0x4b9   : > { %1410 = vmatpush1.bf16.msra.mxu0 %v3365_v28  ;;  %1451 = vmatpush1.bf16.msra.mxu1 %v3461_v24 }
 0x4ba   : > { %1411 = vmatprep.subr.bf16.mxu0 %v3370_v63  ;;  %1452 = vmatprep.subr.bf16.mxu1 %v3466_v46 }
 0x4bd   : > { %1412 = vmatpush1.bf16.msra.mxu0 %v3470_v3  ;;  %1453 = vmatpush1.bf16.msra.mxu1 %v3474_v5 }
 0x4be   : > { %1413 = vmatprep.subr.bf16.mxu0 %v3478_v6  ;;  %1454 = vmatprep.subr.bf16.mxu1 %v3482_v47 }
 0x4c1   : > { %1414 = vmatpush1.bf16.msra.mxu0 %v3486_v8  ;;  %1455 = vmatpush1.bf16.msra.mxu1 %v3490_v10 }
 0x4c2   : > { %1415 = vmatprep.subr.bf16.mxu0 %v3494_v11  ;;  %1456 = vmatprep.subr.bf16.mxu1 %v3498_v12  ;;  %v3518_v11 = vld [vmem:[%s2599_s13 + $0x1c0] ss:$16 sps:$4 sm:$0xff]   ;;  %v3522_v12 = vld [vmem:[%s2599_s13 + $0x1c8] ss:$16 sps:$4 sm:$0xff]  }
 0x4c3   : > { %3961 = vst [vmem:[#allocation28_spill] sm:$0xff] %v3518_v11  ;;  %3962 = vst [vmem:[#allocation31_spill] sm:$0xff] %v3522_v12 }
 0x4c5   : > { %1416 = vmatpush1.bf16.msra.mxu0 %v3502_v14  ;;  %1457 = vmatpush1.bf16.msra.mxu1 %v3506_v15  ;;  %v3526_v14 = vld [vmem:[%s2599_s13 + $0x1e4] ss:$16 sps:$4 sm:$0xff]   ;;  %v3530_v15 = vld [vmem:[%s2599_s13 + $0x1ec] ss:$16 sps:$4 sm:$0xff]  }
 0x4c6   : > { %1417 = vmatprep.subr.bf16.mxu0 %v3510_v16  ;;  %1458 = vmatprep.subr.bf16.mxu1 %v3514_v17  ;;  %3963 = vst [vmem:[#allocation8_spill] sm:$0xff] %v3526_v14  ;;  %3964 = vst [vmem:[#allocation12_spill] sm:$0xff] %v3530_v15  ;;  %v3534_v16 = vld [vmem:[%s2599_s13 + $0x1e0] ss:$16 sps:$4 sm:$0xff]   ;;  %v3538_v17 = vld [vmem:[%s2599_s13 + $0x1e8] ss:$16 sps:$4 sm:$0xff]  }
 0x4c7   : > { %3965 = vst [vmem:[#allocation14_spill] sm:$0xff] %v3534_v16  ;;  %3966 = vst [vmem:[#allocation10_spill] sm:$0xff] %v3538_v17 }
 0x4c9   : > { %1418 = vmatpush1.bf16.msra.mxu0 %v3518_v11  ;;  %1459 = vmatpush1.bf16.msra.mxu1 %v3522_v12 }
 0x4ca   : > { %1419 = vmatprep.subr.bf16.mxu0 %v3526_v14  ;;  %1460 = vmatprep.subr.bf16.mxu1 %v3530_v15 }
 0x4cd   : > { %1420 = vmatpush1.bf16.msra.mxu0 %v3534_v16  ;;  %1461 = vmatpush1.bf16.msra.mxu1 %v3538_v17 }
 0x4ce   : > { %1514 = vmatprep.subr.bf16.mxu0 %v3184_v25  ;;  %1555 = vmatprep.subr.bf16.mxu1 %v3188_v26 }
 0x563   : > { %v1297_v12 = vpop.f32.mrb[16].mxu0  ;;  %v1338_v11 = vpop.f32.mrb[16].mxu1 }
 0x564   : > { %v1298_v14 = vadd.f32 %v1297_v12, %v3933_v29  ;;  %v1299_v10 = vpop.f32.mrb[17].mxu0  ;;  %v1340_v8 = vpop.f32.mrb[17].mxu1  ;;  %v1339_v26 = vadd.f32 %v1338_v11, %v2989_v50 }
 0x565   : > { %v1300_v15 = vadd.f32 %v1299_v10, %v2982_v42  ;;  %v1301_v47 = vpop.f32.mrb[18].mxu0  ;;  %v1342_v6 = vpop.f32.mrb[18].mxu1  ;;  %v1341_v25 = vadd.f32 %v1340_v8, %v2986_v48 }
 0x566   : > { %v2025_v5 = vmul.f32 -1.442695, %v1298_v14  ;;  %v1302_v16 = vpop.f32.mrb[19].mxu0  ;;  %v1343_v3 = vpop.f32.mrb[19].mxu1 }
 0x567   : > { %v2026_v46 = vmul.f32 -1.442695, %v1300_v15  ;;  %v2027_v17 = vmul.f32 -1.442695, %v1341_v25  ;;  %v1375_v10 = vpop.permute.xlu0 %1374 }
 0x568   : > { %2262 = vpow2.f32 %v2025_v5  ;;  %vm1376_vm12 = vcmp.eq.s32.totalorder %v1375_v10, 1  ;;  %v3976_v10 = vld [vmem:[#allocation21_spill] sm:$0xff] }
 0x569   : > { %2264 = vpow2.f32 %v2026_v46 }
 0x56a   : > { %2266 = vpow2.f32 %v2027_v17 }
 0x56b   : > { %2268 = vtanh.f32 %v1339_v26 }
 0x572   : > { %v2263_v63 = vpop.eup %2262 }
 0x573   : > { %v2265_v12 = vpop.eup %2264  ;;  %v1348_v29 = vadd.f32 1.0, %v2263_v63 }
 0x574   : > { %v1354_v24 = vadd.f32 1.0, %v2265_v12  ;;  %v2267_v6 = vpop.eup %2266  ;;  %v1387_v12 = vld [vmem:[%s1386_s14] sm:$0x1] }
 0x575   : > { %2270 = vrcp.f32 %v1348_v29  ;;  %v2269_v47 = vpop.eup %2268  ;;  %v1361_v46 = vadd.f32 1.0, %v2267_v6  ;;  %v3969_v6 = vld [vmem:[#allocation19_spill] sm:$0xff] }
 0x576   : > { %2272 = vrcp.f32 %v1354_v24 }
 0x577   : > { %2274 = vrcp.f32 %v1361_v46  ;;  %v3972_v46 = vld [vmem:[#allocation17_spill] sm:$0xff] }
 0x57f   : > { %v2271_v3 = vpop.eup %2270 }
 0x580   : > { %v2273_v5 = vpop.eup %2272  ;;  %v1365_v8 = vmul.f32 %v2271_v3, %v2269_v47  ;;  %v3970_v47 = vld [vmem:[#allocation16_spill] sm:$0xff]  ;;  %v3971_v3 = vld [vmem:[#allocation22_spill] sm:$0xff] }
 0x581   : > { %v1364_v25 = vmul.f32 %v2273_v5, %v3400_v9  ;;  %v2275_v29 = vpop.eup %2274  ;;  %v3973_v5 = vld [vmem:[#allocation23_spill] sm:$0xff] }
 0x583   : > { %v1366_v11 = vadd.f32 %v1365_v8, %v1364_v25  ;;  %v3974_v8 = vld [vmem:[#allocation20_spill] sm:$0xff]  ;;  %v3975_v25 = vld [vmem:[#allocation26_spill] sm:$0xff] }
 0x585   : > { %2276 = vtanh.f32 %v1366_v11  ;;  %v3549_v26 = vsel %vm1376_vm12, %v1366_v11, %v3400_v9  ;;  %v3967_v9 = vld [vmem:[#allocation13_spill] sm:$0xff]  ;;  %v3977_v11 = vld [vmem:[#allocation27_spill] sm:$0xff] }
 0x58f   : > { %v2277_v63 = vpop.eup %2276 }
 0x590   : > { %v1368_v24 = vmul.f32 %v2277_v63, %v2275_v29  ;;  %v3978_v29 = vld [vmem:[#allocation24_spill] sm:$0xff]  ;;  %v3979_v63 = vld [vmem:[#allocation29_spill] sm:$0xff] }
 0x592   : > { %v3558_v14 = vsel %vm1376_vm12, %v1368_v24, %v3409_v13  ;;  %v1379_v15 = vsel %vm1376_vm12, %v1368_v24, 0.0  ;;  %v3968_v13 = vld [vmem:[#allocation18_spill] sm:$0xff]  ;;  %v3980_v24 = vld [vmem:[#allocation25_spill] sm:$0xff] }
 0x593   : > { %v1380_v16 = vpack.c.bf16 %v1379_v15, %v1379_v15  ;;  %v1388_v17 = vpack.c.bf16 %v3558_v14, %v3558_v14  ;;  %v3981_v15 = vld [vmem:[#allocation30_spill] sm:$0xff] }
 0x595   : > { %1382 = vst [vmem:[%s1381_s18] sm:$0x1] %v1380_v16  ;;  %1421 = vmatprep.mubr.bf16.mxu0 %v1388_v17  ;;  %1462 = vmatprep.mubr.bf16.mxu1 %v1388_v17  ;;  %v3982_v16 = vld [vmem:[#allocation28_spill] sm:$0xff]  ;;  %v3983_v17 = vld [vmem:[#allocation31_spill] sm:$0xff] }
 0x596   : > { %1422 = vmatmul.mubr.bf16.vlgmr.msra.gmra.mrb[20].mxu0 %v1387_v12  ;;  %1463 = vmatmul.mubr.bf16.vlgmr.msra.gmra.mrb[20].mxu1 %v1387_v12  ;;  %v3984_v12 = vld [vmem:[#allocation8_spill] sm:$0xff] }
 0x597   : > { %1515 = vmatpush1.bf16.msra.mxu0 %v3211_v30  ;;  %1556 = vmatpush1.bf16.msra.mxu1 %v3215_v0 }
 0x598   : > { %1516 = vmatprep.subr.bf16.mxu0 %v3219_v31  ;;  %1557 = vmatprep.subr.bf16.mxu1 %v3223_v32 }
 0x59b   : > { %1517 = vmatpush1.bf16.msra.mxu0 %v3227_v33  ;;  %1558 = vmatpush1.bf16.msra.mxu1 %v3231_v34 }
 0x59c   : > { %1518 = vmatprep.subr.bf16.mxu0 %v3235_v35  ;;  %1559 = vmatprep.subr.bf16.mxu1 %v3239_v36 }
 0x59f   : > { %1519 = vmatpush1.bf16.msra.mxu0 %v3243_v37  ;;  %1560 = vmatpush1.bf16.msra.mxu1 %v3247_v38 }
 0x5a0   : > { %1520 = vmatprep.subr.bf16.mxu0 %v3251_v39  ;;  %1561 = vmatprep.subr.bf16.mxu1 %v3255_v40 }
 0x5a3   : > { %1521 = vmatpush1.bf16.msra.mxu0 %v3259_v41  ;;  %1562 = vmatpush1.bf16.msra.mxu1 %v3263_v43 }
 0x5a4   : > { %1522 = vmatprep.subr.bf16.mxu0 %v3267_v2  ;;  %1563 = vmatprep.subr.bf16.mxu1 %v3271_v44 }
 0x5a7   : > { %1523 = vmatpush1.bf16.msra.mxu0 %v3275_v58  ;;  %1564 = vmatpush1.bf16.msra.mxu1 %v3279_v61 }
 0x5a8   : > { %1524 = vmatprep.subr.bf16.mxu0 %v3283_v45  ;;  %1565 = vmatprep.subr.bf16.mxu1 %v3287_v53 }
 0x5ab   : > { %1525 = vmatpush1.bf16.msra.mxu0 %v3291_v54  ;;  %1566 = vmatpush1.bf16.msra.mxu1 %v3295_v1 }
 0x5ac   : > { %1526 = vmatprep.subr.bf16.mxu0 %v3299_v60  ;;  %1567 = vmatprep.subr.bf16.mxu1 %v3303_v51 }
 0x5af   : > { %1527 = vmatpush1.bf16.msra.mxu0 %v3307_v49  ;;  %1568 = vmatpush1.bf16.msra.mxu1 %v3311_v52 }
 0x5b0   : > { %1528 = vmatprep.subr.bf16.mxu0 %v3315_v55  ;;  %1569 = vmatprep.subr.bf16.mxu1 %v3319_v57 }
 0x5b3   : > { %1529 = vmatpush1.bf16.msra.mxu0 %v3941_v62  ;;  %1570 = vmatpush1.bf16.msra.mxu1 %v3942_v7 }
 0x5b4   : > { %1530 = vmatprep.subr.bf16.mxu0 %v3943_v18  ;;  %1571 = vmatprep.subr.bf16.mxu1 %v3335_v27 }
 0x5b7   : > { %1531 = vmatpush1.bf16.msra.mxu0 %v3944_v19  ;;  %1572 = vmatpush1.bf16.msra.mxu1 %v3945_v20 }
 0x5b8   : > { %1532 = vmatprep.subr.bf16.mxu0 %v3946_v21  ;;  %1573 = vmatprep.subr.bf16.mxu1 %v3351_v56 }
 0x5bb   : > { %1533 = vmatpush1.bf16.msra.mxu0 %v3355_v4  ;;  %1574 = vmatpush1.bf16.msra.mxu1 %v3451_v22 }
 0x5bc   : > { %1534 = vmatprep.subr.bf16.mxu0 %v3360_v59  ;;  %1575 = vmatprep.subr.bf16.mxu1 %v3456_v23 }
 0x5bf   : > { %1535 = vmatpush1.bf16.msra.mxu0 %v3365_v28  ;;  %1576 = vmatpush1.bf16.msra.mxu1 %v3967_v9 }
 0x5c0   : > { %1536 = vmatprep.subr.bf16.mxu0 %v3968_v13  ;;  %1577 = vmatprep.subr.bf16.mxu1 %v3969_v6 }
 0x5c3   : > { %1537 = vmatpush1.bf16.msra.mxu0 %v3970_v47  ;;  %1578 = vmatpush1.bf16.msra.mxu1 %v3971_v3 }
 0x5c4   : > { %1538 = vmatprep.subr.bf16.mxu0 %v3972_v46  ;;  %1579 = vmatprep.subr.bf16.mxu1 %v3973_v5  ;;  %v3990_v5 = vld [vmem:[#allocation32_spill] sm:$0xff] }
 0x5c7   : > { %1539 = vmatpush1.bf16.msra.mxu0 %v3974_v8  ;;  %1580 = vmatpush1.bf16.msra.mxu1 %v3975_v25  ;;  %v3985_v8 = vld [vmem:[#allocation12_spill] sm:$0xff]  ;;  %v3986_v25 = vld [vmem:[#allocation14_spill] sm:$0xff] }
 0x5c8   : > { %1540 = vmatprep.subr.bf16.mxu0 %v3976_v10  ;;  %1581 = vmatprep.subr.bf16.mxu1 %v3977_v11  ;;  %v3987_v10 = vld [vmem:[#allocation10_spill] sm:$0xff]  ;;  %v3988_v11 = vld [vmem:[#allocation9_spill] sm:$0xff] }
 0x5cb   : > { %1541 = vmatpush1.bf16.msra.mxu0 %v3978_v29  ;;  %1582 = vmatpush1.bf16.msra.mxu1 %v3979_v63  ;;  %v3989_v29 = vld [vmem:[#allocation7_spill] sm:$0xff] }
 0x5cc   : > { %1542 = vmatprep.subr.bf16.mxu0 %v3980_v24  ;;  %1583 = vmatprep.subr.bf16.mxu1 %v3981_v15 }
 0x5cf   : > { %1543 = vmatpush1.bf16.msra.mxu0 %v3982_v16  ;;  %1584 = vmatpush1.bf16.msra.mxu1 %v3983_v17 }
 0x5d0   : > { %1544 = vmatprep.subr.bf16.mxu0 %v3984_v12  ;;  %1585 = vmatprep.subr.bf16.mxu1 %v3985_v8 }
 0x5d3   : > { %1545 = vmatpush1.bf16.msra.mxu0 %v3986_v25  ;;  %1586 = vmatpush1.bf16.msra.mxu1 %v3987_v10 }
 0x5d4   : > { %1638 = vmatprep.subr.bf16.mxu0 %v3988_v11  ;;  %1679 = vmatprep.subr.bf16.mxu1 %v3989_v29 }
 0x669   : > { %v1423_v63 = vpop.f32.mrb[20].mxu0  ;;  %v1464_v24 = vpop.f32.mrb[20].mxu1 }
 0x66a   : > { %v1424_v15 = vadd.f32 %v1423_v63, %v3990_v5  ;;  %v1425_v46 = vpop.f32.mrb[21].mxu0  ;;  %v1466_v16 = vpop.f32.mrb[21].mxu1  ;;  %v1465_v29 = vadd.f32 %v1464_v24, %v2989_v50 }
 0x66b   : > { %v1426_v17 = vadd.f32 %v1425_v46, %v2982_v42  ;;  %v1427_v3 = vpop.f32.mrb[22].mxu0  ;;  %v1468_v12 = vpop.f32.mrb[22].mxu1  ;;  %v1467_v11 = vadd.f32 %v1466_v16, %v2986_v48 }
 0x66c   : > { %v2029_v47 = vmul.f32 -1.442695, %v1424_v15  ;;  %v1428_v8 = vpop.f32.mrb[23].mxu0  ;;  %v1469_v6 = vpop.f32.mrb[23].mxu1 }
 0x66d   : > { %v2030_v25 = vmul.f32 -1.442695, %v1426_v17  ;;  %v2031_v10 = vmul.f32 -1.442695, %v1467_v11  ;;  %v1501_v24 = vpop.permute.xlu1 %1500 }
 0x66e   : > { %2278 = vpow2.f32 %v2029_v47  ;;  %vm1502_vm13 = vcmp.eq.s32.totalorder %v1501_v24, 1 }
 0x66f   : > { %2280 = vpow2.f32 %v2030_v25 }
 0x670   : > { %2282 = vpow2.f32 %v2031_v10 }
 0x671   : > { %2284 = vtanh.f32 %v1465_v29 }
 0x678   : > { %v2279_v13 = vpop.eup %2278 }
 0x679   : > { %v2281_v63 = vpop.eup %2280  ;;  %v1474_v5 = vadd.f32 1.0, %v2279_v13 }
 0x67a   : > { %v1480_v9 = vadd.f32 1.0, %v2281_v63  ;;  %v2283_v3 = vpop.eup %2282  ;;  %v1512_v63 = vld [vmem:[%s1511_s28] sm:$0x1] }
 0x67b   : > { %2286 = vrcp.f32 %v1474_v5  ;;  %v2285_v46 = vpop.eup %2284  ;;  %v1487_v47 = vadd.f32 1.0, %v2283_v3 }
 0x67c   : > { %2288 = vrcp.f32 %v1480_v9 }
 0x67d   : > { %2290 = vrcp.f32 %v1487_v47 }
 0x685   : > { %v2287_v6 = vpop.eup %2286 }
 0x686   : > { %v2289_v8 = vpop.eup %2288  ;;  %v1491_v25 = vmul.f32 %v2287_v6, %v2285_v46 }
 0x687   : > { %v1490_v15 = vmul.f32 %v2289_v8, %v3549_v26  ;;  %v2291_v9 = vpop.eup %2290  ;;  %v1626_v8 = vpop.permute.xlu0 %1625 }
 0x688   : > { %vm1627_vm14 = vcmp.eq.s32.totalorder %v1626_v8, 1 }
 0x689   : > { %v1492_v16 = vadd.f32 %v1491_v25, %v1490_v15 }
 0x68b   : > { %2292 = vtanh.f32 %v1492_v16  ;;  %v3632_v13 = vsel %vm1502_vm13, %v1492_v16, %v3549_v26 }
 0x695   : > { %v2293_v5 = vpop.eup %2292 }
 0x696   : > { %v1494_v10 = vmul.f32 %v2293_v5, %v2291_v9 }
 0x698   : > { %v3641_v17 = vsel %vm1502_vm13, %v1494_v10, %v3558_v14  ;;  %v1505_v12 = vsel %vm1502_vm13, %v1494_v10, 0.0 }
 0x699   : > { %v1506_v11 = vpack.c.bf16 %v1505_v12, %v1505_v12  ;;  %v1513_v29 = vpack.c.bf16 %v3641_v17, %v3641_v17 }
 0x69b   : > { %1508 = vst [vmem:[%s1507_s29] sm:$0x1] %v1506_v11  ;;  %1546 = vmatprep.mubr.bf16.mxu0 %v1513_v29  ;;  %1587 = vmatprep.mubr.bf16.mxu1 %v1513_v29 }
 0x69c   : > { %1547 = vmatmul.mubr.bf16.vlgmr.msra.gmra.mrb[24].mxu0 %v1512_v63  ;;  %1588 = vmatmul.mubr.bf16.vlgmr.msra.gmra.mrb[24].mxu1 %v1512_v63  ;;  %v1636_v63 = vld [vmem:[%s1635_s30] sm:$0x1] }
 0x69d   : > { %1639 = vmatpush1.bf16.msra.mxu0 %v3211_v30  ;;  %1680 = vmatpush1.bf16.msra.mxu1 %v3215_v0  ;;  %v3991_v30 = vld [vmem:[#allocation13_spill] sm:$0xff]  ;;  %v3992_v0 = vld [vmem:[#allocation18_spill] sm:$0xff] }
 0x69e   : > { %1640 = vmatprep.subr.bf16.mxu0 %v3219_v31  ;;  %1681 = vmatprep.subr.bf16.mxu1 %v3223_v32  ;;  %v3993_v31 = vld [vmem:[#allocation19_spill] sm:$0xff]  ;;  %v3994_v32 = vld [vmem:[#allocation16_spill] sm:$0xff] }
 0x6a1   : > { %1641 = vmatpush1.bf16.msra.mxu0 %v3227_v33  ;;  %1682 = vmatpush1.bf16.msra.mxu1 %v3231_v34  ;;  %v3995_v33 = vld [vmem:[#allocation22_spill] sm:$0xff]  ;;  %v3996_v34 = vld [vmem:[#allocation17_spill] sm:$0xff] }
 0x6a2   : > { %1642 = vmatprep.subr.bf16.mxu0 %v3235_v35  ;;  %1683 = vmatprep.subr.bf16.mxu1 %v3239_v36  ;;  %v3997_v35 = vld [vmem:[#allocation23_spill] sm:$0xff]  ;;  %v3998_v36 = vld [vmem:[#allocation20_spill] sm:$0xff] }
 0x6a5   : > { %1643 = vmatpush1.bf16.msra.mxu0 %v3243_v37  ;;  %1684 = vmatpush1.bf16.msra.mxu1 %v3247_v38  ;;  %v3999_v37 = vld [vmem:[#allocation26_spill] sm:$0xff]  ;;  %v4000_v38 = vld [vmem:[#allocation21_spill] sm:$0xff] }
 0x6a6   : > { %1644 = vmatprep.subr.bf16.mxu0 %v3251_v39  ;;  %1685 = vmatprep.subr.bf16.mxu1 %v3255_v40  ;;  %v4001_v39 = vld [vmem:[#allocation27_spill] sm:$0xff]  ;;  %v4002_v40 = vld [vmem:[#allocation24_spill] sm:$0xff] }
 0x6a9   : > { %1645 = vmatpush1.bf16.msra.mxu0 %v3259_v41  ;;  %1686 = vmatpush1.bf16.msra.mxu1 %v3263_v43  ;;  %v4003_v41 = vld [vmem:[#allocation29_spill] sm:$0xff] }
 0x6aa   : > { %1646 = vmatprep.subr.bf16.mxu0 %v3267_v2  ;;  %1687 = vmatprep.subr.bf16.mxu1 %v3271_v44  ;;  %v4004_v43 = vld [vmem:[#allocation25_spill] sm:$0xff]  ;;  %v4005_v2 = vld [vmem:[#allocation30_spill] sm:$0xff]  ;;  %v4006_v44 = vld [vmem:[#allocation28_spill] sm:$0xff] }
 0x6ad   : > { %1647 = vmatpush1.bf16.msra.mxu0 %v3275_v58  ;;  %1688 = vmatpush1.bf16.msra.mxu1 %v3279_v61  ;;  %v4007_v58 = vld [vmem:[#allocation31_spill] sm:$0xff]  ;;  %v4008_v61 = vld [vmem:[#allocation8_spill] sm:$0xff] }
 0x6ae   : > { %1648 = vmatprep.subr.bf16.mxu0 %v3283_v45  ;;  %1689 = vmatprep.subr.bf16.mxu1 %v3287_v53  ;;  %v4009_v45 = vld [vmem:[#allocation12_spill] sm:$0xff]  ;;  %v4010_v53 = vld [vmem:[#allocation14_spill] sm:$0xff] }
 0x6b1   : > { %1649 = vmatpush1.bf16.msra.mxu0 %v3291_v54  ;;  %1690 = vmatpush1.bf16.msra.mxu1 %v3295_v1  ;;  %v4011_v54 = vld [vmem:[#allocation10_spill] sm:$0xff] }
 0x6b2   : > { %1650 = vmatprep.subr.bf16.mxu0 %v3299_v60  ;;  %1691 = vmatprep.subr.bf16.mxu1 %v3303_v51  ;;  %v4012_v51 = vld [vmem:[#allocation32_spill] sm:$0xff] }
 0x6b5   : > { %1651 = vmatpush1.bf16.msra.mxu0 %v3307_v49  ;;  %1692 = vmatpush1.bf16.msra.mxu1 %v3311_v52 }
 0x6b6   : > { %1652 = vmatprep.subr.bf16.mxu0 %v3315_v55  ;;  %1693 = vmatprep.subr.bf16.mxu1 %v3319_v57 }
 0x6b9   : > { %1653 = vmatpush1.bf16.msra.mxu0 %v3941_v62  ;;  %1694 = vmatpush1.bf16.msra.mxu1 %v3942_v7 }
 0x6ba   : > { %1654 = vmatprep.subr.bf16.mxu0 %v3943_v18  ;;  %1695 = vmatprep.subr.bf16.mxu1 %v3335_v27 }
 0x6bd   : > { %1655 = vmatpush1.bf16.msra.mxu0 %v3944_v19  ;;  %1696 = vmatpush1.bf16.msra.mxu1 %v3945_v20 }
 0x6be   : > { %1656 = vmatprep.subr.bf16.mxu0 %v3946_v21  ;;  %1697 = vmatprep.subr.bf16.mxu1 %v3351_v56 }
 0x6c1   : > { %1657 = vmatpush1.bf16.msra.mxu0 %v3355_v4  ;;  %1698 = vmatpush1.bf16.msra.mxu1 %v3451_v22 }
 0x6c2   : > { %1658 = vmatprep.subr.bf16.mxu0 %v3360_v59  ;;  %1699 = vmatprep.subr.bf16.mxu1 %v3456_v23 }
 0x6c5   : > { %1659 = vmatpush1.bf16.msra.mxu0 %v3365_v28  ;;  %1700 = vmatpush1.bf16.msra.mxu1 %v3991_v30 }
 0x6c6   : > { %1660 = vmatprep.subr.bf16.mxu0 %v3992_v0  ;;  %1701 = vmatprep.subr.bf16.mxu1 %v3993_v31 }
 0x6c9   : > { %1661 = vmatpush1.bf16.msra.mxu0 %v3994_v32  ;;  %1702 = vmatpush1.bf16.msra.mxu1 %v3995_v33 }
 0x6ca   : > { %1662 = vmatprep.subr.bf16.mxu0 %v3996_v34  ;;  %1703 = vmatprep.subr.bf16.mxu1 %v3997_v35 }
 0x6cd   : > { %1663 = vmatpush1.bf16.msra.mxu0 %v3998_v36  ;;  %1704 = vmatpush1.bf16.msra.mxu1 %v3999_v37 }
 0x6ce   : > { %1664 = vmatprep.subr.bf16.mxu0 %v4000_v38  ;;  %1705 = vmatprep.subr.bf16.mxu1 %v4001_v39 }
 0x6d1   : > { %1665 = vmatpush1.bf16.msra.mxu0 %v4002_v40  ;;  %1706 = vmatpush1.bf16.msra.mxu1 %v4003_v41 }
 0x6d2   : > { %1666 = vmatprep.subr.bf16.mxu0 %v4004_v43  ;;  %1707 = vmatprep.subr.bf16.mxu1 %v4005_v2 }
 0x6d5   : > { %1667 = vmatpush1.bf16.msra.mxu0 %v4006_v44  ;;  %1708 = vmatpush1.bf16.msra.mxu1 %v4007_v58 }
 0x6d6   : > { %1668 = vmatprep.subr.bf16.mxu0 %v4008_v61  ;;  %1709 = vmatprep.subr.bf16.mxu1 %v4009_v45 }
 0x6d9   : > { %1669 = vmatpush1.bf16.msra.mxu0 %v4010_v53  ;;  %1710 = vmatpush1.bf16.msra.mxu1 %v4011_v54 }
 0x76f   : > { %v1548_v1 = vpop.f32.mrb[24].mxu0  ;;  %v1589_v60 = vpop.f32.mrb[24].mxu1 }
 0x770   : > { %v1549_v49 = vadd.f32 %v1548_v1, %v4012_v51  ;;  %v1550_v52 = vpop.f32.mrb[25].mxu0  ;;  %v1591_v55 = vpop.f32.mrb[25].mxu1  ;;  %v1590_v19 = vadd.f32 %v1589_v60, %v2989_v50 }
 0x771   : > { %v1551_v57 = vadd.f32 %v1550_v52, %v2982_v42  ;;  %v1552_v56 = vpop.f32.mrb[26].mxu0  ;;  %v1593_v4 = vpop.f32.mrb[26].mxu1  ;;  %v1592_v7 = vadd.f32 %v1591_v55, %v2986_v48 }
 0x772   : > { %v2032_v27 = vmul.f32 -1.442695, %v1549_v49  ;;  %v1553_v59 = vpop.f32.mrb[27].mxu0  ;;  %v1594_v28 = vpop.f32.mrb[27].mxu1 }
 0x773   : > { %v2033_v62 = vmul.f32 -1.442695, %v1551_v57  ;;  %v2034_v18 = vmul.f32 -1.442695, %v1592_v7 }
 0x774   : > { %2294 = vpow2.f32 %v2032_v27 }
 0x775   : > { %2296 = vpow2.f32 %v2033_v62 }
 0x776   : > { %2298 = vpow2.f32 %v2034_v18 }
 0x777   : > { %2300 = vtanh.f32 %v1590_v19 }
 0x77e   : > { %v2295_v20 = vpop.eup %2294 }
 0x77f   : > { %v2297_v21 = vpop.eup %2296  ;;  %v1599_v22 = vadd.f32 1.0, %v2295_v20 }
 0x780   : > { %v1605_v23 = vadd.f32 1.0, %v2297_v21  ;;  %v2299_v26 = vpop.eup %2298 }
 0x781   : > { %2302 = vrcp.f32 %v1599_v22  ;;  %v2301_v14 = vpop.eup %2300  ;;  %v1612_v46 = vadd.f32 1.0, %v2299_v26 }
 0x782   : > { %2304 = vrcp.f32 %v1605_v23 }
 0x783   : > { %2306 = vrcp.f32 %v1612_v46 }
 0x78b   : > { %v2303_v3 = vpop.eup %2302 }
 0x78c   : > { %v2305_v6 = vpop.eup %2304  ;;  %v1616_v47 = vmul.f32 %v2303_v3, %v2301_v14 }
 0x78d   : > { %v1615_v25 = vmul.f32 %v2305_v6, %v3632_v13  ;;  %v2307_v16 = vpop.eup %2306 }
 0x78f   : > { %v1617_v15 = vadd.f32 %v1616_v47, %v1615_v25 }
 0x791   : > { %2308 = vtanh.f32 %v1617_v15  ;;  %v1629_v24 = vsel %vm1627_vm14, %v1617_v15, %v3632_v13 }
 0x79b   : > { %v2309_v9 = vpop.eup %2308 }
 0x79c   : > { %v1619_v5 = vmul.f32 %v2309_v9, %v2307_v16 }
 0x79e   : > { %v1628_v10 = vsel %vm1627_vm14, %v1619_v5, %v3641_v17  ;;  %v1630_v12 = vsel %vm1627_vm14, %v1619_v5, 0.0 }
 0x79f   : > { %v1631_v11 = vpack.c.bf16 %v1630_v12, %v1630_v12  ;;  %v1637_v29 = vpack.c.bf16 %v1628_v10, %v1628_v10 }
 0x7a1   : > { %1633 = vst [vmem:[%s1632_s11] sm:$0x1] %v1631_v11  ;;  %1670 = vmatprep.mubr.bf16.mxu0 %v1637_v29  ;;  %1711 = vmatprep.mubr.bf16.mxu1 %v1637_v29 }
 0x7a2   : > { %1671 = vmatmul.mubr.bf16.vlgmr.msra.gmra.mrb[28].mxu0 %v1636_v63  ;;  %1712 = vmatmul.mubr.bf16.vlgmr.msra.gmra.mrb[28].mxu1 %v1636_v63 }
 0x875   : > { %v1672_v13 = vpop.f32.mrb[28].mxu0  ;;  %v1713_v30 = vpop.f32.mrb[28].mxu1 }
 0x876   : > { %v1673_v0 = vadd.f32 %v1672_v13, %v4012_v51  ;;  %v1674_v31 = vpop.f32.mrb[29].mxu0  ;;  %v1715_v32 = vpop.f32.mrb[29].mxu1  ;;  %v1714_v41 = vadd.f32 %v1713_v30, %v2989_v50 }
 0x877   : > { %v1675_v33 = vadd.f32 %v1674_v31, %v2982_v42  ;;  %v1676_v34 = vpop.f32.mrb[30].mxu0  ;;  %v1717_v35 = vpop.f32.mrb[30].mxu1  ;;  %v1716_v39 = vadd.f32 %v1715_v32, %v2986_v48 }
 0x878   : > { %v2035_v17 = vmul.f32 -1.442695, %v1673_v0  ;;  %v1677_v36 = vpop.f32.mrb[31].mxu0  ;;  %v1718_v37 = vpop.f32.mrb[31].mxu1 }
 0x879   : > { %v2036_v38 = vmul.f32 -1.442695, %v1675_v33  ;;  %v2037_v40 = vmul.f32 -1.442695, %v1716_v39  ;;  %v1750_v48 = vpop.permute.xlu1 %1749 }
 0x87a   : > { %2310 = vpow2.f32 %v2035_v17  ;;  %vm1751_vm15 = vcmp.eq.s32.totalorder %v1750_v48, 1 }
 0x87b   : > { %2312 = vpow2.f32 %v2036_v38 }
 0x87c   : > { %2314 = vpow2.f32 %v2037_v40 }
 0x87d   : > { %2316 = vtanh.f32 %v1714_v41 }
 0x884   : > { %v2311_v43 = vpop.eup %2310 }
 0x885   : > { %v2313_v2 = vpop.eup %2312  ;;  %v1723_v44 = vadd.f32 1.0, %v2311_v43 }
 0x886   : > { %v1729_v58 = vadd.f32 1.0, %v2313_v2  ;;  %v2315_v42 = vpop.eup %2314 }
 0x887   : > { %2318 = vrcp.f32 %v1723_v44  ;;  %v2317_v61 = vpop.eup %2316  ;;  %v1736_v53 = vadd.f32 1.0, %v2315_v42 }
 0x888   : > { %2320 = vrcp.f32 %v1729_v58 }
 0x889   : > { %2322 = vrcp.f32 %v1736_v53 }
 0x891   : > { %v2319_v45 = vpop.eup %2318 }
 0x892   : > { %v2321_v54 = vpop.eup %2320  ;;  %v1740_v1 = vmul.f32 %v2319_v45, %v2317_v61 }
 0x893   : > { %v1739_v60 = vmul.f32 %v2321_v54, %v1629_v24  ;;  %v2323_v49 = vpop.eup %2322 }
 0x895   : > { %v1741_v51 = vadd.f32 %v1740_v1, %v1739_v60 }
 0x897   : > { %2324 = vtanh.f32 %v1741_v51  ;;  %v1753_v50 = vsel %vm1751_vm15, %v1741_v51, %v1629_v24 }
 0x898   : > { %1759 = vst [vmem:[#allocation3] sm:$0x3] %v1753_v50 }
 0x8a1   : > { %v2325_v52 = vpop.eup %2324 }
 0x8a2   : > { %v1743_v55 = vmul.f32 %v2325_v52, %v2323_v49 }
 0x8a4   : > { %v1752_v57 = vsel %vm1751_vm15, %v1743_v55, %v1628_v10  ;;  %v1754_v56 = vsel %vm1751_vm15, %v1743_v55, 0.0 }
 0x8a5   : > { %v1755_v4 = vpack.c.bf16 %v1754_v56, %v1754_v56  ;;  %1758 = vst [vmem:[#allocation2] sm:$0x3] %v1752_v57 }
 0x8a7   : > { %1757 = vst [vmem:[%s1756_s25] sm:$0x1] %v1755_v4 }
 0x8a8 PF: > { %s17_s20 = sadd.s32 1, %s2470_s20   ;;  %s4013_s15 = smov %s2454_s16 }
 0x8a9   : > { %p14_p9 = scmp.ge.s32.totalorder %s17_s20, 4   ;;  %s4014_s16 = smov %s2458_s17 }
 0x8aa   : > { %s4015_s17 = smov %s2551_s27  ;;  %s4016_s18 = smov %s2466_s19 }
 0x8ab   : > { %s4017_s19 = smov %s4019_s22  ;;  %16 = sbr.rel (!%p14_p9) target bundleno = 4 (0x4), region = 102 }
 0x8b2   :  { %1803 = vsyncpa [#allocation5], 1 }
 0x8b3   :  { %1805 = vsyncpa [#allocation5 + $0x1], 1 }

</bundles_post_ra>
